<compile_context>
chip_gen: v5e
topology: v5e:2x2
jax: 0.10.0
libtpu: 0.0.40
codegen_flags: <defaults>
</compile_context>

<pallas_src>
import jax
import jax.numpy as jnp
from jax import lax
from jax.experimental import pallas as pl
from jax.experimental.pallas import tpu as pltpu


def group_kernel(xyz_ref, nb_ref, center_ref):
    # xyz_ref:    (1, 3, N)      lane-major points
    # nb_ref:     (1, 3, G, M)   neighborhood, coordinate-major
    # center_ref: (1, G, 3)
    N = xyz_ref.shape[2]
    G = center_ref.shape[1]
    M = nb_ref.shape[3]

    px = xyz_ref[0, 0:1, :]                                   # (1, N)
    py = xyz_ref[0, 1:2, :]                                   # (1, N)
    pz = xyz_ref[0, 2:3, :]                                   # (1, N)

    colN = lax.broadcasted_iota(jnp.int32, (1, N), 1)         # (1, N)
    rowG = lax.broadcasted_iota(jnp.int32, (G, 1), 0)         # (G, 1)
    colM = lax.broadcasted_iota(jnp.int32, (1, M), 1)         # (1, M)

    # ---------------- Phase 1: farthest point sampling ----------------
    # First sampled point is index 0 (pytorch3d default, random_start=False).
    c0x = px[:, 0:1]
    c0y = py[:, 0:1]
    c0z = pz[:, 0:1]                                          # (1, 1)
    dx = px - c0x
    dy = py - c0y
    dz = pz - c0z
    mind = dx * dx + dy * dy + dz * dz                        # (1, N)

    zeros_g = jnp.zeros((G, 1), jnp.float32)
    is0 = rowG == 0
    cxc = jnp.where(is0, c0x, zeros_g)                        # (G, 1)
    cyc = jnp.where(is0, c0y, zeros_g)
    czc = jnp.where(is0, c0z, zeros_g)

    def fps_body(k, carry):
        mind, cxc, cyc, czc = carry
        maxv = jnp.max(mind, axis=1, keepdims=True)           # (1, 1)
        idx = jnp.min(jnp.where(mind == maxv, colN, N),
                      axis=1, keepdims=True)                  # (1, 1) first argmax
        sel = colN == idx                                     # (1, N)
        cx = jnp.sum(jnp.where(sel, px, 0.0), axis=1, keepdims=True)  # (1, 1)
        cy = jnp.sum(jnp.where(sel, py, 0.0), axis=1, keepdims=True)
        cz = jnp.sum(jnp.where(sel, pz, 0.0), axis=1, keepdims=True)
        at_k = rowG == k
        cxc = jnp.where(at_k, cx, cxc)
        cyc = jnp.where(at_k, cy, cyc)
        czc = jnp.where(at_k, cz, czc)
        ddx = px - cx
        ddy = py - cy
        ddz = pz - cz
        mind = jnp.minimum(mind, ddx * ddx + ddy * ddy + ddz * ddz)
        return mind, cxc, cyc, czc

    _, cxc, cyc, czc = lax.fori_loop(
        1, G, fps_body, (mind, cxc, cyc, czc), unroll=True)

    # Write centers (one small masked store per coordinate).
    center_ref[0, :, 0:1] = cxc
    center_ref[0, :, 1:2] = cyc
    center_ref[0, :, 2:3] = czc

    # ---------------- Phase 2: kNN grouping (vectorized over G) ----------------
    gdx = cxc - px
    gdy = cyc - py
    gdz = czc - pz
    dist = gdx * gdx + gdy * gdy + gdz * gdz                  # (G, N)

    def knn_body(m, carry):
        dist, nbx, nby, nbz = carry
        minv = jnp.min(dist, axis=1, keepdims=True)           # (G, 1)
        idx = jnp.min(jnp.where(dist == minv, colN, N),
                      axis=1, keepdims=True)                  # (G, 1) first argmin
        onehot = colN == idx                                  # (G, N)
        gx = jnp.sum(jnp.where(onehot, px, 0.0), axis=1, keepdims=True)  # (G, 1)
        gy = jnp.sum(jnp.where(onehot, py, 0.0), axis=1, keepdims=True)
        gz = jnp.sum(jnp.where(onehot, pz, 0.0), axis=1, keepdims=True)
        at_m = colM == m                                      # (1, M)
        nbx = jnp.where(at_m, gx, nbx)                        # (G, M)
        nby = jnp.where(at_m, gy, nby)
        nbz = jnp.where(at_m, gz, nbz)
        dist = jnp.where(onehot, jnp.inf, dist)
        return dist, nbx, nby, nbz

    nb0 = jnp.zeros((G, M), jnp.float32)
    _, nbx, nby, nbz = lax.fori_loop(
        0, M, knn_body, (dist, nb0, nb0, nb0), unroll=True)

    # neighborhood = gathered points - center, coordinate-major slab store.
    nb_ref[0, 0, :, :] = nbx - cxc
    nb_ref[0, 1, :, :] = nby - cyc
    nb_ref[0, 2, :, :] = nbz - czc


def group_forward(xyz, num_group, group_size):
    """JAX/Pallas equivalent of Group.forward. xyz: (B, N, 3) f32."""
    B, N, C = xyz.shape
    assert C == 3
    G, M = num_group, group_size

    xyz_t = jnp.transpose(xyz, (0, 2, 1)).astype(jnp.float32)  # (B, 3, N) lane-major

    nb_t, center = pl.pallas_call(
        group_kernel,
        out_shape=(jax.ShapeDtypeStruct((B, 3, G, M), jnp.float32),
                   jax.ShapeDtypeStruct((B, G, 3), jnp.float32)),
        grid_spec=pltpu.PrefetchScalarGridSpec(
            num_scalar_prefetch=0,
            grid=(B,),
            in_specs=[pl.BlockSpec((1, 3, N), lambda b: (b, 0, 0))],
            out_specs=[pl.BlockSpec((1, 3, G, M), lambda b: (b, 0, 0, 0)),
                       pl.BlockSpec((1, G, 3), lambda b: (b, 0, 0))],
        ),
        compiler_params=pltpu.CompilerParams(
            dimension_semantics=("parallel",)),
    )(xyz_t)

    neighborhood = jnp.transpose(nb_t, (0, 2, 3, 1))            # (B, G, M, 3)
    return neighborhood, center


if __name__ == "__main__":
    B, N = 2, 128
    NUM_GROUP, GROUP_SIZE = 8, 16

    key = jax.random.PRNGKey(0)
    xyz = jax.random.normal(key, (B, N, 3), dtype=jnp.float32)

    neighborhood, center = jax.jit(
        group_forward, static_argnums=(1, 2))(xyz, NUM_GROUP, GROUP_SIZE)
    neighborhood = jax.block_until_ready(neighborhood)
    center = jax.block_until_ready(center)

    assert neighborhood.shape == (B, NUM_GROUP, GROUP_SIZE, 3)
    assert center.shape == (B, NUM_GROUP, 3)
    assert bool(jnp.all(jnp.isfinite(neighborhood))) and bool(jnp.all(jnp.isfinite(center)))

    # Sanity: every center must be one of the input points (FPS samples real points).
    dc = jnp.sum((center[:, :, None, :] - xyz[:, None, :, :]) ** 2, axis=-1)  # (B,G,N)
    assert float(jnp.max(jnp.min(dc, axis=-1))) < 1e-5

    # Sanity: neighborhood + center must reconstruct original points (gather - center).
    recon = neighborhood + center[:, :, None, :]                              # (B,G,M,3)
    dn = jnp.sum((recon[:, :, :, None, :] - xyz[:, None, None, :, :]) ** 2, axis=-1)
    assert float(jnp.max(jnp.min(dn, axis=-1))) < 1e-5

    # Sanity: first center equals point 0 (pytorch3d FPS starts at index 0).
    assert float(jnp.max(jnp.abs(center[:, 0, :] - xyz[:, 0, :]))) < 1e-6

    print("KERNEL_OK")
</pallas_src>

<mosaic_0001>
module attributes {stable_mosaic.version = 11 : i64} {
  func.func @group_kernel(%arg0: i32, %arg1: memref<1x3x128xf32, #tpu.memory_space<vmem>>, %arg2: memref<1x3x8x16xf32, #tpu.memory_space<vmem>>, %arg3: memref<1x8x3xf32, #tpu.memory_space<vmem>>) attributes {dimension_semantics = [#tpu.dimension_semantics<parallel>], iteration_bounds = array<i64: 2>, scalar_prefetch = 0 : i64, scratch_operands = 0 : i64, tpu.core_type = #tpu.core_type<tc>, window_params = [{transform_indices = @transform_0, window_bounds = array<i64: 1, 3, 128>}, {transform_indices = @transform_1, window_bounds = array<i64: 1, 3, 8, 16>}, {transform_indices = @transform_2, window_bounds = array<i64: 1, 8, 3>}]} {
    %c0 = arith.constant 0 : index
    %c0_0 = arith.constant 0 : index
    %c0_1 = arith.constant 0 : index
    %0 = vector.load %arg1[%c0, %c0_0, %c0_1] : memref<1x3x128xf32, #tpu.memory_space<vmem>>, vector<1x1x128xf32>
    %1 = vector.shape_cast %0 : vector<1x1x128xf32> to vector<1x128xf32>
    %c0_2 = arith.constant 0 : index
    %c1 = arith.constant 1 : index
    %c0_3 = arith.constant 0 : index
    %2 = vector.load %arg1[%c0_2, %c1, %c0_3] : memref<1x3x128xf32, #tpu.memory_space<vmem>>, vector<1x1x128xf32>
    %3 = vector.shape_cast %2 : vector<1x1x128xf32> to vector<1x128xf32>
    %c0_4 = arith.constant 0 : index
    %c2 = arith.constant 2 : index
    %c0_5 = arith.constant 0 : index
    %4 = vector.load %arg1[%c0_4, %c2, %c0_5] : memref<1x3x128xf32, #tpu.memory_space<vmem>>, vector<1x1x128xf32>
    %5 = vector.shape_cast %4 : vector<1x1x128xf32> to vector<1x128xf32>
    %6 = tpu.iota {dimensions = array<i32: 1>} : vector<1x128xi32>
    %7 = tpu.iota {dimensions = array<i32: 0>} : vector<8x1xi32>
    %8 = tpu.iota {dimensions = array<i32: 1>} : vector<1x16xi32>
    %9 = vector.extract_strided_slice %1 {offsets = [0, 0], sizes = [1, 1], strides = [1, 1]} : vector<1x128xf32> to vector<1x1xf32>
    %10 = vector.extract_strided_slice %3 {offsets = [0, 0], sizes = [1, 1], strides = [1, 1]} : vector<1x128xf32> to vector<1x1xf32>
    %11 = vector.extract_strided_slice %5 {offsets = [0, 0], sizes = [1, 1], strides = [1, 1]} : vector<1x128xf32> to vector<1x1xf32>
    %12 = vector.broadcast %9 : vector<1x1xf32> to vector<1x128xf32>
    %13 = arith.subf %1, %12 : vector<1x128xf32>
    %14 = vector.broadcast %10 : vector<1x1xf32> to vector<1x128xf32>
    %15 = arith.subf %3, %14 : vector<1x128xf32>
    %16 = vector.broadcast %11 : vector<1x1xf32> to vector<1x128xf32>
    %17 = arith.subf %5, %16 : vector<1x128xf32>
    %18 = arith.mulf %13, %13 : vector<1x128xf32>
    %19 = arith.mulf %15, %15 : vector<1x128xf32>
    %20 = arith.addf %18, %19 : vector<1x128xf32>
    %21 = arith.mulf %17, %17 : vector<1x128xf32>
    %22 = arith.addf %20, %21 : vector<1x128xf32>
    %cst = arith.constant 0.000000e+00 : f32
    %23 = vector.broadcast %cst : f32 to vector<8x1xf32>
    %c0_i32 = arith.constant 0 : i32
    %24 = vector.broadcast %c0_i32 : i32 to vector<8x1xi32>
    %25 = arith.cmpi eq, %7, %24 : vector<8x1xi32>
    %26 = vector.shape_cast %9 : vector<1x1xf32> to vector<1x1xf32>
    %27 = vector.broadcast %26 : vector<1x1xf32> to vector<8x1xf32>
    %28 = arith.select %25, %27, %23 : vector<8x1xi1>, vector<8x1xf32>
    %29 = vector.shape_cast %10 : vector<1x1xf32> to vector<1x1xf32>
    %30 = vector.broadcast %29 : vector<1x1xf32> to vector<8x1xf32>
    %31 = arith.select %25, %30, %23 : vector<8x1xi1>, vector<8x1xf32>
    %32 = vector.shape_cast %11 : vector<1x1xf32> to vector<1x1xf32>
    %33 = vector.broadcast %32 : vector<1x1xf32> to vector<8x1xf32>
    %34 = arith.select %25, %33, %23 : vector<8x1xi1>, vector<8x1xf32>
    %c1_i32 = arith.constant 1 : i32
    %cst_6 = arith.constant dense<0xFF800000> : vector<1xf32>
    %35 = vector.multi_reduction <maximumf>, %22, %cst_6 [1] : vector<1x128xf32> to vector<1xf32>
    %36 = vector.shape_cast %35 : vector<1xf32> to vector<1x1xf32>
    %37 = vector.broadcast %36 : vector<1x1xf32> to vector<1x128xf32>
    %38 = arith.cmpf oeq, %22, %37 : vector<1x128xf32>
    %c128_i32 = arith.constant 128 : i32
    %39 = vector.broadcast %c128_i32 : i32 to vector<1x128xi32>
    %40 = arith.select %38, %6, %39 : vector<1x128xi1>, vector<1x128xi32>
    %cst_7 = arith.constant dense<2147483647> : vector<1xi32>
    %41 = vector.multi_reduction <minsi>, %40, %cst_7 [1] : vector<1x128xi32> to vector<1xi32>
    %42 = vector.shape_cast %41 : vector<1xi32> to vector<1x1xi32>
    %43 = vector.broadcast %42 : vector<1x1xi32> to vector<1x128xi32>
    %44 = arith.cmpi eq, %6, %43 : vector<1x128xi32>
    %cst_8 = arith.constant 0.000000e+00 : f32
    %45 = vector.broadcast %cst_8 : f32 to vector<1x128xf32>
    %46 = arith.select %44, %1, %45 : vector<1x128xi1>, vector<1x128xf32>
    %cst_9 = arith.constant dense<0.000000e+00> : vector<1xf32>
    %47 = vector.multi_reduction <add>, %46, %cst_9 [1] : vector<1x128xf32> to vector<1xf32>
    %48 = vector.shape_cast %47 : vector<1xf32> to vector<1x1xf32>
    %cst_10 = arith.constant 0.000000e+00 : f32
    %49 = vector.broadcast %cst_10 : f32 to vector<1x128xf32>
    %50 = arith.select %44, %3, %49 : vector<1x128xi1>, vector<1x128xf32>
    %cst_11 = arith.constant dense<0.000000e+00> : vector<1xf32>
    %51 = vector.multi_reduction <add>, %50, %cst_11 [1] : vector<1x128xf32> to vector<1xf32>
    %52 = vector.shape_cast %51 : vector<1xf32> to vector<1x1xf32>
    %cst_12 = arith.constant 0.000000e+00 : f32
    %53 = vector.broadcast %cst_12 : f32 to vector<1x128xf32>
    %54 = arith.select %44, %5, %53 : vector<1x128xi1>, vector<1x128xf32>
    %cst_13 = arith.constant dense<0.000000e+00> : vector<1xf32>
    %55 = vector.multi_reduction <add>, %54, %cst_13 [1] : vector<1x128xf32> to vector<1xf32>
    %56 = vector.shape_cast %55 : vector<1xf32> to vector<1x1xf32>
    %57 = vector.broadcast %c1_i32 : i32 to vector<8x1xi32>
    %58 = arith.cmpi eq, %7, %57 : vector<8x1xi32>
    %59 = vector.shape_cast %48 : vector<1x1xf32> to vector<1x1xf32>
    %60 = vector.broadcast %59 : vector<1x1xf32> to vector<8x1xf32>
    %61 = arith.select %58, %60, %28 : vector<8x1xi1>, vector<8x1xf32>
    %62 = vector.shape_cast %52 : vector<1x1xf32> to vector<1x1xf32>
    %63 = vector.broadcast %62 : vector<1x1xf32> to vector<8x1xf32>
    %64 = arith.select %58, %63, %31 : vector<8x1xi1>, vector<8x1xf32>
    %65 = vector.shape_cast %56 : vector<1x1xf32> to vector<1x1xf32>
    %66 = vector.broadcast %65 : vector<1x1xf32> to vector<8x1xf32>
    %67 = arith.select %58, %66, %34 : vector<8x1xi1>, vector<8x1xf32>
    %68 = vector.broadcast %48 : vector<1x1xf32> to vector<1x128xf32>
    %69 = arith.subf %1, %68 : vector<1x128xf32>
    %70 = vector.broadcast %52 : vector<1x1xf32> to vector<1x128xf32>
    %71 = arith.subf %3, %70 : vector<1x128xf32>
    %72 = vector.broadcast %56 : vector<1x1xf32> to vector<1x128xf32>
    %73 = arith.subf %5, %72 : vector<1x128xf32>
    %74 = arith.mulf %69, %69 : vector<1x128xf32>
    %75 = arith.mulf %71, %71 : vector<1x128xf32>
    %76 = arith.addf %74, %75 : vector<1x128xf32>
    %77 = arith.mulf %73, %73 : vector<1x128xf32>
    %78 = arith.addf %76, %77 : vector<1x128xf32>
    %79 = arith.minimumf %22, %78 : vector<1x128xf32>
    %c2_i32 = arith.constant 2 : i32
    %cst_14 = arith.constant dense<0xFF800000> : vector<1xf32>
    %80 = vector.multi_reduction <maximumf>, %79, %cst_14 [1] : vector<1x128xf32> to vector<1xf32>
    %81 = vector.shape_cast %80 : vector<1xf32> to vector<1x1xf32>
    %82 = vector.broadcast %81 : vector<1x1xf32> to vector<1x128xf32>
    %83 = arith.cmpf oeq, %79, %82 : vector<1x128xf32>
    %c128_i32_15 = arith.constant 128 : i32
    %84 = vector.broadcast %c128_i32_15 : i32 to vector<1x128xi32>
    %85 = arith.select %83, %6, %84 : vector<1x128xi1>, vector<1x128xi32>
    %cst_16 = arith.constant dense<2147483647> : vector<1xi32>
    %86 = vector.multi_reduction <minsi>, %85, %cst_16 [1] : vector<1x128xi32> to vector<1xi32>
    %87 = vector.shape_cast %86 : vector<1xi32> to vector<1x1xi32>
    %88 = vector.broadcast %87 : vector<1x1xi32> to vector<1x128xi32>
    %89 = arith.cmpi eq, %6, %88 : vector<1x128xi32>
    %cst_17 = arith.constant 0.000000e+00 : f32
    %90 = vector.broadcast %cst_17 : f32 to vector<1x128xf32>
    %91 = arith.select %89, %1, %90 : vector<1x128xi1>, vector<1x128xf32>
    %cst_18 = arith.constant dense<0.000000e+00> : vector<1xf32>
    %92 = vector.multi_reduction <add>, %91, %cst_18 [1] : vector<1x128xf32> to vector<1xf32>
    %93 = vector.shape_cast %92 : vector<1xf32> to vector<1x1xf32>
    %cst_19 = arith.constant 0.000000e+00 : f32
    %94 = vector.broadcast %cst_19 : f32 to vector<1x128xf32>
    %95 = arith.select %89, %3, %94 : vector<1x128xi1>, vector<1x128xf32>
    %cst_20 = arith.constant dense<0.000000e+00> : vector<1xf32>
    %96 = vector.multi_reduction <add>, %95, %cst_20 [1] : vector<1x128xf32> to vector<1xf32>
    %97 = vector.shape_cast %96 : vector<1xf32> to vector<1x1xf32>
    %cst_21 = arith.constant 0.000000e+00 : f32
    %98 = vector.broadcast %cst_21 : f32 to vector<1x128xf32>
    %99 = arith.select %89, %5, %98 : vector<1x128xi1>, vector<1x128xf32>
    %cst_22 = arith.constant dense<0.000000e+00> : vector<1xf32>
    %100 = vector.multi_reduction <add>, %99, %cst_22 [1] : vector<1x128xf32> to vector<1xf32>
    %101 = vector.shape_cast %100 : vector<1xf32> to vector<1x1xf32>
    %102 = vector.broadcast %c2_i32 : i32 to vector<8x1xi32>
    %103 = arith.cmpi eq, %7, %102 : vector<8x1xi32>
    %104 = vector.shape_cast %93 : vector<1x1xf32> to vector<1x1xf32>
    %105 = vector.broadcast %104 : vector<1x1xf32> to vector<8x1xf32>
    %106 = arith.select %103, %105, %61 : vector<8x1xi1>, vector<8x1xf32>
    %107 = vector.shape_cast %97 : vector<1x1xf32> to vector<1x1xf32>
    %108 = vector.broadcast %107 : vector<1x1xf32> to vector<8x1xf32>
    %109 = arith.select %103, %108, %64 : vector<8x1xi1>, vector<8x1xf32>
    %110 = vector.shape_cast %101 : vector<1x1xf32> to vector<1x1xf32>
    %111 = vector.broadcast %110 : vector<1x1xf32> to vector<8x1xf32>
    %112 = arith.select %103, %111, %67 : vector<8x1xi1>, vector<8x1xf32>
    %113 = vector.broadcast %93 : vector<1x1xf32> to vector<1x128xf32>
    %114 = arith.subf %1, %113 : vector<1x128xf32>
    %115 = vector.broadcast %97 : vector<1x1xf32> to vector<1x128xf32>
    %116 = arith.subf %3, %115 : vector<1x128xf32>
    %117 = vector.broadcast %101 : vector<1x1xf32> to vector<1x128xf32>
    %118 = arith.subf %5, %117 : vector<1x128xf32>
    %119 = arith.mulf %114, %114 : vector<1x128xf32>
    %120 = arith.mulf %116, %116 : vector<1x128xf32>
    %121 = arith.addf %119, %120 : vector<1x128xf32>
    %122 = arith.mulf %118, %118 : vector<1x128xf32>
    %123 = arith.addf %121, %122 : vector<1x128xf32>
    %124 = arith.minimumf %79, %123 : vector<1x128xf32>
    %c3_i32 = arith.constant 3 : i32
    %cst_23 = arith.constant dense<0xFF800000> : vector<1xf32>
    %125 = vector.multi_reduction <maximumf>, %124, %cst_23 [1] : vector<1x128xf32> to vector<1xf32>
    %126 = vector.shape_cast %125 : vector<1xf32> to vector<1x1xf32>
    %127 = vector.broadcast %126 : vector<1x1xf32> to vector<1x128xf32>
    %128 = arith.cmpf oeq, %124, %127 : vector<1x128xf32>
    %c128_i32_24 = arith.constant 128 : i32
    %129 = vector.broadcast %c128_i32_24 : i32 to vector<1x128xi32>
    %130 = arith.select %128, %6, %129 : vector<1x128xi1>, vector<1x128xi32>
    %cst_25 = arith.constant dense<2147483647> : vector<1xi32>
    %131 = vector.multi_reduction <minsi>, %130, %cst_25 [1] : vector<1x128xi32> to vector<1xi32>
    %132 = vector.shape_cast %131 : vector<1xi32> to vector<1x1xi32>
    %133 = vector.broadcast %132 : vector<1x1xi32> to vector<1x128xi32>
    %134 = arith.cmpi eq, %6, %133 : vector<1x128xi32>
    %cst_26 = arith.constant 0.000000e+00 : f32
    %135 = vector.broadcast %cst_26 : f32 to vector<1x128xf32>
    %136 = arith.select %134, %1, %135 : vector<1x128xi1>, vector<1x128xf32>
    %cst_27 = arith.constant dense<0.000000e+00> : vector<1xf32>
    %137 = vector.multi_reduction <add>, %136, %cst_27 [1] : vector<1x128xf32> to vector<1xf32>
    %138 = vector.shape_cast %137 : vector<1xf32> to vector<1x1xf32>
    %cst_28 = arith.constant 0.000000e+00 : f32
    %139 = vector.broadcast %cst_28 : f32 to vector<1x128xf32>
    %140 = arith.select %134, %3, %139 : vector<1x128xi1>, vector<1x128xf32>
    %cst_29 = arith.constant dense<0.000000e+00> : vector<1xf32>
    %141 = vector.multi_reduction <add>, %140, %cst_29 [1] : vector<1x128xf32> to vector<1xf32>
    %142 = vector.shape_cast %141 : vector<1xf32> to vector<1x1xf32>
    %cst_30 = arith.constant 0.000000e+00 : f32
    %143 = vector.broadcast %cst_30 : f32 to vector<1x128xf32>
    %144 = arith.select %134, %5, %143 : vector<1x128xi1>, vector<1x128xf32>
    %cst_31 = arith.constant dense<0.000000e+00> : vector<1xf32>
    %145 = vector.multi_reduction <add>, %144, %cst_31 [1] : vector<1x128xf32> to vector<1xf32>
    %146 = vector.shape_cast %145 : vector<1xf32> to vector<1x1xf32>
    %147 = vector.broadcast %c3_i32 : i32 to vector<8x1xi32>
    %148 = arith.cmpi eq, %7, %147 : vector<8x1xi32>
    %149 = vector.shape_cast %138 : vector<1x1xf32> to vector<1x1xf32>
    %150 = vector.broadcast %149 : vector<1x1xf32> to vector<8x1xf32>
    %151 = arith.select %148, %150, %106 : vector<8x1xi1>, vector<8x1xf32>
    %152 = vector.shape_cast %142 : vector<1x1xf32> to vector<1x1xf32>
    %153 = vector.broadcast %152 : vector<1x1xf32> to vector<8x1xf32>
    %154 = arith.select %148, %153, %109 : vector<8x1xi1>, vector<8x1xf32>
    %155 = vector.shape_cast %146 : vector<1x1xf32> to vector<1x1xf32>
    %156 = vector.broadcast %155 : vector<1x1xf32> to vector<8x1xf32>
    %157 = arith.select %148, %156, %112 : vector<8x1xi1>, vector<8x1xf32>
    %158 = vector.broadcast %138 : vector<1x1xf32> to vector<1x128xf32>
    %159 = arith.subf %1, %158 : vector<1x128xf32>
    %160 = vector.broadcast %142 : vector<1x1xf32> to vector<1x128xf32>
    %161 = arith.subf %3, %160 : vector<1x128xf32>
    %162 = vector.broadcast %146 : vector<1x1xf32> to vector<1x128xf32>
    %163 = arith.subf %5, %162 : vector<1x128xf32>
    %164 = arith.mulf %159, %159 : vector<1x128xf32>
    %165 = arith.mulf %161, %161 : vector<1x128xf32>
    %166 = arith.addf %164, %165 : vector<1x128xf32>
    %167 = arith.mulf %163, %163 : vector<1x128xf32>
    %168 = arith.addf %166, %167 : vector<1x128xf32>
    %169 = arith.minimumf %124, %168 : vector<1x128xf32>
    %c4_i32 = arith.constant 4 : i32
    %cst_32 = arith.constant dense<0xFF800000> : vector<1xf32>
    %170 = vector.multi_reduction <maximumf>, %169, %cst_32 [1] : vector<1x128xf32> to vector<1xf32>
    %171 = vector.shape_cast %170 : vector<1xf32> to vector<1x1xf32>
    %172 = vector.broadcast %171 : vector<1x1xf32> to vector<1x128xf32>
    %173 = arith.cmpf oeq, %169, %172 : vector<1x128xf32>
    %c128_i32_33 = arith.constant 128 : i32
    %174 = vector.broadcast %c128_i32_33 : i32 to vector<1x128xi32>
    %175 = arith.select %173, %6, %174 : vector<1x128xi1>, vector<1x128xi32>
    %cst_34 = arith.constant dense<2147483647> : vector<1xi32>
    %176 = vector.multi_reduction <minsi>, %175, %cst_34 [1] : vector<1x128xi32> to vector<1xi32>
    %177 = vector.shape_cast %176 : vector<1xi32> to vector<1x1xi32>
    %178 = vector.broadcast %177 : vector<1x1xi32> to vector<1x128xi32>
    %179 = arith.cmpi eq, %6, %178 : vector<1x128xi32>
    %cst_35 = arith.constant 0.000000e+00 : f32
    %180 = vector.broadcast %cst_35 : f32 to vector<1x128xf32>
    %181 = arith.select %179, %1, %180 : vector<1x128xi1>, vector<1x128xf32>
    %cst_36 = arith.constant dense<0.000000e+00> : vector<1xf32>
    %182 = vector.multi_reduction <add>, %181, %cst_36 [1] : vector<1x128xf32> to vector<1xf32>
    %183 = vector.shape_cast %182 : vector<1xf32> to vector<1x1xf32>
    %cst_37 = arith.constant 0.000000e+00 : f32
    %184 = vector.broadcast %cst_37 : f32 to vector<1x128xf32>
    %185 = arith.select %179, %3, %184 : vector<1x128xi1>, vector<1x128xf32>
    %cst_38 = arith.constant dense<0.000000e+00> : vector<1xf32>
    %186 = vector.multi_reduction <add>, %185, %cst_38 [1] : vector<1x128xf32> to vector<1xf32>
    %187 = vector.shape_cast %186 : vector<1xf32> to vector<1x1xf32>
    %cst_39 = arith.constant 0.000000e+00 : f32
    %188 = vector.broadcast %cst_39 : f32 to vector<1x128xf32>
    %189 = arith.select %179, %5, %188 : vector<1x128xi1>, vector<1x128xf32>
    %cst_40 = arith.constant dense<0.000000e+00> : vector<1xf32>
    %190 = vector.multi_reduction <add>, %189, %cst_40 [1] : vector<1x128xf32> to vector<1xf32>
    %191 = vector.shape_cast %190 : vector<1xf32> to vector<1x1xf32>
    %192 = vector.broadcast %c4_i32 : i32 to vector<8x1xi32>
    %193 = arith.cmpi eq, %7, %192 : vector<8x1xi32>
    %194 = vector.shape_cast %183 : vector<1x1xf32> to vector<1x1xf32>
    %195 = vector.broadcast %194 : vector<1x1xf32> to vector<8x1xf32>
    %196 = arith.select %193, %195, %151 : vector<8x1xi1>, vector<8x1xf32>
    %197 = vector.shape_cast %187 : vector<1x1xf32> to vector<1x1xf32>
    %198 = vector.broadcast %197 : vector<1x1xf32> to vector<8x1xf32>
    %199 = arith.select %193, %198, %154 : vector<8x1xi1>, vector<8x1xf32>
    %200 = vector.shape_cast %191 : vector<1x1xf32> to vector<1x1xf32>
    %201 = vector.broadcast %200 : vector<1x1xf32> to vector<8x1xf32>
    %202 = arith.select %193, %201, %157 : vector<8x1xi1>, vector<8x1xf32>
    %203 = vector.broadcast %183 : vector<1x1xf32> to vector<1x128xf32>
    %204 = arith.subf %1, %203 : vector<1x128xf32>
    %205 = vector.broadcast %187 : vector<1x1xf32> to vector<1x128xf32>
    %206 = arith.subf %3, %205 : vector<1x128xf32>
    %207 = vector.broadcast %191 : vector<1x1xf32> to vector<1x128xf32>
    %208 = arith.subf %5, %207 : vector<1x128xf32>
    %209 = arith.mulf %204, %204 : vector<1x128xf32>
    %210 = arith.mulf %206, %206 : vector<1x128xf32>
    %211 = arith.addf %209, %210 : vector<1x128xf32>
    %212 = arith.mulf %208, %208 : vector<1x128xf32>
    %213 = arith.addf %211, %212 : vector<1x128xf32>
    %214 = arith.minimumf %169, %213 : vector<1x128xf32>
    %c5_i32 = arith.constant 5 : i32
    %cst_41 = arith.constant dense<0xFF800000> : vector<1xf32>
    %215 = vector.multi_reduction <maximumf>, %214, %cst_41 [1] : vector<1x128xf32> to vector<1xf32>
    %216 = vector.shape_cast %215 : vector<1xf32> to vector<1x1xf32>
    %217 = vector.broadcast %216 : vector<1x1xf32> to vector<1x128xf32>
    %218 = arith.cmpf oeq, %214, %217 : vector<1x128xf32>
    %c128_i32_42 = arith.constant 128 : i32
    %219 = vector.broadcast %c128_i32_42 : i32 to vector<1x128xi32>
    %220 = arith.select %218, %6, %219 : vector<1x128xi1>, vector<1x128xi32>
    %cst_43 = arith.constant dense<2147483647> : vector<1xi32>
    %221 = vector.multi_reduction <minsi>, %220, %cst_43 [1] : vector<1x128xi32> to vector<1xi32>
    %222 = vector.shape_cast %221 : vector<1xi32> to vector<1x1xi32>
    %223 = vector.broadcast %222 : vector<1x1xi32> to vector<1x128xi32>
    %224 = arith.cmpi eq, %6, %223 : vector<1x128xi32>
    %cst_44 = arith.constant 0.000000e+00 : f32
    %225 = vector.broadcast %cst_44 : f32 to vector<1x128xf32>
    %226 = arith.select %224, %1, %225 : vector<1x128xi1>, vector<1x128xf32>
    %cst_45 = arith.constant dense<0.000000e+00> : vector<1xf32>
    %227 = vector.multi_reduction <add>, %226, %cst_45 [1] : vector<1x128xf32> to vector<1xf32>
    %228 = vector.shape_cast %227 : vector<1xf32> to vector<1x1xf32>
    %cst_46 = arith.constant 0.000000e+00 : f32
    %229 = vector.broadcast %cst_46 : f32 to vector<1x128xf32>
    %230 = arith.select %224, %3, %229 : vector<1x128xi1>, vector<1x128xf32>
    %cst_47 = arith.constant dense<0.000000e+00> : vector<1xf32>
    %231 = vector.multi_reduction <add>, %230, %cst_47 [1] : vector<1x128xf32> to vector<1xf32>
    %232 = vector.shape_cast %231 : vector<1xf32> to vector<1x1xf32>
    %cst_48 = arith.constant 0.000000e+00 : f32
    %233 = vector.broadcast %cst_48 : f32 to vector<1x128xf32>
    %234 = arith.select %224, %5, %233 : vector<1x128xi1>, vector<1x128xf32>
    %cst_49 = arith.constant dense<0.000000e+00> : vector<1xf32>
    %235 = vector.multi_reduction <add>, %234, %cst_49 [1] : vector<1x128xf32> to vector<1xf32>
    %236 = vector.shape_cast %235 : vector<1xf32> to vector<1x1xf32>
    %237 = vector.broadcast %c5_i32 : i32 to vector<8x1xi32>
    %238 = arith.cmpi eq, %7, %237 : vector<8x1xi32>
    %239 = vector.shape_cast %228 : vector<1x1xf32> to vector<1x1xf32>
    %240 = vector.broadcast %239 : vector<1x1xf32> to vector<8x1xf32>
    %241 = arith.select %238, %240, %196 : vector<8x1xi1>, vector<8x1xf32>
    %242 = vector.shape_cast %232 : vector<1x1xf32> to vector<1x1xf32>
    %243 = vector.broadcast %242 : vector<1x1xf32> to vector<8x1xf32>
    %244 = arith.select %238, %243, %199 : vector<8x1xi1>, vector<8x1xf32>
    %245 = vector.shape_cast %236 : vector<1x1xf32> to vector<1x1xf32>
    %246 = vector.broadcast %245 : vector<1x1xf32> to vector<8x1xf32>
    %247 = arith.select %238, %246, %202 : vector<8x1xi1>, vector<8x1xf32>
    %248 = vector.broadcast %228 : vector<1x1xf32> to vector<1x128xf32>
    %249 = arith.subf %1, %248 : vector<1x128xf32>
    %250 = vector.broadcast %232 : vector<1x1xf32> to vector<1x128xf32>
    %251 = arith.subf %3, %250 : vector<1x128xf32>
    %252 = vector.broadcast %236 : vector<1x1xf32> to vector<1x128xf32>
    %253 = arith.subf %5, %252 : vector<1x128xf32>
    %254 = arith.mulf %249, %249 : vector<1x128xf32>
    %255 = arith.mulf %251, %251 : vector<1x128xf32>
    %256 = arith.addf %254, %255 : vector<1x128xf32>
    %257 = arith.mulf %253, %253 : vector<1x128xf32>
    %258 = arith.addf %256, %257 : vector<1x128xf32>
    %259 = arith.minimumf %214, %258 : vector<1x128xf32>
    %c6_i32 = arith.constant 6 : i32
    %cst_50 = arith.constant dense<0xFF800000> : vector<1xf32>
    %260 = vector.multi_reduction <maximumf>, %259, %cst_50 [1] : vector<1x128xf32> to vector<1xf32>
    %261 = vector.shape_cast %260 : vector<1xf32> to vector<1x1xf32>
    %262 = vector.broadcast %261 : vector<1x1xf32> to vector<1x128xf32>
    %263 = arith.cmpf oeq, %259, %262 : vector<1x128xf32>
    %c128_i32_51 = arith.constant 128 : i32
    %264 = vector.broadcast %c128_i32_51 : i32 to vector<1x128xi32>
    %265 = arith.select %263, %6, %264 : vector<1x128xi1>, vector<1x128xi32>
    %cst_52 = arith.constant dense<2147483647> : vector<1xi32>
    %266 = vector.multi_reduction <minsi>, %265, %cst_52 [1] : vector<1x128xi32> to vector<1xi32>
    %267 = vector.shape_cast %266 : vector<1xi32> to vector<1x1xi32>
    %268 = vector.broadcast %267 : vector<1x1xi32> to vector<1x128xi32>
    %269 = arith.cmpi eq, %6, %268 : vector<1x128xi32>
    %cst_53 = arith.constant 0.000000e+00 : f32
    %270 = vector.broadcast %cst_53 : f32 to vector<1x128xf32>
    %271 = arith.select %269, %1, %270 : vector<1x128xi1>, vector<1x128xf32>
    %cst_54 = arith.constant dense<0.000000e+00> : vector<1xf32>
    %272 = vector.multi_reduction <add>, %271, %cst_54 [1] : vector<1x128xf32> to vector<1xf32>
    %273 = vector.shape_cast %272 : vector<1xf32> to vector<1x1xf32>
    %cst_55 = arith.constant 0.000000e+00 : f32
    %274 = vector.broadcast %cst_55 : f32 to vector<1x128xf32>
    %275 = arith.select %269, %3, %274 : vector<1x128xi1>, vector<1x128xf32>
    %cst_56 = arith.constant dense<0.000000e+00> : vector<1xf32>
    %276 = vector.multi_reduction <add>, %275, %cst_56 [1] : vector<1x128xf32> to vector<1xf32>
    %277 = vector.shape_cast %276 : vector<1xf32> to vector<1x1xf32>
    %cst_57 = arith.constant 0.000000e+00 : f32
    %278 = vector.broadcast %cst_57 : f32 to vector<1x128xf32>
    %279 = arith.select %269, %5, %278 : vector<1x128xi1>, vector<1x128xf32>
    %cst_58 = arith.constant dense<0.000000e+00> : vector<1xf32>
    %280 = vector.multi_reduction <add>, %279, %cst_58 [1] : vector<1x128xf32> to vector<1xf32>
    %281 = vector.shape_cast %280 : vector<1xf32> to vector<1x1xf32>
    %282 = vector.broadcast %c6_i32 : i32 to vector<8x1xi32>
    %283 = arith.cmpi eq, %7, %282 : vector<8x1xi32>
    %284 = vector.shape_cast %273 : vector<1x1xf32> to vector<1x1xf32>
    %285 = vector.broadcast %284 : vector<1x1xf32> to vector<8x1xf32>
    %286 = arith.select %283, %285, %241 : vector<8x1xi1>, vector<8x1xf32>
    %287 = vector.shape_cast %277 : vector<1x1xf32> to vector<1x1xf32>
    %288 = vector.broadcast %287 : vector<1x1xf32> to vector<8x1xf32>
    %289 = arith.select %283, %288, %244 : vector<8x1xi1>, vector<8x1xf32>
    %290 = vector.shape_cast %281 : vector<1x1xf32> to vector<1x1xf32>
    %291 = vector.broadcast %290 : vector<1x1xf32> to vector<8x1xf32>
    %292 = arith.select %283, %291, %247 : vector<8x1xi1>, vector<8x1xf32>
    %293 = vector.broadcast %273 : vector<1x1xf32> to vector<1x128xf32>
    %294 = arith.subf %1, %293 : vector<1x128xf32>
    %295 = vector.broadcast %277 : vector<1x1xf32> to vector<1x128xf32>
    %296 = arith.subf %3, %295 : vector<1x128xf32>
    %297 = vector.broadcast %281 : vector<1x1xf32> to vector<1x128xf32>
    %298 = arith.subf %5, %297 : vector<1x128xf32>
    %299 = arith.mulf %294, %294 : vector<1x128xf32>
    %300 = arith.mulf %296, %296 : vector<1x128xf32>
    %301 = arith.addf %299, %300 : vector<1x128xf32>
    %302 = arith.mulf %298, %298 : vector<1x128xf32>
    %303 = arith.addf %301, %302 : vector<1x128xf32>
    %304 = arith.minimumf %259, %303 : vector<1x128xf32>
    %c7_i32 = arith.constant 7 : i32
    %cst_59 = arith.constant dense<0xFF800000> : vector<1xf32>
    %305 = vector.multi_reduction <maximumf>, %304, %cst_59 [1] : vector<1x128xf32> to vector<1xf32>
    %306 = vector.shape_cast %305 : vector<1xf32> to vector<1x1xf32>
    %307 = vector.broadcast %306 : vector<1x1xf32> to vector<1x128xf32>
    %308 = arith.cmpf oeq, %304, %307 : vector<1x128xf32>
    %c128_i32_60 = arith.constant 128 : i32
    %309 = vector.broadcast %c128_i32_60 : i32 to vector<1x128xi32>
    %310 = arith.select %308, %6, %309 : vector<1x128xi1>, vector<1x128xi32>
    %cst_61 = arith.constant dense<2147483647> : vector<1xi32>
    %311 = vector.multi_reduction <minsi>, %310, %cst_61 [1] : vector<1x128xi32> to vector<1xi32>
    %312 = vector.shape_cast %311 : vector<1xi32> to vector<1x1xi32>
    %313 = vector.broadcast %312 : vector<1x1xi32> to vector<1x128xi32>
    %314 = arith.cmpi eq, %6, %313 : vector<1x128xi32>
    %cst_62 = arith.constant 0.000000e+00 : f32
    %315 = vector.broadcast %cst_62 : f32 to vector<1x128xf32>
    %316 = arith.select %314, %1, %315 : vector<1x128xi1>, vector<1x128xf32>
    %cst_63 = arith.constant dense<0.000000e+00> : vector<1xf32>
    %317 = vector.multi_reduction <add>, %316, %cst_63 [1] : vector<1x128xf32> to vector<1xf32>
    %318 = vector.shape_cast %317 : vector<1xf32> to vector<1x1xf32>
    %cst_64 = arith.constant 0.000000e+00 : f32
    %319 = vector.broadcast %cst_64 : f32 to vector<1x128xf32>
    %320 = arith.select %314, %3, %319 : vector<1x128xi1>, vector<1x128xf32>
    %cst_65 = arith.constant dense<0.000000e+00> : vector<1xf32>
    %321 = vector.multi_reduction <add>, %320, %cst_65 [1] : vector<1x128xf32> to vector<1xf32>
    %322 = vector.shape_cast %321 : vector<1xf32> to vector<1x1xf32>
    %cst_66 = arith.constant 0.000000e+00 : f32
    %323 = vector.broadcast %cst_66 : f32 to vector<1x128xf32>
    %324 = arith.select %314, %5, %323 : vector<1x128xi1>, vector<1x128xf32>
    %cst_67 = arith.constant dense<0.000000e+00> : vector<1xf32>
    %325 = vector.multi_reduction <add>, %324, %cst_67 [1] : vector<1x128xf32> to vector<1xf32>
    %326 = vector.shape_cast %325 : vector<1xf32> to vector<1x1xf32>
    %327 = vector.broadcast %c7_i32 : i32 to vector<8x1xi32>
    %328 = arith.cmpi eq, %7, %327 : vector<8x1xi32>
    %329 = vector.shape_cast %318 : vector<1x1xf32> to vector<1x1xf32>
    %330 = vector.broadcast %329 : vector<1x1xf32> to vector<8x1xf32>
    %331 = arith.select %328, %330, %286 : vector<8x1xi1>, vector<8x1xf32>
    %332 = vector.shape_cast %322 : vector<1x1xf32> to vector<1x1xf32>
    %333 = vector.broadcast %332 : vector<1x1xf32> to vector<8x1xf32>
    %334 = arith.select %328, %333, %289 : vector<8x1xi1>, vector<8x1xf32>
    %335 = vector.shape_cast %326 : vector<1x1xf32> to vector<1x1xf32>
    %336 = vector.broadcast %335 : vector<1x1xf32> to vector<8x1xf32>
    %337 = arith.select %328, %336, %292 : vector<8x1xi1>, vector<8x1xf32>
    %338 = vector.broadcast %318 : vector<1x1xf32> to vector<1x128xf32>
    %339 = arith.subf %1, %338 : vector<1x128xf32>
    %340 = vector.broadcast %322 : vector<1x1xf32> to vector<1x128xf32>
    %341 = arith.subf %3, %340 : vector<1x128xf32>
    %342 = vector.broadcast %326 : vector<1x1xf32> to vector<1x128xf32>
    %343 = arith.subf %5, %342 : vector<1x128xf32>
    %344 = arith.mulf %339, %339 : vector<1x128xf32>
    %345 = arith.mulf %341, %341 : vector<1x128xf32>
    %346 = arith.addf %344, %345 : vector<1x128xf32>
    %347 = arith.mulf %343, %343 : vector<1x128xf32>
    %348 = arith.addf %346, %347 : vector<1x128xf32>
    %349 = arith.minimumf %304, %348 : vector<1x128xf32>
    %c7_i32_68 = arith.constant 7 : i32
    %c0_69 = arith.constant 0 : index
    %c0_70 = arith.constant 0 : index
    %c0_71 = arith.constant 0 : index
    %350 = vector.load %arg3[%c0_69, %c0_70, %c0_71] : memref<1x8x3xf32, #tpu.memory_space<vmem>>, vector<1x8x1xf32>
    %351 = vector.shape_cast %350 : vector<1x8x1xf32> to vector<8x1xf32>
    %352 = vector.shape_cast %331 : vector<8x1xf32> to vector<1x8x1xf32>
    tpu.vector_store %arg3[%c0_69, %c0_70, %c0_71], %352 {strides = array<i32>} : memref<1x8x3xf32, #tpu.memory_space<vmem>>, vector<1x8x1xf32>,
    %c0_72 = arith.constant 0 : index
    %c0_73 = arith.constant 0 : index
    %c1_74 = arith.constant 1 : index
    %353 = vector.load %arg3[%c0_72, %c0_73, %c1_74] : memref<1x8x3xf32, #tpu.memory_space<vmem>>, vector<1x8x1xf32>
    %354 = vector.shape_cast %353 : vector<1x8x1xf32> to vector<8x1xf32>
    %355 = vector.shape_cast %334 : vector<8x1xf32> to vector<1x8x1xf32>
    tpu.vector_store %arg3[%c0_72, %c0_73, %c1_74], %355 {strides = array<i32>} : memref<1x8x3xf32, #tpu.memory_space<vmem>>, vector<1x8x1xf32>,
    %c0_75 = arith.constant 0 : index
    %c0_76 = arith.constant 0 : index
    %c2_77 = arith.constant 2 : index
    %356 = vector.load %arg3[%c0_75, %c0_76, %c2_77] : memref<1x8x3xf32, #tpu.memory_space<vmem>>, vector<1x8x1xf32>
    %357 = vector.shape_cast %356 : vector<1x8x1xf32> to vector<8x1xf32>
    %358 = vector.shape_cast %337 : vector<8x1xf32> to vector<1x8x1xf32>
    tpu.vector_store %arg3[%c0_75, %c0_76, %c2_77], %358 {strides = array<i32>} : memref<1x8x3xf32, #tpu.memory_space<vmem>>, vector<1x8x1xf32>,
    %359 = vector.broadcast %331 : vector<8x1xf32> to vector<8x128xf32>
    %360 = vector.broadcast %1 : vector<1x128xf32> to vector<8x128xf32>
    %361 = arith.subf %359, %360 : vector<8x128xf32>
    %362 = vector.broadcast %334 : vector<8x1xf32> to vector<8x128xf32>
    %363 = vector.broadcast %3 : vector<1x128xf32> to vector<8x128xf32>
    %364 = arith.subf %362, %363 : vector<8x128xf32>
    %365 = vector.broadcast %337 : vector<8x1xf32> to vector<8x128xf32>
    %366 = vector.broadcast %5 : vector<1x128xf32> to vector<8x128xf32>
    %367 = arith.subf %365, %366 : vector<8x128xf32>
    %368 = arith.mulf %361, %361 : vector<8x128xf32>
    %369 = arith.mulf %364, %364 : vector<8x128xf32>
    %370 = arith.addf %368, %369 : vector<8x128xf32>
    %371 = arith.mulf %367, %367 : vector<8x128xf32>
    %372 = arith.addf %370, %371 : vector<8x128xf32>
    %cst_78 = arith.constant 0.000000e+00 : f32
    %373 = vector.broadcast %cst_78 : f32 to vector<8x16xf32>
    %c0_i32_79 = arith.constant 0 : i32
    %cst_80 = arith.constant dense<0x7F800000> : vector<8xf32>
    %374 = vector.multi_reduction <minimumf>, %372, %cst_80 [1] : vector<8x128xf32> to vector<8xf32>
    %375 = vector.shape_cast %374 : vector<8xf32> to vector<8x1xf32>
    %376 = vector.broadcast %375 : vector<8x1xf32> to vector<8x128xf32>
    %377 = arith.cmpf oeq, %372, %376 : vector<8x128xf32>
    %c128_i32_81 = arith.constant 128 : i32
    %378 = vector.shape_cast %6 : vector<1x128xi32> to vector<1x128xi32>
    %379 = vector.broadcast %378 : vector<1x128xi32> to vector<8x128xi32>
    %380 = vector.broadcast %c128_i32_81 : i32 to vector<8x128xi32>
    %381 = arith.select %377, %379, %380 : vector<8x128xi1>, vector<8x128xi32>
    %cst_82 = arith.constant dense<2147483647> : vector<8xi32>
    %382 = vector.multi_reduction <minsi>, %381, %cst_82 [1] : vector<8x128xi32> to vector<8xi32>
    %383 = vector.shape_cast %382 : vector<8xi32> to vector<8x1xi32>
    %384 = vector.broadcast %6 : vector<1x128xi32> to vector<8x128xi32>
    %385 = vector.broadcast %383 : vector<8x1xi32> to vector<8x128xi32>
    %386 = arith.cmpi eq, %384, %385 : vector<8x128xi32>
    %cst_83 = arith.constant 0.000000e+00 : f32
    %387 = vector.shape_cast %1 : vector<1x128xf32> to vector<1x128xf32>
    %388 = vector.broadcast %387 : vector<1x128xf32> to vector<8x128xf32>
    %389 = vector.broadcast %cst_83 : f32 to vector<8x128xf32>
    %390 = arith.select %386, %388, %389 : vector<8x128xi1>, vector<8x128xf32>
    %cst_84 = arith.constant dense<0.000000e+00> : vector<8xf32>
    %391 = vector.multi_reduction <add>, %390, %cst_84 [1] : vector<8x128xf32> to vector<8xf32>
    %392 = vector.shape_cast %391 : vector<8xf32> to vector<8x1xf32>
    %cst_85 = arith.constant 0.000000e+00 : f32
    %393 = vector.shape_cast %3 : vector<1x128xf32> to vector<1x128xf32>
    %394 = vector.broadcast %393 : vector<1x128xf32> to vector<8x128xf32>
    %395 = vector.broadcast %cst_85 : f32 to vector<8x128xf32>
    %396 = arith.select %386, %394, %395 : vector<8x128xi1>, vector<8x128xf32>
    %cst_86 = arith.constant dense<0.000000e+00> : vector<8xf32>
    %397 = vector.multi_reduction <add>, %396, %cst_86 [1] : vector<8x128xf32> to vector<8xf32>
    %398 = vector.shape_cast %397 : vector<8xf32> to vector<8x1xf32>
    %cst_87 = arith.constant 0.000000e+00 : f32
    %399 = vector.shape_cast %5 : vector<1x128xf32> to vector<1x128xf32>
    %400 = vector.broadcast %399 : vector<1x128xf32> to vector<8x128xf32>
    %401 = vector.broadcast %cst_87 : f32 to vector<8x128xf32>
    %402 = arith.select %386, %400, %401 : vector<8x128xi1>, vector<8x128xf32>
    %cst_88 = arith.constant dense<0.000000e+00> : vector<8xf32>
    %403 = vector.multi_reduction <add>, %402, %cst_88 [1] : vector<8x128xf32> to vector<8xf32>
    %404 = vector.shape_cast %403 : vector<8xf32> to vector<8x1xf32>
    %405 = vector.broadcast %c0_i32_79 : i32 to vector<1x16xi32>
    %406 = arith.cmpi eq, %8, %405 : vector<1x16xi32>
    %407 = vector.shape_cast %406 : vector<1x16xi1> to vector<1x16xi1>
    %408 = vector.broadcast %407 : vector<1x16xi1> to vector<8x16xi1>
    %409 = vector.shape_cast %392 : vector<8x1xf32> to vector<8x1xf32>
    %410 = vector.broadcast %409 : vector<8x1xf32> to vector<8x16xf32>
    %411 = arith.select %408, %410, %373 : vector<8x16xi1>, vector<8x16xf32>
    %412 = vector.shape_cast %406 : vector<1x16xi1> to vector<1x16xi1>
    %413 = vector.broadcast %412 : vector<1x16xi1> to vector<8x16xi1>
    %414 = vector.shape_cast %398 : vector<8x1xf32> to vector<8x1xf32>
    %415 = vector.broadcast %414 : vector<8x1xf32> to vector<8x16xf32>
    %416 = arith.select %413, %415, %373 : vector<8x16xi1>, vector<8x16xf32>
    %417 = vector.shape_cast %406 : vector<1x16xi1> to vector<1x16xi1>
    %418 = vector.broadcast %417 : vector<1x16xi1> to vector<8x16xi1>
    %419 = vector.shape_cast %404 : vector<8x1xf32> to vector<8x1xf32>
    %420 = vector.broadcast %419 : vector<8x1xf32> to vector<8x16xf32>
    %421 = arith.select %418, %420, %373 : vector<8x16xi1>, vector<8x16xf32>
    %cst_89 = arith.constant 0x7F800000 : f32
    %422 = vector.broadcast %cst_89 : f32 to vector<8x128xf32>
    %423 = arith.select %386, %422, %372 : vector<8x128xi1>, vector<8x128xf32>
    %c1_i32_90 = arith.constant 1 : i32
    %cst_91 = arith.constant dense<0x7F800000> : vector<8xf32>
    %424 = vector.multi_reduction <minimumf>, %423, %cst_91 [1] : vector<8x128xf32> to vector<8xf32>
    %425 = vector.shape_cast %424 : vector<8xf32> to vector<8x1xf32>
    %426 = vector.broadcast %425 : vector<8x1xf32> to vector<8x128xf32>
    %427 = arith.cmpf oeq, %423, %426 : vector<8x128xf32>
    %c128_i32_92 = arith.constant 128 : i32
    %428 = vector.shape_cast %6 : vector<1x128xi32> to vector<1x128xi32>
    %429 = vector.broadcast %428 : vector<1x128xi32> to vector<8x128xi32>
    %430 = vector.broadcast %c128_i32_92 : i32 to vector<8x128xi32>
    %431 = arith.select %427, %429, %430 : vector<8x128xi1>, vector<8x128xi32>
    %cst_93 = arith.constant dense<2147483647> : vector<8xi32>
    %432 = vector.multi_reduction <minsi>, %431, %cst_93 [1] : vector<8x128xi32> to vector<8xi32>
    %433 = vector.shape_cast %432 : vector<8xi32> to vector<8x1xi32>
    %434 = vector.broadcast %6 : vector<1x128xi32> to vector<8x128xi32>
    %435 = vector.broadcast %433 : vector<8x1xi32> to vector<8x128xi32>
    %436 = arith.cmpi eq, %434, %435 : vector<8x128xi32>
    %cst_94 = arith.constant 0.000000e+00 : f32
    %437 = vector.shape_cast %1 : vector<1x128xf32> to vector<1x128xf32>
    %438 = vector.broadcast %437 : vector<1x128xf32> to vector<8x128xf32>
    %439 = vector.broadcast %cst_94 : f32 to vector<8x128xf32>
    %440 = arith.select %436, %438, %439 : vector<8x128xi1>, vector<8x128xf32>
    %cst_95 = arith.constant dense<0.000000e+00> : vector<8xf32>
    %441 = vector.multi_reduction <add>, %440, %cst_95 [1] : vector<8x128xf32> to vector<8xf32>
    %442 = vector.shape_cast %441 : vector<8xf32> to vector<8x1xf32>
    %cst_96 = arith.constant 0.000000e+00 : f32
    %443 = vector.shape_cast %3 : vector<1x128xf32> to vector<1x128xf32>
    %444 = vector.broadcast %443 : vector<1x128xf32> to vector<8x128xf32>
    %445 = vector.broadcast %cst_96 : f32 to vector<8x128xf32>
    %446 = arith.select %436, %444, %445 : vector<8x128xi1>, vector<8x128xf32>
    %cst_97 = arith.constant dense<0.000000e+00> : vector<8xf32>
    %447 = vector.multi_reduction <add>, %446, %cst_97 [1] : vector<8x128xf32> to vector<8xf32>
    %448 = vector.shape_cast %447 : vector<8xf32> to vector<8x1xf32>
    %cst_98 = arith.constant 0.000000e+00 : f32
    %449 = vector.shape_cast %5 : vector<1x128xf32> to vector<1x128xf32>
    %450 = vector.broadcast %449 : vector<1x128xf32> to vector<8x128xf32>
    %451 = vector.broadcast %cst_98 : f32 to vector<8x128xf32>
    %452 = arith.select %436, %450, %451 : vector<8x128xi1>, vector<8x128xf32>
    %cst_99 = arith.constant dense<0.000000e+00> : vector<8xf32>
    %453 = vector.multi_reduction <add>, %452, %cst_99 [1] : vector<8x128xf32> to vector<8xf32>
    %454 = vector.shape_cast %453 : vector<8xf32> to vector<8x1xf32>
    %455 = vector.broadcast %c1_i32_90 : i32 to vector<1x16xi32>
    %456 = arith.cmpi eq, %8, %455 : vector<1x16xi32>
    %457 = vector.shape_cast %456 : vector<1x16xi1> to vector<1x16xi1>
    %458 = vector.broadcast %457 : vector<1x16xi1> to vector<8x16xi1>
    %459 = vector.shape_cast %442 : vector<8x1xf32> to vector<8x1xf32>
    %460 = vector.broadcast %459 : vector<8x1xf32> to vector<8x16xf32>
    %461 = arith.select %458, %460, %411 : vector<8x16xi1>, vector<8x16xf32>
    %462 = vector.shape_cast %456 : vector<1x16xi1> to vector<1x16xi1>
    %463 = vector.broadcast %462 : vector<1x16xi1> to vector<8x16xi1>
    %464 = vector.shape_cast %448 : vector<8x1xf32> to vector<8x1xf32>
    %465 = vector.broadcast %464 : vector<8x1xf32> to vector<8x16xf32>
    %466 = arith.select %463, %465, %416 : vector<8x16xi1>, vector<8x16xf32>
    %467 = vector.shape_cast %456 : vector<1x16xi1> to vector<1x16xi1>
    %468 = vector.broadcast %467 : vector<1x16xi1> to vector<8x16xi1>
    %469 = vector.shape_cast %454 : vector<8x1xf32> to vector<8x1xf32>
    %470 = vector.broadcast %469 : vector<8x1xf32> to vector<8x16xf32>
    %471 = arith.select %468, %470, %421 : vector<8x16xi1>, vector<8x16xf32>
    %cst_100 = arith.constant 0x7F800000 : f32
    %472 = vector.broadcast %cst_100 : f32 to vector<8x128xf32>
    %473 = arith.select %436, %472, %423 : vector<8x128xi1>, vector<8x128xf32>
    %c2_i32_101 = arith.constant 2 : i32
    %cst_102 = arith.constant dense<0x7F800000> : vector<8xf32>
    %474 = vector.multi_reduction <minimumf>, %473, %cst_102 [1] : vector<8x128xf32> to vector<8xf32>
    %475 = vector.shape_cast %474 : vector<8xf32> to vector<8x1xf32>
    %476 = vector.broadcast %475 : vector<8x1xf32> to vector<8x128xf32>
    %477 = arith.cmpf oeq, %473, %476 : vector<8x128xf32>
    %c128_i32_103 = arith.constant 128 : i32
    %478 = vector.shape_cast %6 : vector<1x128xi32> to vector<1x128xi32>
    %479 = vector.broadcast %478 : vector<1x128xi32> to vector<8x128xi32>
    %480 = vector.broadcast %c128_i32_103 : i32 to vector<8x128xi32>
    %481 = arith.select %477, %479, %480 : vector<8x128xi1>, vector<8x128xi32>
    %cst_104 = arith.constant dense<2147483647> : vector<8xi32>
    %482 = vector.multi_reduction <minsi>, %481, %cst_104 [1] : vector<8x128xi32> to vector<8xi32>
    %483 = vector.shape_cast %482 : vector<8xi32> to vector<8x1xi32>
    %484 = vector.broadcast %6 : vector<1x128xi32> to vector<8x128xi32>
    %485 = vector.broadcast %483 : vector<8x1xi32> to vector<8x128xi32>
    %486 = arith.cmpi eq, %484, %485 : vector<8x128xi32>
    %cst_105 = arith.constant 0.000000e+00 : f32
    %487 = vector.shape_cast %1 : vector<1x128xf32> to vector<1x128xf32>
    %488 = vector.broadcast %487 : vector<1x128xf32> to vector<8x128xf32>
    %489 = vector.broadcast %cst_105 : f32 to vector<8x128xf32>
    %490 = arith.select %486, %488, %489 : vector<8x128xi1>, vector<8x128xf32>
    %cst_106 = arith.constant dense<0.000000e+00> : vector<8xf32>
    %491 = vector.multi_reduction <add>, %490, %cst_106 [1] : vector<8x128xf32> to vector<8xf32>
    %492 = vector.shape_cast %491 : vector<8xf32> to vector<8x1xf32>
    %cst_107 = arith.constant 0.000000e+00 : f32
    %493 = vector.shape_cast %3 : vector<1x128xf32> to vector<1x128xf32>
    %494 = vector.broadcast %493 : vector<1x128xf32> to vector<8x128xf32>
    %495 = vector.broadcast %cst_107 : f32 to vector<8x128xf32>
    %496 = arith.select %486, %494, %495 : vector<8x128xi1>, vector<8x128xf32>
    %cst_108 = arith.constant dense<0.000000e+00> : vector<8xf32>
    %497 = vector.multi_reduction <add>, %496, %cst_108 [1] : vector<8x128xf32> to vector<8xf32>
    %498 = vector.shape_cast %497 : vector<8xf32> to vector<8x1xf32>
    %cst_109 = arith.constant 0.000000e+00 : f32
    %499 = vector.shape_cast %5 : vector<1x128xf32> to vector<1x128xf32>
    %500 = vector.broadcast %499 : vector<1x128xf32> to vector<8x128xf32>
    %501 = vector.broadcast %cst_109 : f32 to vector<8x128xf32>
    %502 = arith.select %486, %500, %501 : vector<8x128xi1>, vector<8x128xf32>
    %cst_110 = arith.constant dense<0.000000e+00> : vector<8xf32>
    %503 = vector.multi_reduction <add>, %502, %cst_110 [1] : vector<8x128xf32> to vector<8xf32>
    %504 = vector.shape_cast %503 : vector<8xf32> to vector<8x1xf32>
    %505 = vector.broadcast %c2_i32_101 : i32 to vector<1x16xi32>
    %506 = arith.cmpi eq, %8, %505 : vector<1x16xi32>
    %507 = vector.shape_cast %506 : vector<1x16xi1> to vector<1x16xi1>
    %508 = vector.broadcast %507 : vector<1x16xi1> to vector<8x16xi1>
    %509 = vector.shape_cast %492 : vector<8x1xf32> to vector<8x1xf32>
    %510 = vector.broadcast %509 : vector<8x1xf32> to vector<8x16xf32>
    %511 = arith.select %508, %510, %461 : vector<8x16xi1>, vector<8x16xf32>
    %512 = vector.shape_cast %506 : vector<1x16xi1> to vector<1x16xi1>
    %513 = vector.broadcast %512 : vector<1x16xi1> to vector<8x16xi1>
    %514 = vector.shape_cast %498 : vector<8x1xf32> to vector<8x1xf32>
    %515 = vector.broadcast %514 : vector<8x1xf32> to vector<8x16xf32>
    %516 = arith.select %513, %515, %466 : vector<8x16xi1>, vector<8x16xf32>
    %517 = vector.shape_cast %506 : vector<1x16xi1> to vector<1x16xi1>
    %518 = vector.broadcast %517 : vector<1x16xi1> to vector<8x16xi1>
    %519 = vector.shape_cast %504 : vector<8x1xf32> to vector<8x1xf32>
    %520 = vector.broadcast %519 : vector<8x1xf32> to vector<8x16xf32>
    %521 = arith.select %518, %520, %471 : vector<8x16xi1>, vector<8x16xf32>
    %cst_111 = arith.constant 0x7F800000 : f32
    %522 = vector.broadcast %cst_111 : f32 to vector<8x128xf32>
    %523 = arith.select %486, %522, %473 : vector<8x128xi1>, vector<8x128xf32>
    %c3_i32_112 = arith.constant 3 : i32
    %cst_113 = arith.constant dense<0x7F800000> : vector<8xf32>
    %524 = vector.multi_reduction <minimumf>, %523, %cst_113 [1] : vector<8x128xf32> to vector<8xf32>
    %525 = vector.shape_cast %524 : vector<8xf32> to vector<8x1xf32>
    %526 = vector.broadcast %525 : vector<8x1xf32> to vector<8x128xf32>
    %527 = arith.cmpf oeq, %523, %526 : vector<8x128xf32>
    %c128_i32_114 = arith.constant 128 : i32
    %528 = vector.shape_cast %6 : vector<1x128xi32> to vector<1x128xi32>
    %529 = vector.broadcast %528 : vector<1x128xi32> to vector<8x128xi32>
    %530 = vector.broadcast %c128_i32_114 : i32 to vector<8x128xi32>
    %531 = arith.select %527, %529, %530 : vector<8x128xi1>, vector<8x128xi32>
    %cst_115 = arith.constant dense<2147483647> : vector<8xi32>
    %532 = vector.multi_reduction <minsi>, %531, %cst_115 [1] : vector<8x128xi32> to vector<8xi32>
    %533 = vector.shape_cast %532 : vector<8xi32> to vector<8x1xi32>
    %534 = vector.broadcast %6 : vector<1x128xi32> to vector<8x128xi32>
    %535 = vector.broadcast %533 : vector<8x1xi32> to vector<8x128xi32>
    %536 = arith.cmpi eq, %534, %535 : vector<8x128xi32>
    %cst_116 = arith.constant 0.000000e+00 : f32
    %537 = vector.shape_cast %1 : vector<1x128xf32> to vector<1x128xf32>
    %538 = vector.broadcast %537 : vector<1x128xf32> to vector<8x128xf32>
    %539 = vector.broadcast %cst_116 : f32 to vector<8x128xf32>
    %540 = arith.select %536, %538, %539 : vector<8x128xi1>, vector<8x128xf32>
    %cst_117 = arith.constant dense<0.000000e+00> : vector<8xf32>
    %541 = vector.multi_reduction <add>, %540, %cst_117 [1] : vector<8x128xf32> to vector<8xf32>
    %542 = vector.shape_cast %541 : vector<8xf32> to vector<8x1xf32>
    %cst_118 = arith.constant 0.000000e+00 : f32
    %543 = vector.shape_cast %3 : vector<1x128xf32> to vector<1x128xf32>
    %544 = vector.broadcast %543 : vector<1x128xf32> to vector<8x128xf32>
    %545 = vector.broadcast %cst_118 : f32 to vector<8x128xf32>
    %546 = arith.select %536, %544, %545 : vector<8x128xi1>, vector<8x128xf32>
    %cst_119 = arith.constant dense<0.000000e+00> : vector<8xf32>
    %547 = vector.multi_reduction <add>, %546, %cst_119 [1] : vector<8x128xf32> to vector<8xf32>
    %548 = vector.shape_cast %547 : vector<8xf32> to vector<8x1xf32>
    %cst_120 = arith.constant 0.000000e+00 : f32
    %549 = vector.shape_cast %5 : vector<1x128xf32> to vector<1x128xf32>
    %550 = vector.broadcast %549 : vector<1x128xf32> to vector<8x128xf32>
    %551 = vector.broadcast %cst_120 : f32 to vector<8x128xf32>
    %552 = arith.select %536, %550, %551 : vector<8x128xi1>, vector<8x128xf32>
    %cst_121 = arith.constant dense<0.000000e+00> : vector<8xf32>
    %553 = vector.multi_reduction <add>, %552, %cst_121 [1] : vector<8x128xf32> to vector<8xf32>
    %554 = vector.shape_cast %553 : vector<8xf32> to vector<8x1xf32>
    %555 = vector.broadcast %c3_i32_112 : i32 to vector<1x16xi32>
    %556 = arith.cmpi eq, %8, %555 : vector<1x16xi32>
    %557 = vector.shape_cast %556 : vector<1x16xi1> to vector<1x16xi1>
    %558 = vector.broadcast %557 : vector<1x16xi1> to vector<8x16xi1>
    %559 = vector.shape_cast %542 : vector<8x1xf32> to vector<8x1xf32>
    %560 = vector.broadcast %559 : vector<8x1xf32> to vector<8x16xf32>
    %561 = arith.select %558, %560, %511 : vector<8x16xi1>, vector<8x16xf32>
    %562 = vector.shape_cast %556 : vector<1x16xi1> to vector<1x16xi1>
    %563 = vector.broadcast %562 : vector<1x16xi1> to vector<8x16xi1>
    %564 = vector.shape_cast %548 : vector<8x1xf32> to vector<8x1xf32>
    %565 = vector.broadcast %564 : vector<8x1xf32> to vector<8x16xf32>
    %566 = arith.select %563, %565, %516 : vector<8x16xi1>, vector<8x16xf32>
    %567 = vector.shape_cast %556 : vector<1x16xi1> to vector<1x16xi1>
    %568 = vector.broadcast %567 : vector<1x16xi1> to vector<8x16xi1>
    %569 = vector.shape_cast %554 : vector<8x1xf32> to vector<8x1xf32>
    %570 = vector.broadcast %569 : vector<8x1xf32> to vector<8x16xf32>
    %571 = arith.select %568, %570, %521 : vector<8x16xi1>, vector<8x16xf32>
    %cst_122 = arith.constant 0x7F800000 : f32
    %572 = vector.broadcast %cst_122 : f32 to vector<8x128xf32>
    %573 = arith.select %536, %572, %523 : vector<8x128xi1>, vector<8x128xf32>
    %c4_i32_123 = arith.constant 4 : i32
    %cst_124 = arith.constant dense<0x7F800000> : vector<8xf32>
    %574 = vector.multi_reduction <minimumf>, %573, %cst_124 [1] : vector<8x128xf32> to vector<8xf32>
    %575 = vector.shape_cast %574 : vector<8xf32> to vector<8x1xf32>
    %576 = vector.broadcast %575 : vector<8x1xf32> to vector<8x128xf32>
    %577 = arith.cmpf oeq, %573, %576 : vector<8x128xf32>
    %c128_i32_125 = arith.constant 128 : i32
    %578 = vector.shape_cast %6 : vector<1x128xi32> to vector<1x128xi32>
    %579 = vector.broadcast %578 : vector<1x128xi32> to vector<8x128xi32>
    %580 = vector.broadcast %c128_i32_125 : i32 to vector<8x128xi32>
    %581 = arith.select %577, %579, %580 : vector<8x128xi1>, vector<8x128xi32>
    %cst_126 = arith.constant dense<2147483647> : vector<8xi32>
    %582 = vector.multi_reduction <minsi>, %581, %cst_126 [1] : vector<8x128xi32> to vector<8xi32>
    %583 = vector.shape_cast %582 : vector<8xi32> to vector<8x1xi32>
    %584 = vector.broadcast %6 : vector<1x128xi32> to vector<8x128xi32>
    %585 = vector.broadcast %583 : vector<8x1xi32> to vector<8x128xi32>
    %586 = arith.cmpi eq, %584, %585 : vector<8x128xi32>
    %cst_127 = arith.constant 0.000000e+00 : f32
    %587 = vector.shape_cast %1 : vector<1x128xf32> to vector<1x128xf32>
    %588 = vector.broadcast %587 : vector<1x128xf32> to vector<8x128xf32>
    %589 = vector.broadcast %cst_127 : f32 to vector<8x128xf32>
    %590 = arith.select %586, %588, %589 : vector<8x128xi1>, vector<8x128xf32>
    %cst_128 = arith.constant dense<0.000000e+00> : vector<8xf32>
    %591 = vector.multi_reduction <add>, %590, %cst_128 [1] : vector<8x128xf32> to vector<8xf32>
    %592 = vector.shape_cast %591 : vector<8xf32> to vector<8x1xf32>
    %cst_129 = arith.constant 0.000000e+00 : f32
    %593 = vector.shape_cast %3 : vector<1x128xf32> to vector<1x128xf32>
    %594 = vector.broadcast %593 : vector<1x128xf32> to vector<8x128xf32>
    %595 = vector.broadcast %cst_129 : f32 to vector<8x128xf32>
    %596 = arith.select %586, %594, %595 : vector<8x128xi1>, vector<8x128xf32>
    %cst_130 = arith.constant dense<0.000000e+00> : vector<8xf32>
    %597 = vector.multi_reduction <add>, %596, %cst_130 [1] : vector<8x128xf32> to vector<8xf32>
    %598 = vector.shape_cast %597 : vector<8xf32> to vector<8x1xf32>
    %cst_131 = arith.constant 0.000000e+00 : f32
    %599 = vector.shape_cast %5 : vector<1x128xf32> to vector<1x128xf32>
    %600 = vector.broadcast %599 : vector<1x128xf32> to vector<8x128xf32>
    %601 = vector.broadcast %cst_131 : f32 to vector<8x128xf32>
    %602 = arith.select %586, %600, %601 : vector<8x128xi1>, vector<8x128xf32>
    %cst_132 = arith.constant dense<0.000000e+00> : vector<8xf32>
    %603 = vector.multi_reduction <add>, %602, %cst_132 [1] : vector<8x128xf32> to vector<8xf32>
    %604 = vector.shape_cast %603 : vector<8xf32> to vector<8x1xf32>
    %605 = vector.broadcast %c4_i32_123 : i32 to vector<1x16xi32>
    %606 = arith.cmpi eq, %8, %605 : vector<1x16xi32>
    %607 = vector.shape_cast %606 : vector<1x16xi1> to vector<1x16xi1>
    %608 = vector.broadcast %607 : vector<1x16xi1> to vector<8x16xi1>
    %609 = vector.shape_cast %592 : vector<8x1xf32> to vector<8x1xf32>
    %610 = vector.broadcast %609 : vector<8x1xf32> to vector<8x16xf32>
    %611 = arith.select %608, %610, %561 : vector<8x16xi1>, vector<8x16xf32>
    %612 = vector.shape_cast %606 : vector<1x16xi1> to vector<1x16xi1>
    %613 = vector.broadcast %612 : vector<1x16xi1> to vector<8x16xi1>
    %614 = vector.shape_cast %598 : vector<8x1xf32> to vector<8x1xf32>
    %615 = vector.broadcast %614 : vector<8x1xf32> to vector<8x16xf32>
    %616 = arith.select %613, %615, %566 : vector<8x16xi1>, vector<8x16xf32>
    %617 = vector.shape_cast %606 : vector<1x16xi1> to vector<1x16xi1>
    %618 = vector.broadcast %617 : vector<1x16xi1> to vector<8x16xi1>
    %619 = vector.shape_cast %604 : vector<8x1xf32> to vector<8x1xf32>
    %620 = vector.broadcast %619 : vector<8x1xf32> to vector<8x16xf32>
    %621 = arith.select %618, %620, %571 : vector<8x16xi1>, vector<8x16xf32>
    %cst_133 = arith.constant 0x7F800000 : f32
    %622 = vector.broadcast %cst_133 : f32 to vector<8x128xf32>
    %623 = arith.select %586, %622, %573 : vector<8x128xi1>, vector<8x128xf32>
    %c5_i32_134 = arith.constant 5 : i32
    %cst_135 = arith.constant dense<0x7F800000> : vector<8xf32>
    %624 = vector.multi_reduction <minimumf>, %623, %cst_135 [1] : vector<8x128xf32> to vector<8xf32>
    %625 = vector.shape_cast %624 : vector<8xf32> to vector<8x1xf32>
    %626 = vector.broadcast %625 : vector<8x1xf32> to vector<8x128xf32>
    %627 = arith.cmpf oeq, %623, %626 : vector<8x128xf32>
    %c128_i32_136 = arith.constant 128 : i32
    %628 = vector.shape_cast %6 : vector<1x128xi32> to vector<1x128xi32>
    %629 = vector.broadcast %628 : vector<1x128xi32> to vector<8x128xi32>
    %630 = vector.broadcast %c128_i32_136 : i32 to vector<8x128xi32>
    %631 = arith.select %627, %629, %630 : vector<8x128xi1>, vector<8x128xi32>
    %cst_137 = arith.constant dense<2147483647> : vector<8xi32>
    %632 = vector.multi_reduction <minsi>, %631, %cst_137 [1] : vector<8x128xi32> to vector<8xi32>
    %633 = vector.shape_cast %632 : vector<8xi32> to vector<8x1xi32>
    %634 = vector.broadcast %6 : vector<1x128xi32> to vector<8x128xi32>
    %635 = vector.broadcast %633 : vector<8x1xi32> to vector<8x128xi32>
    %636 = arith.cmpi eq, %634, %635 : vector<8x128xi32>
    %cst_138 = arith.constant 0.000000e+00 : f32
    %637 = vector.shape_cast %1 : vector<1x128xf32> to vector<1x128xf32>
    %638 = vector.broadcast %637 : vector<1x128xf32> to vector<8x128xf32>
    %639 = vector.broadcast %cst_138 : f32 to vector<8x128xf32>
    %640 = arith.select %636, %638, %639 : vector<8x128xi1>, vector<8x128xf32>
    %cst_139 = arith.constant dense<0.000000e+00> : vector<8xf32>
    %641 = vector.multi_reduction <add>, %640, %cst_139 [1] : vector<8x128xf32> to vector<8xf32>
    %642 = vector.shape_cast %641 : vector<8xf32> to vector<8x1xf32>
    %cst_140 = arith.constant 0.000000e+00 : f32
    %643 = vector.shape_cast %3 : vector<1x128xf32> to vector<1x128xf32>
    %644 = vector.broadcast %643 : vector<1x128xf32> to vector<8x128xf32>
    %645 = vector.broadcast %cst_140 : f32 to vector<8x128xf32>
    %646 = arith.select %636, %644, %645 : vector<8x128xi1>, vector<8x128xf32>
    %cst_141 = arith.constant dense<0.000000e+00> : vector<8xf32>
    %647 = vector.multi_reduction <add>, %646, %cst_141 [1] : vector<8x128xf32> to vector<8xf32>
    %648 = vector.shape_cast %647 : vector<8xf32> to vector<8x1xf32>
    %cst_142 = arith.constant 0.000000e+00 : f32
    %649 = vector.shape_cast %5 : vector<1x128xf32> to vector<1x128xf32>
    %650 = vector.broadcast %649 : vector<1x128xf32> to vector<8x128xf32>
    %651 = vector.broadcast %cst_142 : f32 to vector<8x128xf32>
    %652 = arith.select %636, %650, %651 : vector<8x128xi1>, vector<8x128xf32>
    %cst_143 = arith.constant dense<0.000000e+00> : vector<8xf32>
    %653 = vector.multi_reduction <add>, %652, %cst_143 [1] : vector<8x128xf32> to vector<8xf32>
    %654 = vector.shape_cast %653 : vector<8xf32> to vector<8x1xf32>
    %655 = vector.broadcast %c5_i32_134 : i32 to vector<1x16xi32>
    %656 = arith.cmpi eq, %8, %655 : vector<1x16xi32>
    %657 = vector.shape_cast %656 : vector<1x16xi1> to vector<1x16xi1>
    %658 = vector.broadcast %657 : vector<1x16xi1> to vector<8x16xi1>
    %659 = vector.shape_cast %642 : vector<8x1xf32> to vector<8x1xf32>
    %660 = vector.broadcast %659 : vector<8x1xf32> to vector<8x16xf32>
    %661 = arith.select %658, %660, %611 : vector<8x16xi1>, vector<8x16xf32>
    %662 = vector.shape_cast %656 : vector<1x16xi1> to vector<1x16xi1>
    %663 = vector.broadcast %662 : vector<1x16xi1> to vector<8x16xi1>
    %664 = vector.shape_cast %648 : vector<8x1xf32> to vector<8x1xf32>
    %665 = vector.broadcast %664 : vector<8x1xf32> to vector<8x16xf32>
    %666 = arith.select %663, %665, %616 : vector<8x16xi1>, vector<8x16xf32>
    %667 = vector.shape_cast %656 : vector<1x16xi1> to vector<1x16xi1>
    %668 = vector.broadcast %667 : vector<1x16xi1> to vector<8x16xi1>
    %669 = vector.shape_cast %654 : vector<8x1xf32> to vector<8x1xf32>
    %670 = vector.broadcast %669 : vector<8x1xf32> to vector<8x16xf32>
    %671 = arith.select %668, %670, %621 : vector<8x16xi1>, vector<8x16xf32>
    %cst_144 = arith.constant 0x7F800000 : f32
    %672 = vector.broadcast %cst_144 : f32 to vector<8x128xf32>
    %673 = arith.select %636, %672, %623 : vector<8x128xi1>, vector<8x128xf32>
    %c6_i32_145 = arith.constant 6 : i32
    %cst_146 = arith.constant dense<0x7F800000> : vector<8xf32>
    %674 = vector.multi_reduction <minimumf>, %673, %cst_146 [1] : vector<8x128xf32> to vector<8xf32>
    %675 = vector.shape_cast %674 : vector<8xf32> to vector<8x1xf32>
    %676 = vector.broadcast %675 : vector<8x1xf32> to vector<8x128xf32>
    %677 = arith.cmpf oeq, %673, %676 : vector<8x128xf32>
    %c128_i32_147 = arith.constant 128 : i32
    %678 = vector.shape_cast %6 : vector<1x128xi32> to vector<1x128xi32>
    %679 = vector.broadcast %678 : vector<1x128xi32> to vector<8x128xi32>
    %680 = vector.broadcast %c128_i32_147 : i32 to vector<8x128xi32>
    %681 = arith.select %677, %679, %680 : vector<8x128xi1>, vector<8x128xi32>
    %cst_148 = arith.constant dense<2147483647> : vector<8xi32>
    %682 = vector.multi_reduction <minsi>, %681, %cst_148 [1] : vector<8x128xi32> to vector<8xi32>
    %683 = vector.shape_cast %682 : vector<8xi32> to vector<8x1xi32>
    %684 = vector.broadcast %6 : vector<1x128xi32> to vector<8x128xi32>
    %685 = vector.broadcast %683 : vector<8x1xi32> to vector<8x128xi32>
    %686 = arith.cmpi eq, %684, %685 : vector<8x128xi32>
    %cst_149 = arith.constant 0.000000e+00 : f32
    %687 = vector.shape_cast %1 : vector<1x128xf32> to vector<1x128xf32>
    %688 = vector.broadcast %687 : vector<1x128xf32> to vector<8x128xf32>
    %689 = vector.broadcast %cst_149 : f32 to vector<8x128xf32>
    %690 = arith.select %686, %688, %689 : vector<8x128xi1>, vector<8x128xf32>
    %cst_150 = arith.constant dense<0.000000e+00> : vector<8xf32>
    %691 = vector.multi_reduction <add>, %690, %cst_150 [1] : vector<8x128xf32> to vector<8xf32>
    %692 = vector.shape_cast %691 : vector<8xf32> to vector<8x1xf32>
    %cst_151 = arith.constant 0.000000e+00 : f32
    %693 = vector.shape_cast %3 : vector<1x128xf32> to vector<1x128xf32>
    %694 = vector.broadcast %693 : vector<1x128xf32> to vector<8x128xf32>
    %695 = vector.broadcast %cst_151 : f32 to vector<8x128xf32>
    %696 = arith.select %686, %694, %695 : vector<8x128xi1>, vector<8x128xf32>
    %cst_152 = arith.constant dense<0.000000e+00> : vector<8xf32>
    %697 = vector.multi_reduction <add>, %696, %cst_152 [1] : vector<8x128xf32> to vector<8xf32>
    %698 = vector.shape_cast %697 : vector<8xf32> to vector<8x1xf32>
    %cst_153 = arith.constant 0.000000e+00 : f32
    %699 = vector.shape_cast %5 : vector<1x128xf32> to vector<1x128xf32>
    %700 = vector.broadcast %699 : vector<1x128xf32> to vector<8x128xf32>
    %701 = vector.broadcast %cst_153 : f32 to vector<8x128xf32>
    %702 = arith.select %686, %700, %701 : vector<8x128xi1>, vector<8x128xf32>
    %cst_154 = arith.constant dense<0.000000e+00> : vector<8xf32>
    %703 = vector.multi_reduction <add>, %702, %cst_154 [1] : vector<8x128xf32> to vector<8xf32>
    %704 = vector.shape_cast %703 : vector<8xf32> to vector<8x1xf32>
    %705 = vector.broadcast %c6_i32_145 : i32 to vector<1x16xi32>
    %706 = arith.cmpi eq, %8, %705 : vector<1x16xi32>
    %707 = vector.shape_cast %706 : vector<1x16xi1> to vector<1x16xi1>
    %708 = vector.broadcast %707 : vector<1x16xi1> to vector<8x16xi1>
    %709 = vector.shape_cast %692 : vector<8x1xf32> to vector<8x1xf32>
    %710 = vector.broadcast %709 : vector<8x1xf32> to vector<8x16xf32>
    %711 = arith.select %708, %710, %661 : vector<8x16xi1>, vector<8x16xf32>
    %712 = vector.shape_cast %706 : vector<1x16xi1> to vector<1x16xi1>
    %713 = vector.broadcast %712 : vector<1x16xi1> to vector<8x16xi1>
    %714 = vector.shape_cast %698 : vector<8x1xf32> to vector<8x1xf32>
    %715 = vector.broadcast %714 : vector<8x1xf32> to vector<8x16xf32>
    %716 = arith.select %713, %715, %666 : vector<8x16xi1>, vector<8x16xf32>
    %717 = vector.shape_cast %706 : vector<1x16xi1> to vector<1x16xi1>
    %718 = vector.broadcast %717 : vector<1x16xi1> to vector<8x16xi1>
    %719 = vector.shape_cast %704 : vector<8x1xf32> to vector<8x1xf32>
    %720 = vector.broadcast %719 : vector<8x1xf32> to vector<8x16xf32>
    %721 = arith.select %718, %720, %671 : vector<8x16xi1>, vector<8x16xf32>
    %cst_155 = arith.constant 0x7F800000 : f32
    %722 = vector.broadcast %cst_155 : f32 to vector<8x128xf32>
    %723 = arith.select %686, %722, %673 : vector<8x128xi1>, vector<8x128xf32>
    %c7_i32_156 = arith.constant 7 : i32
    %cst_157 = arith.constant dense<0x7F800000> : vector<8xf32>
    %724 = vector.multi_reduction <minimumf>, %723, %cst_157 [1] : vector<8x128xf32> to vector<8xf32>
    %725 = vector.shape_cast %724 : vector<8xf32> to vector<8x1xf32>
    %726 = vector.broadcast %725 : vector<8x1xf32> to vector<8x128xf32>
    %727 = arith.cmpf oeq, %723, %726 : vector<8x128xf32>
    %c128_i32_158 = arith.constant 128 : i32
    %728 = vector.shape_cast %6 : vector<1x128xi32> to vector<1x128xi32>
    %729 = vector.broadcast %728 : vector<1x128xi32> to vector<8x128xi32>
    %730 = vector.broadcast %c128_i32_158 : i32 to vector<8x128xi32>
    %731 = arith.select %727, %729, %730 : vector<8x128xi1>, vector<8x128xi32>
    %cst_159 = arith.constant dense<2147483647> : vector<8xi32>
    %732 = vector.multi_reduction <minsi>, %731, %cst_159 [1] : vector<8x128xi32> to vector<8xi32>
    %733 = vector.shape_cast %732 : vector<8xi32> to vector<8x1xi32>
    %734 = vector.broadcast %6 : vector<1x128xi32> to vector<8x128xi32>
    %735 = vector.broadcast %733 : vector<8x1xi32> to vector<8x128xi32>
    %736 = arith.cmpi eq, %734, %735 : vector<8x128xi32>
    %cst_160 = arith.constant 0.000000e+00 : f32
    %737 = vector.shape_cast %1 : vector<1x128xf32> to vector<1x128xf32>
    %738 = vector.broadcast %737 : vector<1x128xf32> to vector<8x128xf32>
    %739 = vector.broadcast %cst_160 : f32 to vector<8x128xf32>
    %740 = arith.select %736, %738, %739 : vector<8x128xi1>, vector<8x128xf32>
    %cst_161 = arith.constant dense<0.000000e+00> : vector<8xf32>
    %741 = vector.multi_reduction <add>, %740, %cst_161 [1] : vector<8x128xf32> to vector<8xf32>
    %742 = vector.shape_cast %741 : vector<8xf32> to vector<8x1xf32>
    %cst_162 = arith.constant 0.000000e+00 : f32
    %743 = vector.shape_cast %3 : vector<1x128xf32> to vector<1x128xf32>
    %744 = vector.broadcast %743 : vector<1x128xf32> to vector<8x128xf32>
    %745 = vector.broadcast %cst_162 : f32 to vector<8x128xf32>
    %746 = arith.select %736, %744, %745 : vector<8x128xi1>, vector<8x128xf32>
    %cst_163 = arith.constant dense<0.000000e+00> : vector<8xf32>
    %747 = vector.multi_reduction <add>, %746, %cst_163 [1] : vector<8x128xf32> to vector<8xf32>
    %748 = vector.shape_cast %747 : vector<8xf32> to vector<8x1xf32>
    %cst_164 = arith.constant 0.000000e+00 : f32
    %749 = vector.shape_cast %5 : vector<1x128xf32> to vector<1x128xf32>
    %750 = vector.broadcast %749 : vector<1x128xf32> to vector<8x128xf32>
    %751 = vector.broadcast %cst_164 : f32 to vector<8x128xf32>
    %752 = arith.select %736, %750, %751 : vector<8x128xi1>, vector<8x128xf32>
    %cst_165 = arith.constant dense<0.000000e+00> : vector<8xf32>
    %753 = vector.multi_reduction <add>, %752, %cst_165 [1] : vector<8x128xf32> to vector<8xf32>
    %754 = vector.shape_cast %753 : vector<8xf32> to vector<8x1xf32>
    %755 = vector.broadcast %c7_i32_156 : i32 to vector<1x16xi32>
    %756 = arith.cmpi eq, %8, %755 : vector<1x16xi32>
    %757 = vector.shape_cast %756 : vector<1x16xi1> to vector<1x16xi1>
    %758 = vector.broadcast %757 : vector<1x16xi1> to vector<8x16xi1>
    %759 = vector.shape_cast %742 : vector<8x1xf32> to vector<8x1xf32>
    %760 = vector.broadcast %759 : vector<8x1xf32> to vector<8x16xf32>
    %761 = arith.select %758, %760, %711 : vector<8x16xi1>, vector<8x16xf32>
    %762 = vector.shape_cast %756 : vector<1x16xi1> to vector<1x16xi1>
    %763 = vector.broadcast %762 : vector<1x16xi1> to vector<8x16xi1>
    %764 = vector.shape_cast %748 : vector<8x1xf32> to vector<8x1xf32>
    %765 = vector.broadcast %764 : vector<8x1xf32> to vector<8x16xf32>
    %766 = arith.select %763, %765, %716 : vector<8x16xi1>, vector<8x16xf32>
    %767 = vector.shape_cast %756 : vector<1x16xi1> to vector<1x16xi1>
    %768 = vector.broadcast %767 : vector<1x16xi1> to vector<8x16xi1>
    %769 = vector.shape_cast %754 : vector<8x1xf32> to vector<8x1xf32>
    %770 = vector.broadcast %769 : vector<8x1xf32> to vector<8x16xf32>
    %771 = arith.select %768, %770, %721 : vector<8x16xi1>, vector<8x16xf32>
    %cst_166 = arith.constant 0x7F800000 : f32
    %772 = vector.broadcast %cst_166 : f32 to vector<8x128xf32>
    %773 = arith.select %736, %772, %723 : vector<8x128xi1>, vector<8x128xf32>
    %c8_i32 = arith.constant 8 : i32
    %cst_167 = arith.constant dense<0x7F800000> : vector<8xf32>
    %774 = vector.multi_reduction <minimumf>, %773, %cst_167 [1] : vector<8x128xf32> to vector<8xf32>
    %775 = vector.shape_cast %774 : vector<8xf32> to vector<8x1xf32>
    %776 = vector.broadcast %775 : vector<8x1xf32> to vector<8x128xf32>
    %777 = arith.cmpf oeq, %773, %776 : vector<8x128xf32>
    %c128_i32_168 = arith.constant 128 : i32
    %778 = vector.shape_cast %6 : vector<1x128xi32> to vector<1x128xi32>
    %779 = vector.broadcast %778 : vector<1x128xi32> to vector<8x128xi32>
    %780 = vector.broadcast %c128_i32_168 : i32 to vector<8x128xi32>
    %781 = arith.select %777, %779, %780 : vector<8x128xi1>, vector<8x128xi32>
    %cst_169 = arith.constant dense<2147483647> : vector<8xi32>
    %782 = vector.multi_reduction <minsi>, %781, %cst_169 [1] : vector<8x128xi32> to vector<8xi32>
    %783 = vector.shape_cast %782 : vector<8xi32> to vector<8x1xi32>
    %784 = vector.broadcast %6 : vector<1x128xi32> to vector<8x128xi32>
    %785 = vector.broadcast %783 : vector<8x1xi32> to vector<8x128xi32>
    %786 = arith.cmpi eq, %784, %785 : vector<8x128xi32>
    %cst_170 = arith.constant 0.000000e+00 : f32
    %787 = vector.shape_cast %1 : vector<1x128xf32> to vector<1x128xf32>
    %788 = vector.broadcast %787 : vector<1x128xf32> to vector<8x128xf32>
    %789 = vector.broadcast %cst_170 : f32 to vector<8x128xf32>
    %790 = arith.select %786, %788, %789 : vector<8x128xi1>, vector<8x128xf32>
    %cst_171 = arith.constant dense<0.000000e+00> : vector<8xf32>
    %791 = vector.multi_reduction <add>, %790, %cst_171 [1] : vector<8x128xf32> to vector<8xf32>
    %792 = vector.shape_cast %791 : vector<8xf32> to vector<8x1xf32>
    %cst_172 = arith.constant 0.000000e+00 : f32
    %793 = vector.shape_cast %3 : vector<1x128xf32> to vector<1x128xf32>
    %794 = vector.broadcast %793 : vector<1x128xf32> to vector<8x128xf32>
    %795 = vector.broadcast %cst_172 : f32 to vector<8x128xf32>
    %796 = arith.select %786, %794, %795 : vector<8x128xi1>, vector<8x128xf32>
    %cst_173 = arith.constant dense<0.000000e+00> : vector<8xf32>
    %797 = vector.multi_reduction <add>, %796, %cst_173 [1] : vector<8x128xf32> to vector<8xf32>
    %798 = vector.shape_cast %797 : vector<8xf32> to vector<8x1xf32>
    %cst_174 = arith.constant 0.000000e+00 : f32
    %799 = vector.shape_cast %5 : vector<1x128xf32> to vector<1x128xf32>
    %800 = vector.broadcast %799 : vector<1x128xf32> to vector<8x128xf32>
    %801 = vector.broadcast %cst_174 : f32 to vector<8x128xf32>
    %802 = arith.select %786, %800, %801 : vector<8x128xi1>, vector<8x128xf32>
    %cst_175 = arith.constant dense<0.000000e+00> : vector<8xf32>
    %803 = vector.multi_reduction <add>, %802, %cst_175 [1] : vector<8x128xf32> to vector<8xf32>
    %804 = vector.shape_cast %803 : vector<8xf32> to vector<8x1xf32>
    %805 = vector.broadcast %c8_i32 : i32 to vector<1x16xi32>
    %806 = arith.cmpi eq, %8, %805 : vector<1x16xi32>
    %807 = vector.shape_cast %806 : vector<1x16xi1> to vector<1x16xi1>
    %808 = vector.broadcast %807 : vector<1x16xi1> to vector<8x16xi1>
    %809 = vector.shape_cast %792 : vector<8x1xf32> to vector<8x1xf32>
    %810 = vector.broadcast %809 : vector<8x1xf32> to vector<8x16xf32>
    %811 = arith.select %808, %810, %761 : vector<8x16xi1>, vector<8x16xf32>
    %812 = vector.shape_cast %806 : vector<1x16xi1> to vector<1x16xi1>
    %813 = vector.broadcast %812 : vector<1x16xi1> to vector<8x16xi1>
    %814 = vector.shape_cast %798 : vector<8x1xf32> to vector<8x1xf32>
    %815 = vector.broadcast %814 : vector<8x1xf32> to vector<8x16xf32>
    %816 = arith.select %813, %815, %766 : vector<8x16xi1>, vector<8x16xf32>
    %817 = vector.shape_cast %806 : vector<1x16xi1> to vector<1x16xi1>
    %818 = vector.broadcast %817 : vector<1x16xi1> to vector<8x16xi1>
    %819 = vector.shape_cast %804 : vector<8x1xf32> to vector<8x1xf32>
    %820 = vector.broadcast %819 : vector<8x1xf32> to vector<8x16xf32>
    %821 = arith.select %818, %820, %771 : vector<8x16xi1>, vector<8x16xf32>
    %cst_176 = arith.constant 0x7F800000 : f32
    %822 = vector.broadcast %cst_176 : f32 to vector<8x128xf32>
    %823 = arith.select %786, %822, %773 : vector<8x128xi1>, vector<8x128xf32>
    %c9_i32 = arith.constant 9 : i32
    %cst_177 = arith.constant dense<0x7F800000> : vector<8xf32>
    %824 = vector.multi_reduction <minimumf>, %823, %cst_177 [1] : vector<8x128xf32> to vector<8xf32>
    %825 = vector.shape_cast %824 : vector<8xf32> to vector<8x1xf32>
    %826 = vector.broadcast %825 : vector<8x1xf32> to vector<8x128xf32>
    %827 = arith.cmpf oeq, %823, %826 : vector<8x128xf32>
    %c128_i32_178 = arith.constant 128 : i32
    %828 = vector.shape_cast %6 : vector<1x128xi32> to vector<1x128xi32>
    %829 = vector.broadcast %828 : vector<1x128xi32> to vector<8x128xi32>
    %830 = vector.broadcast %c128_i32_178 : i32 to vector<8x128xi32>
    %831 = arith.select %827, %829, %830 : vector<8x128xi1>, vector<8x128xi32>
    %cst_179 = arith.constant dense<2147483647> : vector<8xi32>
    %832 = vector.multi_reduction <minsi>, %831, %cst_179 [1] : vector<8x128xi32> to vector<8xi32>
    %833 = vector.shape_cast %832 : vector<8xi32> to vector<8x1xi32>
    %834 = vector.broadcast %6 : vector<1x128xi32> to vector<8x128xi32>
    %835 = vector.broadcast %833 : vector<8x1xi32> to vector<8x128xi32>
    %836 = arith.cmpi eq, %834, %835 : vector<8x128xi32>
    %cst_180 = arith.constant 0.000000e+00 : f32
    %837 = vector.shape_cast %1 : vector<1x128xf32> to vector<1x128xf32>
    %838 = vector.broadcast %837 : vector<1x128xf32> to vector<8x128xf32>
    %839 = vector.broadcast %cst_180 : f32 to vector<8x128xf32>
    %840 = arith.select %836, %838, %839 : vector<8x128xi1>, vector<8x128xf32>
    %cst_181 = arith.constant dense<0.000000e+00> : vector<8xf32>
    %841 = vector.multi_reduction <add>, %840, %cst_181 [1] : vector<8x128xf32> to vector<8xf32>
    %842 = vector.shape_cast %841 : vector<8xf32> to vector<8x1xf32>
    %cst_182 = arith.constant 0.000000e+00 : f32
    %843 = vector.shape_cast %3 : vector<1x128xf32> to vector<1x128xf32>
    %844 = vector.broadcast %843 : vector<1x128xf32> to vector<8x128xf32>
    %845 = vector.broadcast %cst_182 : f32 to vector<8x128xf32>
    %846 = arith.select %836, %844, %845 : vector<8x128xi1>, vector<8x128xf32>
    %cst_183 = arith.constant dense<0.000000e+00> : vector<8xf32>
    %847 = vector.multi_reduction <add>, %846, %cst_183 [1] : vector<8x128xf32> to vector<8xf32>
    %848 = vector.shape_cast %847 : vector<8xf32> to vector<8x1xf32>
    %cst_184 = arith.constant 0.000000e+00 : f32
    %849 = vector.shape_cast %5 : vector<1x128xf32> to vector<1x128xf32>
    %850 = vector.broadcast %849 : vector<1x128xf32> to vector<8x128xf32>
    %851 = vector.broadcast %cst_184 : f32 to vector<8x128xf32>
    %852 = arith.select %836, %850, %851 : vector<8x128xi1>, vector<8x128xf32>
    %cst_185 = arith.constant dense<0.000000e+00> : vector<8xf32>
    %853 = vector.multi_reduction <add>, %852, %cst_185 [1] : vector<8x128xf32> to vector<8xf32>
    %854 = vector.shape_cast %853 : vector<8xf32> to vector<8x1xf32>
    %855 = vector.broadcast %c9_i32 : i32 to vector<1x16xi32>
    %856 = arith.cmpi eq, %8, %855 : vector<1x16xi32>
    %857 = vector.shape_cast %856 : vector<1x16xi1> to vector<1x16xi1>
    %858 = vector.broadcast %857 : vector<1x16xi1> to vector<8x16xi1>
    %859 = vector.shape_cast %842 : vector<8x1xf32> to vector<8x1xf32>
    %860 = vector.broadcast %859 : vector<8x1xf32> to vector<8x16xf32>
    %861 = arith.select %858, %860, %811 : vector<8x16xi1>, vector<8x16xf32>
    %862 = vector.shape_cast %856 : vector<1x16xi1> to vector<1x16xi1>
    %863 = vector.broadcast %862 : vector<1x16xi1> to vector<8x16xi1>
    %864 = vector.shape_cast %848 : vector<8x1xf32> to vector<8x1xf32>
    %865 = vector.broadcast %864 : vector<8x1xf32> to vector<8x16xf32>
    %866 = arith.select %863, %865, %816 : vector<8x16xi1>, vector<8x16xf32>
    %867 = vector.shape_cast %856 : vector<1x16xi1> to vector<1x16xi1>
    %868 = vector.broadcast %867 : vector<1x16xi1> to vector<8x16xi1>
    %869 = vector.shape_cast %854 : vector<8x1xf32> to vector<8x1xf32>
    %870 = vector.broadcast %869 : vector<8x1xf32> to vector<8x16xf32>
    %871 = arith.select %868, %870, %821 : vector<8x16xi1>, vector<8x16xf32>
    %cst_186 = arith.constant 0x7F800000 : f32
    %872 = vector.broadcast %cst_186 : f32 to vector<8x128xf32>
    %873 = arith.select %836, %872, %823 : vector<8x128xi1>, vector<8x128xf32>
    %c10_i32 = arith.constant 10 : i32
    %cst_187 = arith.constant dense<0x7F800000> : vector<8xf32>
    %874 = vector.multi_reduction <minimumf>, %873, %cst_187 [1] : vector<8x128xf32> to vector<8xf32>
    %875 = vector.shape_cast %874 : vector<8xf32> to vector<8x1xf32>
    %876 = vector.broadcast %875 : vector<8x1xf32> to vector<8x128xf32>
    %877 = arith.cmpf oeq, %873, %876 : vector<8x128xf32>
    %c128_i32_188 = arith.constant 128 : i32
    %878 = vector.shape_cast %6 : vector<1x128xi32> to vector<1x128xi32>
    %879 = vector.broadcast %878 : vector<1x128xi32> to vector<8x128xi32>
    %880 = vector.broadcast %c128_i32_188 : i32 to vector<8x128xi32>
    %881 = arith.select %877, %879, %880 : vector<8x128xi1>, vector<8x128xi32>
    %cst_189 = arith.constant dense<2147483647> : vector<8xi32>
    %882 = vector.multi_reduction <minsi>, %881, %cst_189 [1] : vector<8x128xi32> to vector<8xi32>
    %883 = vector.shape_cast %882 : vector<8xi32> to vector<8x1xi32>
    %884 = vector.broadcast %6 : vector<1x128xi32> to vector<8x128xi32>
    %885 = vector.broadcast %883 : vector<8x1xi32> to vector<8x128xi32>
    %886 = arith.cmpi eq, %884, %885 : vector<8x128xi32>
    %cst_190 = arith.constant 0.000000e+00 : f32
    %887 = vector.shape_cast %1 : vector<1x128xf32> to vector<1x128xf32>
    %888 = vector.broadcast %887 : vector<1x128xf32> to vector<8x128xf32>
    %889 = vector.broadcast %cst_190 : f32 to vector<8x128xf32>
    %890 = arith.select %886, %888, %889 : vector<8x128xi1>, vector<8x128xf32>
    %cst_191 = arith.constant dense<0.000000e+00> : vector<8xf32>
    %891 = vector.multi_reduction <add>, %890, %cst_191 [1] : vector<8x128xf32> to vector<8xf32>
    %892 = vector.shape_cast %891 : vector<8xf32> to vector<8x1xf32>
    %cst_192 = arith.constant 0.000000e+00 : f32
    %893 = vector.shape_cast %3 : vector<1x128xf32> to vector<1x128xf32>
    %894 = vector.broadcast %893 : vector<1x128xf32> to vector<8x128xf32>
    %895 = vector.broadcast %cst_192 : f32 to vector<8x128xf32>
    %896 = arith.select %886, %894, %895 : vector<8x128xi1>, vector<8x128xf32>
    %cst_193 = arith.constant dense<0.000000e+00> : vector<8xf32>
    %897 = vector.multi_reduction <add>, %896, %cst_193 [1] : vector<8x128xf32> to vector<8xf32>
    %898 = vector.shape_cast %897 : vector<8xf32> to vector<8x1xf32>
    %cst_194 = arith.constant 0.000000e+00 : f32
    %899 = vector.shape_cast %5 : vector<1x128xf32> to vector<1x128xf32>
    %900 = vector.broadcast %899 : vector<1x128xf32> to vector<8x128xf32>
    %901 = vector.broadcast %cst_194 : f32 to vector<8x128xf32>
    %902 = arith.select %886, %900, %901 : vector<8x128xi1>, vector<8x128xf32>
    %cst_195 = arith.constant dense<0.000000e+00> : vector<8xf32>
    %903 = vector.multi_reduction <add>, %902, %cst_195 [1] : vector<8x128xf32> to vector<8xf32>
    %904 = vector.shape_cast %903 : vector<8xf32> to vector<8x1xf32>
    %905 = vector.broadcast %c10_i32 : i32 to vector<1x16xi32>
    %906 = arith.cmpi eq, %8, %905 : vector<1x16xi32>
    %907 = vector.shape_cast %906 : vector<1x16xi1> to vector<1x16xi1>
    %908 = vector.broadcast %907 : vector<1x16xi1> to vector<8x16xi1>
    %909 = vector.shape_cast %892 : vector<8x1xf32> to vector<8x1xf32>
    %910 = vector.broadcast %909 : vector<8x1xf32> to vector<8x16xf32>
    %911 = arith.select %908, %910, %861 : vector<8x16xi1>, vector<8x16xf32>
    %912 = vector.shape_cast %906 : vector<1x16xi1> to vector<1x16xi1>
    %913 = vector.broadcast %912 : vector<1x16xi1> to vector<8x16xi1>
    %914 = vector.shape_cast %898 : vector<8x1xf32> to vector<8x1xf32>
    %915 = vector.broadcast %914 : vector<8x1xf32> to vector<8x16xf32>
    %916 = arith.select %913, %915, %866 : vector<8x16xi1>, vector<8x16xf32>
    %917 = vector.shape_cast %906 : vector<1x16xi1> to vector<1x16xi1>
    %918 = vector.broadcast %917 : vector<1x16xi1> to vector<8x16xi1>
    %919 = vector.shape_cast %904 : vector<8x1xf32> to vector<8x1xf32>
    %920 = vector.broadcast %919 : vector<8x1xf32> to vector<8x16xf32>
    %921 = arith.select %918, %920, %871 : vector<8x16xi1>, vector<8x16xf32>
    %cst_196 = arith.constant 0x7F800000 : f32
    %922 = vector.broadcast %cst_196 : f32 to vector<8x128xf32>
    %923 = arith.select %886, %922, %873 : vector<8x128xi1>, vector<8x128xf32>
    %c11_i32 = arith.constant 11 : i32
    %cst_197 = arith.constant dense<0x7F800000> : vector<8xf32>
    %924 = vector.multi_reduction <minimumf>, %923, %cst_197 [1] : vector<8x128xf32> to vector<8xf32>
    %925 = vector.shape_cast %924 : vector<8xf32> to vector<8x1xf32>
    %926 = vector.broadcast %925 : vector<8x1xf32> to vector<8x128xf32>
    %927 = arith.cmpf oeq, %923, %926 : vector<8x128xf32>
    %c128_i32_198 = arith.constant 128 : i32
    %928 = vector.shape_cast %6 : vector<1x128xi32> to vector<1x128xi32>
    %929 = vector.broadcast %928 : vector<1x128xi32> to vector<8x128xi32>
    %930 = vector.broadcast %c128_i32_198 : i32 to vector<8x128xi32>
    %931 = arith.select %927, %929, %930 : vector<8x128xi1>, vector<8x128xi32>
    %cst_199 = arith.constant dense<2147483647> : vector<8xi32>
    %932 = vector.multi_reduction <minsi>, %931, %cst_199 [1] : vector<8x128xi32> to vector<8xi32>
    %933 = vector.shape_cast %932 : vector<8xi32> to vector<8x1xi32>
    %934 = vector.broadcast %6 : vector<1x128xi32> to vector<8x128xi32>
    %935 = vector.broadcast %933 : vector<8x1xi32> to vector<8x128xi32>
    %936 = arith.cmpi eq, %934, %935 : vector<8x128xi32>
    %cst_200 = arith.constant 0.000000e+00 : f32
    %937 = vector.shape_cast %1 : vector<1x128xf32> to vector<1x128xf32>
    %938 = vector.broadcast %937 : vector<1x128xf32> to vector<8x128xf32>
    %939 = vector.broadcast %cst_200 : f32 to vector<8x128xf32>
    %940 = arith.select %936, %938, %939 : vector<8x128xi1>, vector<8x128xf32>
    %cst_201 = arith.constant dense<0.000000e+00> : vector<8xf32>
    %941 = vector.multi_reduction <add>, %940, %cst_201 [1] : vector<8x128xf32> to vector<8xf32>
    %942 = vector.shape_cast %941 : vector<8xf32> to vector<8x1xf32>
    %cst_202 = arith.constant 0.000000e+00 : f32
    %943 = vector.shape_cast %3 : vector<1x128xf32> to vector<1x128xf32>
    %944 = vector.broadcast %943 : vector<1x128xf32> to vector<8x128xf32>
    %945 = vector.broadcast %cst_202 : f32 to vector<8x128xf32>
    %946 = arith.select %936, %944, %945 : vector<8x128xi1>, vector<8x128xf32>
    %cst_203 = arith.constant dense<0.000000e+00> : vector<8xf32>
    %947 = vector.multi_reduction <add>, %946, %cst_203 [1] : vector<8x128xf32> to vector<8xf32>
    %948 = vector.shape_cast %947 : vector<8xf32> to vector<8x1xf32>
    %cst_204 = arith.constant 0.000000e+00 : f32
    %949 = vector.shape_cast %5 : vector<1x128xf32> to vector<1x128xf32>
    %950 = vector.broadcast %949 : vector<1x128xf32> to vector<8x128xf32>
    %951 = vector.broadcast %cst_204 : f32 to vector<8x128xf32>
    %952 = arith.select %936, %950, %951 : vector<8x128xi1>, vector<8x128xf32>
    %cst_205 = arith.constant dense<0.000000e+00> : vector<8xf32>
    %953 = vector.multi_reduction <add>, %952, %cst_205 [1] : vector<8x128xf32> to vector<8xf32>
    %954 = vector.shape_cast %953 : vector<8xf32> to vector<8x1xf32>
    %955 = vector.broadcast %c11_i32 : i32 to vector<1x16xi32>
    %956 = arith.cmpi eq, %8, %955 : vector<1x16xi32>
    %957 = vector.shape_cast %956 : vector<1x16xi1> to vector<1x16xi1>
    %958 = vector.broadcast %957 : vector<1x16xi1> to vector<8x16xi1>
    %959 = vector.shape_cast %942 : vector<8x1xf32> to vector<8x1xf32>
    %960 = vector.broadcast %959 : vector<8x1xf32> to vector<8x16xf32>
    %961 = arith.select %958, %960, %911 : vector<8x16xi1>, vector<8x16xf32>
    %962 = vector.shape_cast %956 : vector<1x16xi1> to vector<1x16xi1>
    %963 = vector.broadcast %962 : vector<1x16xi1> to vector<8x16xi1>
    %964 = vector.shape_cast %948 : vector<8x1xf32> to vector<8x1xf32>
    %965 = vector.broadcast %964 : vector<8x1xf32> to vector<8x16xf32>
    %966 = arith.select %963, %965, %916 : vector<8x16xi1>, vector<8x16xf32>
    %967 = vector.shape_cast %956 : vector<1x16xi1> to vector<1x16xi1>
    %968 = vector.broadcast %967 : vector<1x16xi1> to vector<8x16xi1>
    %969 = vector.shape_cast %954 : vector<8x1xf32> to vector<8x1xf32>
    %970 = vector.broadcast %969 : vector<8x1xf32> to vector<8x16xf32>
    %971 = arith.select %968, %970, %921 : vector<8x16xi1>, vector<8x16xf32>
    %cst_206 = arith.constant 0x7F800000 : f32
    %972 = vector.broadcast %cst_206 : f32 to vector<8x128xf32>
    %973 = arith.select %936, %972, %923 : vector<8x128xi1>, vector<8x128xf32>
    %c12_i32 = arith.constant 12 : i32
    %cst_207 = arith.constant dense<0x7F800000> : vector<8xf32>
    %974 = vector.multi_reduction <minimumf>, %973, %cst_207 [1] : vector<8x128xf32> to vector<8xf32>
    %975 = vector.shape_cast %974 : vector<8xf32> to vector<8x1xf32>
    %976 = vector.broadcast %975 : vector<8x1xf32> to vector<8x128xf32>
    %977 = arith.cmpf oeq, %973, %976 : vector<8x128xf32>
    %c128_i32_208 = arith.constant 128 : i32
    %978 = vector.shape_cast %6 : vector<1x128xi32> to vector<1x128xi32>
    %979 = vector.broadcast %978 : vector<1x128xi32> to vector<8x128xi32>
    %980 = vector.broadcast %c128_i32_208 : i32 to vector<8x128xi32>
    %981 = arith.select %977, %979, %980 : vector<8x128xi1>, vector<8x128xi32>
    %cst_209 = arith.constant dense<2147483647> : vector<8xi32>
    %982 = vector.multi_reduction <minsi>, %981, %cst_209 [1] : vector<8x128xi32> to vector<8xi32>
    %983 = vector.shape_cast %982 : vector<8xi32> to vector<8x1xi32>
    %984 = vector.broadcast %6 : vector<1x128xi32> to vector<8x128xi32>
    %985 = vector.broadcast %983 : vector<8x1xi32> to vector<8x128xi32>
    %986 = arith.cmpi eq, %984, %985 : vector<8x128xi32>
    %cst_210 = arith.constant 0.000000e+00 : f32
    %987 = vector.shape_cast %1 : vector<1x128xf32> to vector<1x128xf32>
    %988 = vector.broadcast %987 : vector<1x128xf32> to vector<8x128xf32>
    %989 = vector.broadcast %cst_210 : f32 to vector<8x128xf32>
    %990 = arith.select %986, %988, %989 : vector<8x128xi1>, vector<8x128xf32>
    %cst_211 = arith.constant dense<0.000000e+00> : vector<8xf32>
    %991 = vector.multi_reduction <add>, %990, %cst_211 [1] : vector<8x128xf32> to vector<8xf32>
    %992 = vector.shape_cast %991 : vector<8xf32> to vector<8x1xf32>
    %cst_212 = arith.constant 0.000000e+00 : f32
    %993 = vector.shape_cast %3 : vector<1x128xf32> to vector<1x128xf32>
    %994 = vector.broadcast %993 : vector<1x128xf32> to vector<8x128xf32>
    %995 = vector.broadcast %cst_212 : f32 to vector<8x128xf32>
    %996 = arith.select %986, %994, %995 : vector<8x128xi1>, vector<8x128xf32>
    %cst_213 = arith.constant dense<0.000000e+00> : vector<8xf32>
    %997 = vector.multi_reduction <add>, %996, %cst_213 [1] : vector<8x128xf32> to vector<8xf32>
    %998 = vector.shape_cast %997 : vector<8xf32> to vector<8x1xf32>
    %cst_214 = arith.constant 0.000000e+00 : f32
    %999 = vector.shape_cast %5 : vector<1x128xf32> to vector<1x128xf32>
    %1000 = vector.broadcast %999 : vector<1x128xf32> to vector<8x128xf32>
    %1001 = vector.broadcast %cst_214 : f32 to vector<8x128xf32>
    %1002 = arith.select %986, %1000, %1001 : vector<8x128xi1>, vector<8x128xf32>
    %cst_215 = arith.constant dense<0.000000e+00> : vector<8xf32>
    %1003 = vector.multi_reduction <add>, %1002, %cst_215 [1] : vector<8x128xf32> to vector<8xf32>
    %1004 = vector.shape_cast %1003 : vector<8xf32> to vector<8x1xf32>
    %1005 = vector.broadcast %c12_i32 : i32 to vector<1x16xi32>
    %1006 = arith.cmpi eq, %8, %1005 : vector<1x16xi32>
    %1007 = vector.shape_cast %1006 : vector<1x16xi1> to vector<1x16xi1>
    %1008 = vector.broadcast %1007 : vector<1x16xi1> to vector<8x16xi1>
    %1009 = vector.shape_cast %992 : vector<8x1xf32> to vector<8x1xf32>
    %1010 = vector.broadcast %1009 : vector<8x1xf32> to vector<8x16xf32>
    %1011 = arith.select %1008, %1010, %961 : vector<8x16xi1>, vector<8x16xf32>
    %1012 = vector.shape_cast %1006 : vector<1x16xi1> to vector<1x16xi1>
    %1013 = vector.broadcast %1012 : vector<1x16xi1> to vector<8x16xi1>
    %1014 = vector.shape_cast %998 : vector<8x1xf32> to vector<8x1xf32>
    %1015 = vector.broadcast %1014 : vector<8x1xf32> to vector<8x16xf32>
    %1016 = arith.select %1013, %1015, %966 : vector<8x16xi1>, vector<8x16xf32>
    %1017 = vector.shape_cast %1006 : vector<1x16xi1> to vector<1x16xi1>
    %1018 = vector.broadcast %1017 : vector<1x16xi1> to vector<8x16xi1>
    %1019 = vector.shape_cast %1004 : vector<8x1xf32> to vector<8x1xf32>
    %1020 = vector.broadcast %1019 : vector<8x1xf32> to vector<8x16xf32>
    %1021 = arith.select %1018, %1020, %971 : vector<8x16xi1>, vector<8x16xf32>
    %cst_216 = arith.constant 0x7F800000 : f32
    %1022 = vector.broadcast %cst_216 : f32 to vector<8x128xf32>
    %1023 = arith.select %986, %1022, %973 : vector<8x128xi1>, vector<8x128xf32>
    %c13_i32 = arith.constant 13 : i32
    %cst_217 = arith.constant dense<0x7F800000> : vector<8xf32>
    %1024 = vector.multi_reduction <minimumf>, %1023, %cst_217 [1] : vector<8x128xf32> to vector<8xf32>
    %1025 = vector.shape_cast %1024 : vector<8xf32> to vector<8x1xf32>
    %1026 = vector.broadcast %1025 : vector<8x1xf32> to vector<8x128xf32>
    %1027 = arith.cmpf oeq, %1023, %1026 : vector<8x128xf32>
    %c128_i32_218 = arith.constant 128 : i32
    %1028 = vector.shape_cast %6 : vector<1x128xi32> to vector<1x128xi32>
    %1029 = vector.broadcast %1028 : vector<1x128xi32> to vector<8x128xi32>
    %1030 = vector.broadcast %c128_i32_218 : i32 to vector<8x128xi32>
    %1031 = arith.select %1027, %1029, %1030 : vector<8x128xi1>, vector<8x128xi32>
    %cst_219 = arith.constant dense<2147483647> : vector<8xi32>
    %1032 = vector.multi_reduction <minsi>, %1031, %cst_219 [1] : vector<8x128xi32> to vector<8xi32>
    %1033 = vector.shape_cast %1032 : vector<8xi32> to vector<8x1xi32>
    %1034 = vector.broadcast %6 : vector<1x128xi32> to vector<8x128xi32>
    %1035 = vector.broadcast %1033 : vector<8x1xi32> to vector<8x128xi32>
    %1036 = arith.cmpi eq, %1034, %1035 : vector<8x128xi32>
    %cst_220 = arith.constant 0.000000e+00 : f32
    %1037 = vector.shape_cast %1 : vector<1x128xf32> to vector<1x128xf32>
    %1038 = vector.broadcast %1037 : vector<1x128xf32> to vector<8x128xf32>
    %1039 = vector.broadcast %cst_220 : f32 to vector<8x128xf32>
    %1040 = arith.select %1036, %1038, %1039 : vector<8x128xi1>, vector<8x128xf32>
    %cst_221 = arith.constant dense<0.000000e+00> : vector<8xf32>
    %1041 = vector.multi_reduction <add>, %1040, %cst_221 [1] : vector<8x128xf32> to vector<8xf32>
    %1042 = vector.shape_cast %1041 : vector<8xf32> to vector<8x1xf32>
    %cst_222 = arith.constant 0.000000e+00 : f32
    %1043 = vector.shape_cast %3 : vector<1x128xf32> to vector<1x128xf32>
    %1044 = vector.broadcast %1043 : vector<1x128xf32> to vector<8x128xf32>
    %1045 = vector.broadcast %cst_222 : f32 to vector<8x128xf32>
    %1046 = arith.select %1036, %1044, %1045 : vector<8x128xi1>, vector<8x128xf32>
    %cst_223 = arith.constant dense<0.000000e+00> : vector<8xf32>
    %1047 = vector.multi_reduction <add>, %1046, %cst_223 [1] : vector<8x128xf32> to vector<8xf32>
    %1048 = vector.shape_cast %1047 : vector<8xf32> to vector<8x1xf32>
    %cst_224 = arith.constant 0.000000e+00 : f32
    %1049 = vector.shape_cast %5 : vector<1x128xf32> to vector<1x128xf32>
    %1050 = vector.broadcast %1049 : vector<1x128xf32> to vector<8x128xf32>
    %1051 = vector.broadcast %cst_224 : f32 to vector<8x128xf32>
    %1052 = arith.select %1036, %1050, %1051 : vector<8x128xi1>, vector<8x128xf32>
    %cst_225 = arith.constant dense<0.000000e+00> : vector<8xf32>
    %1053 = vector.multi_reduction <add>, %1052, %cst_225 [1] : vector<8x128xf32> to vector<8xf32>
    %1054 = vector.shape_cast %1053 : vector<8xf32> to vector<8x1xf32>
    %1055 = vector.broadcast %c13_i32 : i32 to vector<1x16xi32>
    %1056 = arith.cmpi eq, %8, %1055 : vector<1x16xi32>
    %1057 = vector.shape_cast %1056 : vector<1x16xi1> to vector<1x16xi1>
    %1058 = vector.broadcast %1057 : vector<1x16xi1> to vector<8x16xi1>
    %1059 = vector.shape_cast %1042 : vector<8x1xf32> to vector<8x1xf32>
    %1060 = vector.broadcast %1059 : vector<8x1xf32> to vector<8x16xf32>
    %1061 = arith.select %1058, %1060, %1011 : vector<8x16xi1>, vector<8x16xf32>
    %1062 = vector.shape_cast %1056 : vector<1x16xi1> to vector<1x16xi1>
    %1063 = vector.broadcast %1062 : vector<1x16xi1> to vector<8x16xi1>
    %1064 = vector.shape_cast %1048 : vector<8x1xf32> to vector<8x1xf32>
    %1065 = vector.broadcast %1064 : vector<8x1xf32> to vector<8x16xf32>
    %1066 = arith.select %1063, %1065, %1016 : vector<8x16xi1>, vector<8x16xf32>
    %1067 = vector.shape_cast %1056 : vector<1x16xi1> to vector<1x16xi1>
    %1068 = vector.broadcast %1067 : vector<1x16xi1> to vector<8x16xi1>
    %1069 = vector.shape_cast %1054 : vector<8x1xf32> to vector<8x1xf32>
    %1070 = vector.broadcast %1069 : vector<8x1xf32> to vector<8x16xf32>
    %1071 = arith.select %1068, %1070, %1021 : vector<8x16xi1>, vector<8x16xf32>
    %cst_226 = arith.constant 0x7F800000 : f32
    %1072 = vector.broadcast %cst_226 : f32 to vector<8x128xf32>
    %1073 = arith.select %1036, %1072, %1023 : vector<8x128xi1>, vector<8x128xf32>
    %c14_i32 = arith.constant 14 : i32
    %cst_227 = arith.constant dense<0x7F800000> : vector<8xf32>
    %1074 = vector.multi_reduction <minimumf>, %1073, %cst_227 [1] : vector<8x128xf32> to vector<8xf32>
    %1075 = vector.shape_cast %1074 : vector<8xf32> to vector<8x1xf32>
    %1076 = vector.broadcast %1075 : vector<8x1xf32> to vector<8x128xf32>
    %1077 = arith.cmpf oeq, %1073, %1076 : vector<8x128xf32>
    %c128_i32_228 = arith.constant 128 : i32
    %1078 = vector.shape_cast %6 : vector<1x128xi32> to vector<1x128xi32>
    %1079 = vector.broadcast %1078 : vector<1x128xi32> to vector<8x128xi32>
    %1080 = vector.broadcast %c128_i32_228 : i32 to vector<8x128xi32>
    %1081 = arith.select %1077, %1079, %1080 : vector<8x128xi1>, vector<8x128xi32>
    %cst_229 = arith.constant dense<2147483647> : vector<8xi32>
    %1082 = vector.multi_reduction <minsi>, %1081, %cst_229 [1] : vector<8x128xi32> to vector<8xi32>
    %1083 = vector.shape_cast %1082 : vector<8xi32> to vector<8x1xi32>
    %1084 = vector.broadcast %6 : vector<1x128xi32> to vector<8x128xi32>
    %1085 = vector.broadcast %1083 : vector<8x1xi32> to vector<8x128xi32>
    %1086 = arith.cmpi eq, %1084, %1085 : vector<8x128xi32>
    %cst_230 = arith.constant 0.000000e+00 : f32
    %1087 = vector.shape_cast %1 : vector<1x128xf32> to vector<1x128xf32>
    %1088 = vector.broadcast %1087 : vector<1x128xf32> to vector<8x128xf32>
    %1089 = vector.broadcast %cst_230 : f32 to vector<8x128xf32>
    %1090 = arith.select %1086, %1088, %1089 : vector<8x128xi1>, vector<8x128xf32>
    %cst_231 = arith.constant dense<0.000000e+00> : vector<8xf32>
    %1091 = vector.multi_reduction <add>, %1090, %cst_231 [1] : vector<8x128xf32> to vector<8xf32>
    %1092 = vector.shape_cast %1091 : vector<8xf32> to vector<8x1xf32>
    %cst_232 = arith.constant 0.000000e+00 : f32
    %1093 = vector.shape_cast %3 : vector<1x128xf32> to vector<1x128xf32>
    %1094 = vector.broadcast %1093 : vector<1x128xf32> to vector<8x128xf32>
    %1095 = vector.broadcast %cst_232 : f32 to vector<8x128xf32>
    %1096 = arith.select %1086, %1094, %1095 : vector<8x128xi1>, vector<8x128xf32>
    %cst_233 = arith.constant dense<0.000000e+00> : vector<8xf32>
    %1097 = vector.multi_reduction <add>, %1096, %cst_233 [1] : vector<8x128xf32> to vector<8xf32>
    %1098 = vector.shape_cast %1097 : vector<8xf32> to vector<8x1xf32>
    %cst_234 = arith.constant 0.000000e+00 : f32
    %1099 = vector.shape_cast %5 : vector<1x128xf32> to vector<1x128xf32>
    %1100 = vector.broadcast %1099 : vector<1x128xf32> to vector<8x128xf32>
    %1101 = vector.broadcast %cst_234 : f32 to vector<8x128xf32>
    %1102 = arith.select %1086, %1100, %1101 : vector<8x128xi1>, vector<8x128xf32>
    %cst_235 = arith.constant dense<0.000000e+00> : vector<8xf32>
    %1103 = vector.multi_reduction <add>, %1102, %cst_235 [1] : vector<8x128xf32> to vector<8xf32>
    %1104 = vector.shape_cast %1103 : vector<8xf32> to vector<8x1xf32>
    %1105 = vector.broadcast %c14_i32 : i32 to vector<1x16xi32>
    %1106 = arith.cmpi eq, %8, %1105 : vector<1x16xi32>
    %1107 = vector.shape_cast %1106 : vector<1x16xi1> to vector<1x16xi1>
    %1108 = vector.broadcast %1107 : vector<1x16xi1> to vector<8x16xi1>
    %1109 = vector.shape_cast %1092 : vector<8x1xf32> to vector<8x1xf32>
    %1110 = vector.broadcast %1109 : vector<8x1xf32> to vector<8x16xf32>
    %1111 = arith.select %1108, %1110, %1061 : vector<8x16xi1>, vector<8x16xf32>
    %1112 = vector.shape_cast %1106 : vector<1x16xi1> to vector<1x16xi1>
    %1113 = vector.broadcast %1112 : vector<1x16xi1> to vector<8x16xi1>
    %1114 = vector.shape_cast %1098 : vector<8x1xf32> to vector<8x1xf32>
    %1115 = vector.broadcast %1114 : vector<8x1xf32> to vector<8x16xf32>
    %1116 = arith.select %1113, %1115, %1066 : vector<8x16xi1>, vector<8x16xf32>
    %1117 = vector.shape_cast %1106 : vector<1x16xi1> to vector<1x16xi1>
    %1118 = vector.broadcast %1117 : vector<1x16xi1> to vector<8x16xi1>
    %1119 = vector.shape_cast %1104 : vector<8x1xf32> to vector<8x1xf32>
    %1120 = vector.broadcast %1119 : vector<8x1xf32> to vector<8x16xf32>
    %1121 = arith.select %1118, %1120, %1071 : vector<8x16xi1>, vector<8x16xf32>
    %cst_236 = arith.constant 0x7F800000 : f32
    %1122 = vector.broadcast %cst_236 : f32 to vector<8x128xf32>
    %1123 = arith.select %1086, %1122, %1073 : vector<8x128xi1>, vector<8x128xf32>
    %c15_i32 = arith.constant 15 : i32
    %cst_237 = arith.constant dense<0x7F800000> : vector<8xf32>
    %1124 = vector.multi_reduction <minimumf>, %1123, %cst_237 [1] : vector<8x128xf32> to vector<8xf32>
    %1125 = vector.shape_cast %1124 : vector<8xf32> to vector<8x1xf32>
    %1126 = vector.broadcast %1125 : vector<8x1xf32> to vector<8x128xf32>
    %1127 = arith.cmpf oeq, %1123, %1126 : vector<8x128xf32>
    %c128_i32_238 = arith.constant 128 : i32
    %1128 = vector.shape_cast %6 : vector<1x128xi32> to vector<1x128xi32>
    %1129 = vector.broadcast %1128 : vector<1x128xi32> to vector<8x128xi32>
    %1130 = vector.broadcast %c128_i32_238 : i32 to vector<8x128xi32>
    %1131 = arith.select %1127, %1129, %1130 : vector<8x128xi1>, vector<8x128xi32>
    %cst_239 = arith.constant dense<2147483647> : vector<8xi32>
    %1132 = vector.multi_reduction <minsi>, %1131, %cst_239 [1] : vector<8x128xi32> to vector<8xi32>
    %1133 = vector.shape_cast %1132 : vector<8xi32> to vector<8x1xi32>
    %1134 = vector.broadcast %6 : vector<1x128xi32> to vector<8x128xi32>
    %1135 = vector.broadcast %1133 : vector<8x1xi32> to vector<8x128xi32>
    %1136 = arith.cmpi eq, %1134, %1135 : vector<8x128xi32>
    %cst_240 = arith.constant 0.000000e+00 : f32
    %1137 = vector.shape_cast %1 : vector<1x128xf32> to vector<1x128xf32>
    %1138 = vector.broadcast %1137 : vector<1x128xf32> to vector<8x128xf32>
    %1139 = vector.broadcast %cst_240 : f32 to vector<8x128xf32>
    %1140 = arith.select %1136, %1138, %1139 : vector<8x128xi1>, vector<8x128xf32>
    %cst_241 = arith.constant dense<0.000000e+00> : vector<8xf32>
    %1141 = vector.multi_reduction <add>, %1140, %cst_241 [1] : vector<8x128xf32> to vector<8xf32>
    %1142 = vector.shape_cast %1141 : vector<8xf32> to vector<8x1xf32>
    %cst_242 = arith.constant 0.000000e+00 : f32
    %1143 = vector.shape_cast %3 : vector<1x128xf32> to vector<1x128xf32>
    %1144 = vector.broadcast %1143 : vector<1x128xf32> to vector<8x128xf32>
    %1145 = vector.broadcast %cst_242 : f32 to vector<8x128xf32>
    %1146 = arith.select %1136, %1144, %1145 : vector<8x128xi1>, vector<8x128xf32>
    %cst_243 = arith.constant dense<0.000000e+00> : vector<8xf32>
    %1147 = vector.multi_reduction <add>, %1146, %cst_243 [1] : vector<8x128xf32> to vector<8xf32>
    %1148 = vector.shape_cast %1147 : vector<8xf32> to vector<8x1xf32>
    %cst_244 = arith.constant 0.000000e+00 : f32
    %1149 = vector.shape_cast %5 : vector<1x128xf32> to vector<1x128xf32>
    %1150 = vector.broadcast %1149 : vector<1x128xf32> to vector<8x128xf32>
    %1151 = vector.broadcast %cst_244 : f32 to vector<8x128xf32>
    %1152 = arith.select %1136, %1150, %1151 : vector<8x128xi1>, vector<8x128xf32>
    %cst_245 = arith.constant dense<0.000000e+00> : vector<8xf32>
    %1153 = vector.multi_reduction <add>, %1152, %cst_245 [1] : vector<8x128xf32> to vector<8xf32>
    %1154 = vector.shape_cast %1153 : vector<8xf32> to vector<8x1xf32>
    %1155 = vector.broadcast %c15_i32 : i32 to vector<1x16xi32>
    %1156 = arith.cmpi eq, %8, %1155 : vector<1x16xi32>
    %1157 = vector.shape_cast %1156 : vector<1x16xi1> to vector<1x16xi1>
    %1158 = vector.broadcast %1157 : vector<1x16xi1> to vector<8x16xi1>
    %1159 = vector.shape_cast %1142 : vector<8x1xf32> to vector<8x1xf32>
    %1160 = vector.broadcast %1159 : vector<8x1xf32> to vector<8x16xf32>
    %1161 = arith.select %1158, %1160, %1111 : vector<8x16xi1>, vector<8x16xf32>
    %1162 = vector.shape_cast %1156 : vector<1x16xi1> to vector<1x16xi1>
    %1163 = vector.broadcast %1162 : vector<1x16xi1> to vector<8x16xi1>
    %1164 = vector.shape_cast %1148 : vector<8x1xf32> to vector<8x1xf32>
    %1165 = vector.broadcast %1164 : vector<8x1xf32> to vector<8x16xf32>
    %1166 = arith.select %1163, %1165, %1116 : vector<8x16xi1>, vector<8x16xf32>
    %1167 = vector.shape_cast %1156 : vector<1x16xi1> to vector<1x16xi1>
    %1168 = vector.broadcast %1167 : vector<1x16xi1> to vector<8x16xi1>
    %1169 = vector.shape_cast %1154 : vector<8x1xf32> to vector<8x1xf32>
    %1170 = vector.broadcast %1169 : vector<8x1xf32> to vector<8x16xf32>
    %1171 = arith.select %1168, %1170, %1121 : vector<8x16xi1>, vector<8x16xf32>
    %cst_246 = arith.constant 0x7F800000 : f32
    %1172 = vector.broadcast %cst_246 : f32 to vector<8x128xf32>
    %1173 = arith.select %1136, %1172, %1123 : vector<8x128xi1>, vector<8x128xf32>
    %c16_i32 = arith.constant 16 : i32
    %1174 = vector.broadcast %331 : vector<8x1xf32> to vector<8x16xf32>
    %1175 = arith.subf %1161, %1174 : vector<8x16xf32>
    %c0_247 = arith.constant 0 : index
    %c0_248 = arith.constant 0 : index
    %c0_249 = arith.constant 0 : index
    %c0_250 = arith.constant 0 : index
    %1176 = vector.load %arg2[%c0_247, %c0_248, %c0_249, %c0_250] : memref<1x3x8x16xf32, #tpu.memory_space<vmem>>, vector<1x1x8x16xf32>
    %1177 = vector.shape_cast %1176 : vector<1x1x8x16xf32> to vector<8x16xf32>
    %1178 = vector.shape_cast %1175 : vector<8x16xf32> to vector<1x1x8x16xf32>
    tpu.vector_store %arg2[%c0_247, %c0_248, %c0_249, %c0_250], %1178 {strides = array<i32>} : memref<1x3x8x16xf32, #tpu.memory_space<vmem>>, vector<1x1x8x16xf32>,
    %1179 = vector.broadcast %334 : vector<8x1xf32> to vector<8x16xf32>
    %1180 = arith.subf %1166, %1179 : vector<8x16xf32>
    %c0_251 = arith.constant 0 : index
    %c1_252 = arith.constant 1 : index
    %c0_253 = arith.constant 0 : index
    %c0_254 = arith.constant 0 : index
    %1181 = vector.load %arg2[%c0_251, %c1_252, %c0_253, %c0_254] : memref<1x3x8x16xf32, #tpu.memory_space<vmem>>, vector<1x1x8x16xf32>
    %1182 = vector.shape_cast %1181 : vector<1x1x8x16xf32> to vector<8x16xf32>
    %1183 = vector.shape_cast %1180 : vector<8x16xf32> to vector<1x1x8x16xf32>
    tpu.vector_store %arg2[%c0_251, %c1_252, %c0_253, %c0_254], %1183 {strides = array<i32>} : memref<1x3x8x16xf32, #tpu.memory_space<vmem>>, vector<1x1x8x16xf32>,
    %1184 = vector.broadcast %337 : vector<8x1xf32> to vector<8x16xf32>
    %1185 = arith.subf %1171, %1184 : vector<8x16xf32>
    %c0_255 = arith.constant 0 : index
    %c2_256 = arith.constant 2 : index
    %c0_257 = arith.constant 0 : index
    %c0_258 = arith.constant 0 : index
    %1186 = vector.load %arg2[%c0_255, %c2_256, %c0_257, %c0_258] : memref<1x3x8x16xf32, #tpu.memory_space<vmem>>, vector<1x1x8x16xf32>
    %1187 = vector.shape_cast %1186 : vector<1x1x8x16xf32> to vector<8x16xf32>
    %1188 = vector.shape_cast %1185 : vector<8x16xf32> to vector<1x1x8x16xf32>
    tpu.vector_store %arg2[%c0_255, %c2_256, %c0_257, %c0_258], %1188 {strides = array<i32>} : memref<1x3x8x16xf32, #tpu.memory_space<vmem>>, vector<1x1x8x16xf32>,
    return
  }
  func.func @transform_0(%arg0: i32) -> (i32, i32, i32) {
    %c0_i32 = arith.constant 0 : i32
    %c0_i32_0 = arith.constant 0 : i32
    %c0_i32_1 = arith.constant 0 : i32
    return %arg0, %c0_i32, %c0_i32_0 : i32, i32, i32
  }
  func.func @transform_1(%arg0: i32) -> (i32, i32, i32, i32) {
    %c0_i32 = arith.constant 0 : i32
    %c0_i32_0 = arith.constant 0 : i32
    %c0_i32_1 = arith.constant 0 : i32
    %c0_i32_2 = arith.constant 0 : i32
    return %arg0, %c0_i32, %c0_i32_0, %c0_i32_1 : i32, i32, i32, i32
  }
  func.func @transform_2(%arg0: i32) -> (i32, i32, i32) {
    %c0_i32 = arith.constant 0 : i32
    %c0_i32_0 = arith.constant 0 : i32
    %c0_i32_1 = arith.constant 0 : i32
    return %arg0, %c0_i32, %c0_i32_0 : i32, i32, i32
  }
}

</mosaic_0001>

<bundles_post_ra>
// kernel: group_forward.1
= control target key start
LH: loop header
LB: loop body
LE: loop exit
PB: predicated region body
PF: predicated region fallthrough
CT: control target
= control target key end

     0   :  { %8 = vsyncpa [#allocation3], 0  ;;  %s2154_s0 = inlined_call_operand.vmem [shape: f32[2,3,128], index: 0, kind: input, shape index: {}]   ;;  %s2155_s1 = inlined_call_operand.hbm [shape: f32[2,3,8,16], index: 1, kind: output, shape index: {0}]   ;;  %s2156_s2 = inlined_call_operand.vmem [shape: f32[2,8,3], index: 2, kind: output, shape index: {1}]  }
   0x1   :  { %10 = vsyncpa [#allocation3 + $0x1], 0  ;;  %s1384_s9 = smov 0   ;;  %s1386_s10 = smov 0  }
   0x2   :  { %s1388_s11 = smov 0   ;;  %s1390_s12 = smov 0  }
   0x3 LB: > { %s1405_s13 = sadd.s32 4294967295, %s1362_s12   ;;  %s1234_s14 = sadd.s32 4294967294, %s1362_s12   ;;  %s1362_s12 = sphi %s1390_s12, %s2171_s12   ;;  %s1358_s11 = sphi %s1388_s11, %s2170_s11   ;;  %s1354_s10 = sphi %s1386_s10, %s2169_s10   ;;  %s1350_s9 = sphi %s1384_s9, %s2168_s9  }
   0x4   : > { %s1409_s15 = sadd.s32 1, %s1362_s12   ;;  %s49_s16 = sadd.s32 1, %s1358_s11 }
   0x5   : > { %s46_s17 = ssub.s32 %s1362_s12, %s1409_s15  ;;  %p59_p0 = scmp.ne.s32.totalorder %s1358_s11, %s1354_s10 }
   0x6   : > { %p47_p1 = scmp.eq.s32.totalorder %s46_s17, 0  ;;  %p60_p2 = scmp.eq.s32.totalorder %s1405_s13, 1 }
   0x7   : > { %p65_p3 = scmp.ne.s32.totalorder %s1354_s10, %s1350_s9  ;;  %p66_p4 = scmp.eq.s32.totalorder %s1234_s14, 1 }
   0x8   : > { %s1420_s18 = scalar_select %p47_p1, %s1358_s11, %s49_s16  }
   0x9   : > { %p1422_p5 = por %p60_p2, %p59_p0  ;;  %p1426_p6 = por %p66_p4, %p65_p3 }
   0xa   : > { %p1237_p7 = scmp.ge.s32.totalorder %s1362_s12, 1  ;;  %p117_p8 = scmp.lt.s32.totalorder %s1362_s12, 3 }
   0xc   : > { %p118_p9 = pnand %p1237_p7, %p117_p8 }
   0xd   : > { %p142_p10 = scmp.lt.s32.totalorder (!%p118_p9), %s1405_s13, 1  ;;  %s1365_s30 = smov (!%p118_p9), 1  }
   0xe   : > { %121 = sbr.rel (%p118_p9) target bundleno = 9637 (0x25a5), region = 24  ;;  %s1366_s3 = smov (!%p118_p9), 2  }
   0xf   : > { %s133_s4 = sand.u32 (!%p118_p9), 1, %s1354_s10   ;;  %s1246_s6 = smul.u32 (!%p118_p9), 24, %s1405_s13 }
  0x10   : > { %s1245_s5 = smul.u32 (!%p118_p9), 24, %s133_s4 }
  0x12   : > { %s135_s14 = scalar_lea.vmem (!%p118_p9), [#allocation2], %s1245_s5 }
  0x13   : > { %v1364_v0 = vmov 0   ;;  %s1434_s21 = scalar_select %p142_p10, %s1405_s13, 1  ;;  %vm187_vm0 = vcmask 1040384   ;;  %v153_v16 = vlaneseq }
  0x14   : > { %1291 = vset.pattern.permute.xlu0 %v1364_v0  ;;  %1292 = vset.pattern.permute.xlu1 %v1364_v0  ;;  %s1141_s13 = scalar_lea.hbm %s2155_s1, %s1246_s6  ;;  %s1142_s16 = sshll.u32 %s135_s14, 4  ;;  %s1143_s16 = int_to_ptr.vmem [resolvable:$true] %s1142_s16 }
  0x15   : > { %1293 = vset.pattern.permute.xlu2 %v1364_v0  ;;  %s1238_s22 = sshll.u32 %s1434_s21, 2  ;;  %v1459_v17 = vand.u32 127, %v153_v16  ;;  %s1239_s26 = sshll.u32 %s1434_s21, 3 }
  0x16   : > { %s1440_s25 = scalar_lea.vmem %s2154_s0, %s1238_s22  ;;  %s1669_s29 = scalar_lea.vmem %s2156_s2, %s1239_s26 }
  0x17   : > { %v1443_v1 = vld [vmem:[%s1440_s25] sm:$0x1]  ;;  %v1447_v2 = vld [vmem:[%s1440_s25 + $0x2] sm:$0x1]  ;;  %v1451_v3 = vld [vmem:[%s1440_s25 + $0x1] sm:$0x1] }
  0x18   : > { %159 = vperm.xlu0 %1291, %v1443_v1   ;;  %171 = vperm.xlu1 %1292, %v1447_v2   ;;  %s1144_s17 = sshll.u32 %s1141_s13, 4  ;;  %s1126_s21 = scalar_lea.sflag [#allocation3], %s133_s4  ;;  %s1145_s17 = int_to_ptr.hbm [resolvable:$true] %s1144_s17 }
  0x19   : > { %s1314_s22 = sshra.s32 %s1145_s17, 4  ;;  %s1320_s26 = scalar_lea.hbm %s2155_s1, 48  ;;  %s1315_s22 = int_to_ptr.hbm [resolvable:$true] %s1314_s22 }
  0x1a   : > { %s1316_s23 = scalar_lea.hbm %s1315_s22, 24  ;;  %p1321_p0 = scmp.lt.s32.totalorder %s1315_s22, %s2155_s1 }
  0x1b   : > { %p1317_p11 = scmp.ne.s32.totalorder %s1315_s22, %s1316_s23  ;;  %p1322_p1 = scmp.lt.s32.totalorder %s1320_s26, %s1316_s23 }
  0x1d   : > { %p1318_p12 = pnand %p1317_p11, %p1422_p5  ;;  %p1323_p2 = por %p1322_p1, %p1321_p0 }
  0x1f   : > { %p1319_p13 = pneg %p1318_p12 }
  0x20   : > { %165 = vperm.xlu0 %1291, %v1451_v3  }
  0x21   : > { %p1324_p3 = pnand %p1323_p2, %p1319_p13 }
  0x8a   : > { %v160_v4 = vpop.permute.xlu0 %159  ;;  %v172_v5 = vpop.permute.xlu1 %171 }
  0x8b   : > { %v162_v6 = vsub.f32 %v1443_v1, %v160_v4  ;;  %v174_v7 = vsub.f32 %v1447_v2, %v172_v5 }
  0x8d   : > { %v175_v10 = vmul.f32 %v162_v6, %v162_v6  ;;  %v178_v12 = vmul.f32 %v174_v7, %v174_v7 }
  0x92   : > { %v166_v8 = vpop.permute.xlu0 %165 }
  0x93   : > { %v168_v9 = vsub.f32 %v1451_v3, %v166_v8 }
  0x95   : > { %v176_v11 = vmul.f32 %v168_v9, %v168_v9 }
  0x97   : > { %v177_v13 = vadd.f32 %v176_v11, %v175_v10 }
  0x99   : > { %v179_v14 = vadd.f32 %v178_v12, %v177_v13 }
  0x9b   : > { %v188_v15 = vsel %vm187_vm0, %v179_v14, -inf }
  0x9c   : > { %189 = vmax.xlane.f32.xlu1 %v188_v15 }
 0x10f   : > { %v190_v18 = vpop.xlane.xlu1 %189 }
 0x110   : > { %vm191_vm1 = vcmp.eq.f32.partialorder %v179_v14, %v190_v18 }
 0x111   : > { %v192_v19 = vsel %vm191_vm1, %v1459_v17, 128 }
 0x112   : > { %v193_v20 = vsel %vm187_vm0, %v192_v19, 2147483647 }
 0x113   : > { %v195_v21 = vshra.s32 %v193_v20, 16  ;;  %v194_v23 = vand.u32 65535, %v193_v20 }
 0x115   : > { %v197_v22 = vcvt.s32.f32 %v195_v21  ;;  %v196_v25 = vcvt.s32.f32 %v194_v23 }
 0x117   : > { %198 = vmin.xlane.f32.xlu2 %v197_v22 }
 0x18a   : > { %v199_v24 = vpop.xlane.xlu2 %198 }
 0x18b   : > { %vm200_vm2 = vcmp.eq.f32.partialorder %v197_v22, %v199_v24  ;;  %v205_v27 = vcvt.f32.s32 %v199_v24 }
 0x18c   : > { %v201_v26 = vsel %vm200_vm2, %v196_v25, inf }
 0x18d   : > { %202 = vmin.xlane.f32.xlu2 %v201_v26  ;;  %v206_v29 = vshll.u32 %v205_v27, 16 }
 0x200   : > { %v203_v28 = vpop.xlane.xlu2 %202 }
 0x201   : > { %v204_v30 = vcvt.f32.s32 %v203_v28 }
 0x203   : > { %v207_v31 = vadd.s32 %v206_v29, %v204_v30 }
 0x205   : > { %vm208_vm3 = vcmp.eq.s32.totalorder %v1459_v17, %v207_v31 }
 0x206   : > { %v213_v32 = vsel %vm208_vm3, %v1451_v3, 0.0  ;;  %v209_v33 = vsel %vm208_vm3, %v1443_v1, 0.0  ;;  %v217_v36 = vsel %vm208_vm3, %v1447_v2, 0.0 }
 0x207   : > { %v214_v34 = vsel %vm187_vm0, %v213_v32, 0.0  ;;  %v210_v35 = vsel %vm187_vm0, %v209_v33, 0.0  ;;  %v218_v37 = vsel %vm187_vm0, %v217_v36, 0.0 }
 0x208   : > { %215 = vadd.xlane.f32.xlu2 %v214_v34  ;;  %211 = vadd.xlane.f32.xlu0 %v210_v35 }
 0x210   : > { %219 = vadd.xlane.f32.xlu2 %v218_v37 }
 0x27b   : > { %v1470_v38 = vpop.xlane.xlu2 %215  ;;  %v1472_v39 = vpop.xlane.xlu0 %211 }
 0x27c   : > { %v229_v40 = vsub.f32 %v1451_v3, %v1470_v38  ;;  %v228_v41 = vsub.f32 %v1443_v1, %v1472_v39 }
 0x27e   : > { %v232_v42 = vmul.f32 %v229_v40, %v229_v40  ;;  %v231_v43 = vmul.f32 %v228_v41, %v228_v41 }
 0x280   : > { %v233_v46 = vadd.f32 %v232_v42, %v231_v43 }
 0x283   : > { %v1478_v44 = vpop.xlane.xlu2 %219 }
 0x284   : > { %v230_v45 = vsub.f32 %v1447_v2, %v1478_v44 }
 0x286   : > { %v234_v47 = vmul.f32 %v230_v45, %v230_v45 }
 0x288   : > { %v235_v48 = vadd.f32 %v234_v47, %v233_v46 }
 0x28a   : > { %v236_v49 = vmin.f32 %v179_v14, %v235_v48 }
 0x28c   : > { %v237_v50 = vsel %vm187_vm0, %v236_v49, -inf }
 0x28d   : > { %238 = vmax.xlane.f32.xlu2 %v237_v50 }
 0x300   : > { %v239_v51 = vpop.xlane.xlu2 %238 }
 0x301   : > { %vm240_vm4 = vcmp.eq.f32.partialorder %v236_v49, %v239_v51 }
 0x302   : > { %v241_v52 = vsel %vm240_vm4, %v1459_v17, 128 }
 0x303   : > { %v242_v53 = vsel %vm187_vm0, %v241_v52, 2147483647 }
 0x304   : > { %v244_v54 = vshra.s32 %v242_v53, 16  ;;  %v243_v56 = vand.u32 65535, %v242_v53 }
 0x306   : > { %v246_v55 = vcvt.s32.f32 %v244_v54  ;;  %v245_v58 = vcvt.s32.f32 %v243_v56 }
 0x308   : > { %247 = vmin.xlane.f32.xlu2 %v246_v55 }
 0x37b   : > { %v248_v57 = vpop.xlane.xlu2 %247 }
 0x37c   : > { %vm249_vm5 = vcmp.eq.f32.partialorder %v246_v55, %v248_v57  ;;  %v254_v60 = vcvt.f32.s32 %v248_v57 }
 0x37d   : > { %v250_v59 = vsel %vm249_vm5, %v245_v58, inf }
 0x37e   : > { %251 = vmin.xlane.f32.xlu2 %v250_v59  ;;  %v255_v62 = vshll.u32 %v254_v60, 16 }
 0x3f1   : > { %v252_v61 = vpop.xlane.xlu2 %251 }
 0x3f2   : > { %v253_v63 = vcvt.f32.s32 %v252_v61 }
 0x3f4   : > { %v256_v0 = vadd.s32 %v255_v62, %v253_v63 }
 0x3f6   : > { %vm257_vm6 = vcmp.eq.s32.totalorder %v1459_v17, %v256_v0 }
 0x3f7   : > { %v266_v4 = vsel %vm257_vm6, %v1447_v2, 0.0  ;;  %v262_v5 = vsel %vm257_vm6, %v1451_v3, 0.0  ;;  %v258_v6 = vsel %vm257_vm6, %v1443_v1, 0.0 }
 0x3f8   : > { %v267_v7 = vsel %vm187_vm0, %v266_v4, 0.0  ;;  %v263_v8 = vsel %vm187_vm0, %v262_v5, 0.0  ;;  %v259_v9 = vsel %vm187_vm0, %v258_v6, 0.0 }
 0x3f9   : > { %268 = vadd.xlane.f32.xlu0 %v267_v7  ;;  %264 = vadd.xlane.f32.xlu2 %v263_v8 }
 0x3fa   : > { %260 = vadd.xlane.f32.xlu1 %v259_v9 }
 0x46c   : > { %v1492_v10 = vpop.xlane.xlu0 %268  ;;  %v1494_v11 = vpop.xlane.xlu2 %264 }
 0x46d   : > { %v278_v12 = vsub.f32 %v1451_v3, %v1494_v11  ;;  %v1498_v13 = vpop.xlane.xlu1 %260  ;;  %v279_v14 = vsub.f32 %v1447_v2, %v1492_v10 }
 0x46e   : > { %v277_v15 = vsub.f32 %v1443_v1, %v1498_v13 }
 0x46f   : > { %v281_v18 = vmul.f32 %v278_v12, %v278_v12  ;;  %v283_v20 = vmul.f32 %v279_v14, %v279_v14 }
 0x470   : > { %v280_v19 = vmul.f32 %v277_v15, %v277_v15 }
 0x472   : > { %v282_v21 = vadd.f32 %v281_v18, %v280_v19 }
 0x474   : > { %v284_v22 = vadd.f32 %v283_v20, %v282_v21 }
 0x476   : > { %v285_v23 = vmin.f32 %v236_v49, %v284_v22 }
 0x478   : > { %v286_v24 = vsel %vm187_vm0, %v285_v23, -inf }
 0x479   : > { %287 = vmax.xlane.f32.xlu1 %v286_v24 }
 0x4ec   : > { %v288_v25 = vpop.xlane.xlu1 %287 }
 0x4ed   : > { %vm289_vm7 = vcmp.eq.f32.partialorder %v285_v23, %v288_v25 }
 0x4ee   : > { %v290_v26 = vsel %vm289_vm7, %v1459_v17, 128 }
 0x4ef   : > { %v291_v27 = vsel %vm187_vm0, %v290_v26, 2147483647 }
 0x4f0   : > { %v293_v28 = vshra.s32 %v291_v27, 16  ;;  %v292_v30 = vand.u32 65535, %v291_v27 }
 0x4f2   : > { %v295_v29 = vcvt.s32.f32 %v293_v28  ;;  %v294_v32 = vcvt.s32.f32 %v292_v30 }
 0x4f4   : > { %296 = vmin.xlane.f32.xlu2 %v295_v29 }
 0x567   : > { %v297_v31 = vpop.xlane.xlu2 %296 }
 0x568   : > { %vm298_vm8 = vcmp.eq.f32.partialorder %v295_v29, %v297_v31  ;;  %v303_v34 = vcvt.f32.s32 %v297_v31 }
 0x569   : > { %v299_v33 = vsel %vm298_vm8, %v294_v32, inf }
 0x56a   : > { %300 = vmin.xlane.f32.xlu0 %v299_v33  ;;  %v304_v36 = vshll.u32 %v303_v34, 16 }
 0x5dd   : > { %v301_v35 = vpop.xlane.xlu0 %300 }
 0x5de   : > { %v302_v37 = vcvt.f32.s32 %v301_v35 }
 0x5e0   : > { %v305_v40 = vadd.s32 %v304_v36, %v302_v37 }
 0x5e2   : > { %vm306_vm9 = vcmp.eq.s32.totalorder %v1459_v17, %v305_v40 }
 0x5e3   : > { %v315_v41 = vsel %vm306_vm9, %v1447_v2, 0.0  ;;  %v311_v42 = vsel %vm306_vm9, %v1451_v3, 0.0  ;;  %v307_v43 = vsel %vm306_vm9, %v1443_v1, 0.0 }
 0x5e4   : > { %v316_v45 = vsel %vm187_vm0, %v315_v41, 0.0  ;;  %v312_v46 = vsel %vm187_vm0, %v311_v42, 0.0  ;;  %v308_v47 = vsel %vm187_vm0, %v307_v43, 0.0 }
 0x5e5   : > { %317 = vadd.xlane.f32.xlu0 %v316_v45  ;;  %313 = vadd.xlane.f32.xlu2 %v312_v46 }
 0x5e6   : > { %309 = vadd.xlane.f32.xlu1 %v308_v47 }
 0x658   : > { %v1514_v48 = vpop.xlane.xlu0 %317  ;;  %v1516_v49 = vpop.xlane.xlu2 %313 }
 0x659   : > { %v327_v50 = vsub.f32 %v1451_v3, %v1516_v49  ;;  %v1520_v51 = vpop.xlane.xlu1 %309  ;;  %v328_v52 = vsub.f32 %v1447_v2, %v1514_v48 }
 0x65a   : > { %v326_v53 = vsub.f32 %v1443_v1, %v1520_v51 }
 0x65b   : > { %v330_v54 = vmul.f32 %v327_v50, %v327_v50  ;;  %v332_v56 = vmul.f32 %v328_v52, %v328_v52 }
 0x65c   : > { %v329_v55 = vmul.f32 %v326_v53, %v326_v53 }
 0x65e   : > { %v331_v57 = vadd.f32 %v330_v54, %v329_v55 }
 0x660   : > { %v333_v58 = vadd.f32 %v332_v56, %v331_v57 }
 0x662   : > { %v334_v59 = vmin.f32 %v285_v23, %v333_v58 }
 0x664   : > { %v335_v60 = vsel %vm187_vm0, %v334_v59, -inf }
 0x665   : > { %336 = vmax.xlane.f32.xlu1 %v335_v60 }
 0x6d8   : > { %v337_v61 = vpop.xlane.xlu1 %336 }
 0x6d9   : > { %vm338_vm10 = vcmp.eq.f32.partialorder %v334_v59, %v337_v61 }
 0x6da   : > { %v339_v62 = vsel %vm338_vm10, %v1459_v17, 128 }
 0x6db   : > { %v340_v63 = vsel %vm187_vm0, %v339_v62, 2147483647 }
 0x6dc   : > { %v342_v0 = vshra.s32 %v340_v63, 16  ;;  %v341_v5 = vand.u32 65535, %v340_v63 }
 0x6de   : > { %v344_v4 = vcvt.s32.f32 %v342_v0  ;;  %v343_v7 = vcvt.s32.f32 %v341_v5 }
 0x6e0   : > { %345 = vmin.xlane.f32.xlu2 %v344_v4 }
 0x753   : > { %v346_v6 = vpop.xlane.xlu2 %345 }
 0x754   : > { %vm347_vm11 = vcmp.eq.f32.partialorder %v344_v4, %v346_v6  ;;  %v352_v9 = vcvt.f32.s32 %v346_v6 }
 0x755   : > { %v348_v8 = vsel %vm347_vm11, %v343_v7, inf }
 0x756   : > { %349 = vmin.xlane.f32.xlu0 %v348_v8  ;;  %v353_v14 = vshll.u32 %v352_v9, 16 }
 0x7c9   : > { %v350_v12 = vpop.xlane.xlu0 %349 }
 0x7ca   : > { %v351_v15 = vcvt.f32.s32 %v350_v12 }
 0x7cc   : > { %v354_v18 = vadd.s32 %v353_v14, %v351_v15 }
 0x7ce   : > { %vm355_vm12 = vcmp.eq.s32.totalorder %v1459_v17, %v354_v18 }
 0x7cf   : > { %v364_v19 = vsel %vm355_vm12, %v1447_v2, 0.0  ;;  %v360_v20 = vsel %vm355_vm12, %v1451_v3, 0.0  ;;  %v356_v21 = vsel %vm355_vm12, %v1443_v1, 0.0 }
 0x7d0   : > { %v365_v22 = vsel %vm187_vm0, %v364_v19, 0.0  ;;  %v361_v23 = vsel %vm187_vm0, %v360_v20, 0.0  ;;  %v357_v24 = vsel %vm187_vm0, %v356_v21, 0.0 }
 0x7d1   : > { %366 = vadd.xlane.f32.xlu0 %v365_v22  ;;  %362 = vadd.xlane.f32.xlu2 %v361_v23 }
 0x7d2   : > { %358 = vadd.xlane.f32.xlu1 %v357_v24 }
 0x844   : > { %v1536_v25 = vpop.xlane.xlu0 %366  ;;  %v1538_v26 = vpop.xlane.xlu2 %362 }
 0x845   : > { %v376_v27 = vsub.f32 %v1451_v3, %v1538_v26  ;;  %v1542_v28 = vpop.xlane.xlu1 %358  ;;  %v377_v29 = vsub.f32 %v1447_v2, %v1536_v25 }
 0x846   : > { %v375_v30 = vsub.f32 %v1443_v1, %v1542_v28 }
 0x847   : > { %v379_v31 = vmul.f32 %v376_v27, %v376_v27  ;;  %v381_v33 = vmul.f32 %v377_v29, %v377_v29 }
 0x848   : > { %v378_v32 = vmul.f32 %v375_v30, %v375_v30 }
 0x84a   : > { %v380_v34 = vadd.f32 %v379_v31, %v378_v32 }
 0x84c   : > { %v382_v35 = vadd.f32 %v381_v33, %v380_v34 }
 0x84e   : > { %v383_v36 = vmin.f32 %v334_v59, %v382_v35 }
 0x850   : > { %v384_v37 = vsel %vm187_vm0, %v383_v36, -inf }
 0x851   : > { %385 = vmax.xlane.f32.xlu1 %v384_v37 }
 0x8c4   : > { %v386_v40 = vpop.xlane.xlu1 %385 }
 0x8c5   : > { %vm387_vm13 = vcmp.eq.f32.partialorder %v383_v36, %v386_v40 }
 0x8c6   : > { %v388_v41 = vsel %vm387_vm13, %v1459_v17, 128 }
 0x8c7   : > { %v389_v42 = vsel %vm187_vm0, %v388_v41, 2147483647 }
 0x8c8   : > { %v391_v43 = vshra.s32 %v389_v42, 16  ;;  %v390_v46 = vand.u32 65535, %v389_v42 }
 0x8ca   : > { %v393_v45 = vcvt.s32.f32 %v391_v43  ;;  %v392_v50 = vcvt.s32.f32 %v390_v46 }
 0x8cc   : > { %394 = vmin.xlane.f32.xlu2 %v393_v45 }
 0x93f   : > { %v395_v47 = vpop.xlane.xlu2 %394 }
 0x940   : > { %vm396_vm14 = vcmp.eq.f32.partialorder %v393_v45, %v395_v47  ;;  %v401_v53 = vcvt.f32.s32 %v395_v47 }
 0x941   : > { %v397_v52 = vsel %vm396_vm14, %v392_v50, inf  ;;  %vm522_vm14 = vcmask 7168  }
 0x942   : > { %398 = vmin.xlane.f32.xlu0 %v397_v52  ;;  %v402_v55 = vshll.u32 %v401_v53, 16 }
 0x9b5   : > { %v399_v54 = vpop.xlane.xlu0 %398 }
 0x9b6   : > { %v400_v56 = vcvt.f32.s32 %v399_v54 }
 0x9b8   : > { %v403_v57 = vadd.s32 %v402_v55, %v400_v56 }
 0x9ba   : > { %vm404_vm15 = vcmp.eq.s32.totalorder %v1459_v17, %v403_v57 }
 0x9bb   : > { %v413_v58 = vsel %vm404_vm15, %v1447_v2, 0.0  ;;  %v409_v59 = vsel %vm404_vm15, %v1451_v3, 0.0  ;;  %v405_v60 = vsel %vm404_vm15, %v1443_v1, 0.0 }
 0x9bc   : > { %v414_v61 = vsel %vm187_vm0, %v413_v58, 0.0  ;;  %v410_v62 = vsel %vm187_vm0, %v409_v59, 0.0  ;;  %v406_v63 = vsel %vm187_vm0, %v405_v60, 0.0 }
 0x9bd   : > { %415 = vadd.xlane.f32.xlu0 %v414_v61  ;;  %411 = vadd.xlane.f32.xlu2 %v410_v62 }
 0x9be   : > { %407 = vadd.xlane.f32.xlu1 %v406_v63 }
 0xa30   : > { %v1558_v0 = vpop.xlane.xlu0 %415  ;;  %v1560_v4 = vpop.xlane.xlu2 %411 }
 0xa31   : > { %v425_v5 = vsub.f32 %v1451_v3, %v1560_v4  ;;  %v1564_v6 = vpop.xlane.xlu1 %407  ;;  %v426_v7 = vsub.f32 %v1447_v2, %v1558_v0 }
 0xa32   : > { %v424_v8 = vsub.f32 %v1443_v1, %v1564_v6 }
 0xa33   : > { %v428_v9 = vmul.f32 %v425_v5, %v425_v5  ;;  %v430_v14 = vmul.f32 %v426_v7, %v426_v7 }
 0xa34   : > { %v427_v12 = vmul.f32 %v424_v8, %v424_v8 }
 0xa36   : > { %v429_v15 = vadd.f32 %v428_v9, %v427_v12 }
 0xa38   : > { %v431_v18 = vadd.f32 %v430_v14, %v429_v15 }
 0xa3a   : > { %v432_v19 = vmin.f32 %v383_v36, %v431_v18 }
 0xa3c   : > { %v433_v20 = vsel %vm187_vm0, %v432_v19, -inf }
 0xa3d   : > { %434 = vmax.xlane.f32.xlu1 %v433_v20 }
 0xab0   : > { %v435_v21 = vpop.xlane.xlu1 %434 }
 0xab1   : > { %vm436_vm1 = vcmp.eq.f32.partialorder %v432_v19, %v435_v21 }
 0xab2   : > { %v437_v22 = vsel %vm436_vm1, %v1459_v17, 128 }
 0xab3   : > { %v438_v23 = vsel %vm187_vm0, %v437_v22, 2147483647 }
 0xab4   : > { %v440_v24 = vshra.s32 %v438_v23, 16  ;;  %v439_v29 = vand.u32 65535, %v438_v23 }
 0xab6   : > { %v442_v27 = vcvt.s32.f32 %v440_v24  ;;  %v441_v31 = vcvt.s32.f32 %v439_v29 }
 0xab8   : > { %443 = vmin.xlane.f32.xlu2 %v442_v27 }
 0xb2b   : > { %v444_v30 = vpop.xlane.xlu2 %443 }
 0xb2c   : > { %vm445_vm2 = vcmp.eq.f32.partialorder %v442_v27, %v444_v30  ;;  %v450_v33 = vcvt.f32.s32 %v444_v30 }
 0xb2d   : > { %v446_v32 = vsel %vm445_vm2, %v441_v31, inf }
 0xb2e   : > { %447 = vmin.xlane.f32.xlu0 %v446_v32  ;;  %v451_v35 = vshll.u32 %v450_v33, 16  ;;  %v1603_v33 = vshrl.u32 %v153_v16, 7 }
 0xb30   : > { %vm180_vm7 = vcmp.eq.s32.totalorder %v1603_v33, 0  ;;  %vm221_vm8 = vcmp.eq.s32.totalorder %v1603_v33, 1  ;;  %vm319_vm9 = vcmp.eq.s32.totalorder %v1603_v33, 3  ;;  %vm368_vm10 = vcmp.eq.s32.totalorder %v1603_v33, 4 }
 0xb31   : > { %vm417_vm11 = vcmp.eq.s32.totalorder %v1603_v33, 5  ;;  %vm466_vm12 = vcmp.eq.s32.totalorder %v1603_v33, 6  ;;  %vm515_vm13 = vcmp.eq.s32.totalorder %v1603_v33, 7 }
 0xba1   : > { %v448_v34 = vpop.xlane.xlu0 %447 }
 0xba2   : > { %v449_v36 = vcvt.f32.s32 %v448_v34  ;;  %v1606_v34 = vld [vmem:[%s1440_s25 + $0x1] ss:$0 sm:$0xff] }
 0xba4   : > { %v452_v37 = vadd.s32 %v451_v35, %v449_v36  ;;  %v1609_v35 = vld [vmem:[%s1440_s25 + $0x2] ss:$0 sm:$0xff]  ;;  %v184_v36 = vsel %vm180_vm7, %v1606_v34, 0.0 }
 0xba5   : > { %v186_v16 = vsel %vm180_vm7, %v1609_v35, 0.0 }
 0xba6   : > { %vm453_vm3 = vcmp.eq.s32.totalorder %v1459_v17, %v452_v37  ;;  %v222_v37 = vperm.slane %v1472_v39, 0  ;;  %v324_v39 = vperm.slane %v1514_v48, 0  ;;  %v422_v48 = vperm.slane %v1558_v0, 0 }
 0xba7   : > { %v462_v40 = vsel %vm453_vm3, %v1447_v2, 0.0  ;;  %v458_v41 = vsel %vm453_vm3, %v1451_v3, 0.0  ;;  %v454_v42 = vsel %vm453_vm3, %v1443_v1, 0.0 }
 0xba8   : > { %v463_v43 = vsel %vm187_vm0, %v462_v40, 0.0  ;;  %v459_v45 = vsel %vm187_vm0, %v458_v41, 0.0  ;;  %v455_v46 = vsel %vm187_vm0, %v454_v42, 0.0  ;;  %v275_v40 = vperm.slane %v1492_v10, 0 }
 0xba9   : > { %464 = vadd.xlane.f32.xlu0 %v463_v43  ;;  %460 = vadd.xlane.f32.xlu2 %v459_v45  ;;  %v273_v42 = vperm.slane %v1494_v11, 0  ;;  %v373_v11 = vperm.slane %v1536_v25, 0 }
 0xbaa   : > { %456 = vadd.xlane.f32.xlu1 %v455_v46 }
 0xc1c   : > { %v1580_v47 = vpop.xlane.xlu0 %464  ;;  %v1582_v50 = vpop.xlane.xlu2 %460 }
 0xc1d   : > { %v474_v52 = vsub.f32 %v1451_v3, %v1582_v50  ;;  %v1586_v53 = vpop.xlane.xlu1 %456  ;;  %v475_v54 = vsub.f32 %v1447_v2, %v1580_v47 }
 0xc1e   : > { %v473_v55 = vsub.f32 %v1443_v1, %v1586_v53  ;;  %v467_v0 = vperm.slane %v1586_v53, 0 }
 0xc1f   : > { %v477_v56 = vmul.f32 %v474_v52, %v474_v52  ;;  %v479_v58 = vmul.f32 %v475_v54, %v475_v54  ;;  %v322_v52 = vperm.slane %v1516_v49, 0  ;;  %v320_v54 = vperm.slane %v1520_v51, 0 }
 0xc20   : > { %v476_v57 = vmul.f32 %v473_v55, %v473_v55  ;;  %v369_v55 = vperm.slane %v1542_v28, 0 }
 0xc22   : > { %v478_v59 = vadd.f32 %v477_v56, %v476_v57  ;;  %v420_v56 = vperm.slane %v1560_v4, 0  ;;  %v418_v57 = vperm.slane %v1564_v6, 0 }
 0xc24   : > { %v480_v60 = vadd.f32 %v479_v58, %v478_v59  ;;  %v471_v58 = vperm.slane %v1580_v47, 0  ;;  %v469_v59 = vperm.slane %v1582_v50, 0 }
 0xc26   : > { %v481_v61 = vmin.f32 %v432_v19, %v480_v60 }
 0xc28   : > { %v482_v62 = vsel %vm187_vm0, %v481_v61, -inf }
 0xc29   : > { %483 = vmax.xlane.f32.xlu1 %v482_v62 }
 0xc9c   : > { %v484_v63 = vpop.xlane.xlu1 %483 }
 0xc9d   : > { %vm485_vm4 = vcmp.eq.f32.partialorder %v481_v61, %v484_v63 }
 0xc9e   : > { %v486_v5 = vsel %vm485_vm4, %v1459_v17, 128 }
 0xc9f   : > { %v487_v7 = vsel %vm187_vm0, %v486_v5, 2147483647 }
 0xca0   : > { %v489_v8 = vshra.s32 %v487_v7, 16  ;;  %v488_v12 = vand.u32 65535, %v487_v7 }
 0xca2   : > { %v491_v9 = vcvt.s32.f32 %v489_v8  ;;  %v490_v15 = vcvt.s32.f32 %v488_v12 }
 0xca4   : > { %492 = vmin.xlane.f32.xlu2 %v491_v9 }
 0xd17   : > { %v493_v14 = vpop.xlane.xlu2 %492 }
 0xd18   : > { %vm494_vm5 = vcmp.eq.f32.partialorder %v491_v9, %v493_v14  ;;  %v499_v20 = vcvt.f32.s32 %v493_v14 }
 0xd19   : > { %v495_v18 = vsel %vm494_vm5, %v490_v15, inf }
 0xd1a   : > { %496 = vmin.xlane.f32.xlu0 %v495_v18  ;;  %v500_v21 = vshll.u32 %v499_v20, 16 }
 0xd8d   : > { %v497_v19 = vpop.xlane.xlu0 %496 }
 0xd8e   : > { %v498_v22 = vcvt.f32.s32 %v497_v19 }
 0xd90   : > { %v501_v23 = vadd.s32 %v500_v21, %v498_v22 }
 0xd92   : > { %vm502_vm6 = vcmp.eq.s32.totalorder %v1459_v17, %v501_v23 }
 0xd93   : > { %v511_v24 = vsel %vm502_vm6, %v1447_v2, 0.0  ;;  %v507_v27 = vsel %vm502_vm6, %v1451_v3, 0.0  ;;  %v503_v29 = vsel %vm502_vm6, %v1443_v1, 0.0  ;;  %v1612_v2 = vld [vmem:[%s1440_s25] ss:$0 sm:$0xff]  ;;  %v224_v1 = vperm.slane %v1470_v38, 0 }
 0xd94   : > { %v512_v30 = vsel %vm187_vm0, %v511_v24, 0.0  ;;  %v508_v31 = vsel %vm187_vm0, %v507_v27, 0.0  ;;  %v504_v32 = vsel %vm187_vm0, %v503_v29, 0.0  ;;  %v226_v3 = vperm.slane %v1478_v44, 0 }
 0xd95   : > { %513 = vadd.xlane.f32.xlu0 %v512_v30  ;;  %509 = vadd.xlane.f32.xlu2 %v508_v31  ;;  %v182_v41 = vsel %vm180_vm7, %v1612_v2, 0.0  ;;  %vm270_vm0 = vcmp.eq.s32.totalorder %v1603_v33, 2  ;;  %v225_v43 = vsel %vm221_vm8, %v224_v1, %v184_v36  ;;  %v271_v38 = vperm.slane %v1498_v13, 0 }
 0xd96   : > { %505 = vadd.xlane.f32.xlu1 %v504_v32  ;;  %v227_v45 = vsel %vm221_vm8, %v226_v3, %v186_v16  ;;  %v223_v46 = vsel %vm221_vm8, %v222_v37, %v182_v41  ;;  %v274_v10 = vsel %vm270_vm0, %v273_v42, %v225_v43  ;;  %v371_v13 = vperm.slane %v1538_v26, 0 }
 0xd97   : > { %v276_v44 = vsel %vm270_vm0, %v275_v40, %v227_v45  ;;  %v272_v49 = vsel %vm270_vm0, %v271_v38, %v223_v46  ;;  %v323_v25 = vsel %vm319_vm9, %v322_v52, %v274_v10 }
 0xd98   : > { %v325_v51 = vsel %vm319_vm9, %v324_v39, %v276_v44  ;;  %v321_v26 = vsel %vm319_vm9, %v320_v54, %v272_v49  ;;  %v372_v4 = vsel %vm368_vm10, %v371_v13, %v323_v25 }
 0xd99   : > { %v374_v28 = vsel %vm368_vm10, %v373_v11, %v325_v51  ;;  %v370_v6 = vsel %vm368_vm10, %v369_v55, %v321_v26  ;;  %v421_v53 = vsel %vm417_vm11, %v420_v56, %v372_v4 }
 0xd9a   : > { %v423_v47 = vsel %vm417_vm11, %v422_v48, %v374_v28  ;;  %v419_v5 = vsel %vm417_vm11, %v418_v57, %v370_v6  ;;  %v470_v9 = vsel %vm466_vm12, %v469_v59, %v421_v53 }
 0xd9b   : > { %v472_v8 = vsel %vm466_vm12, %v471_v58, %v423_v47  ;;  %v468_v15 = vsel %vm466_vm12, %v467_v0, %v419_v5 }
 0xe08   : > { %v514_v60 = vpop.xlane.xlu0 %513  ;;  %v510_v61 = vpop.xlane.xlu2 %509 }
 0xe09   : > { %v520_v50 = vperm.slane %v514_v60, 0  ;;  %v518_v62 = vperm.slane %v510_v61, 0  ;;  %v506_v63 = vpop.xlane.xlu1 %505 }
 0xe0a   : > { %v516_v7 = vperm.slane %v506_v63, 0 }
 0xe0b   : > { %v1673_v12 = vsel %vm515_vm13, %v520_v50, %v472_v8  ;;  %v1677_v14 = vsel %vm515_vm13, %v518_v62, %v470_v9 }
 0xe0c   : > { %548 = vperm.xlu0 %1291, %v1673_v12   ;;  %543 = vperm.xlu2 %1293, %v1677_v14   ;;  %v517_v18 = vsel %vm515_vm13, %v516_v7, %v468_v15 }
 0xe0d   : > { %538 = vperm.xlu1 %1292, %v517_v18   ;;  %523 = vst.msk [vmem:[%s1669_s29] sm:$0xff] %vm522_vm14, %v517_v18 }
 0xe66   : > { %v1686_v20 = vpop.permute.xlu2 %543 }
 0xe67   : > { %v546_v19 = vsub.f32 %v1686_v20, %v1606_v34 }
 0xe69   : > { %v553_v27 = vmul.f32 %v546_v19, %v546_v19 }
 0xe7e   : > { %v1690_v21 = vpop.permute.xlu0 %548 }
 0xe7f   : > { %v1692_v22 = vpop.permute.xlu1 %538  ;;  %v551_v23 = vsub.f32 %v1690_v21, %v1609_v35 }
 0xe80   : > { %v541_v24 = vsub.f32 %v1692_v22, %v1612_v2 }
 0xe81   : > { %v555_v30 = vmul.f32 %v551_v23, %v551_v23 }
 0xe82   : > { %v552_v29 = vmul.f32 %v541_v24, %v541_v24 }
 0xe84   : > { %v554_v31 = vadd.f32 %v553_v27, %v552_v29 }
 0xe86   : > { %v556_v32 = vadd.f32 %v555_v30, %v554_v31 }
 0xe88   : > { %557 = vmin.xlane.f32.xlu1 %v556_v32 }
 0xefb   : > { %v558_v33 = vpop.xlane.xlu1 %557 }
 0xefc   : > { %vm559_vm15 = vcmp.eq.f32.partialorder %v556_v32, %v558_v33 }
 0xefd   : > { %v560_v1 = vsel %vm559_vm15, %v1459_v17, 128 }
 0xefe   : > { %v562_v3 = vshra.s32 %v560_v1, 16  ;;  %v561_v37 = vand.u32 65535, %v560_v1 }
 0xf00   : > { %v564_v36 = vcvt.s32.f32 %v562_v3  ;;  %v563_v40 = vcvt.s32.f32 %v561_v37 }
 0xf02   : > { %565 = vmin.xlane.f32.xlu0 %v564_v36 }
 0xf75   : > { %v566_v16 = vpop.xlane.xlu0 %565 }
 0xf76   : > { %vm567_vm1 = vcmp.eq.f32.partialorder %v564_v36, %v566_v16  ;;  %v572_v42 = vcvt.f32.s32 %v566_v16 }
 0xf77   : > { %v568_v41 = vsel %vm567_vm1, %v563_v40, inf }
 0xf78   : > { %569 = vmin.xlane.f32.xlu2 %v568_v41  ;;  %v573_v45 = vshll.u32 %v572_v42, 16 }
 0xfeb   : > { %v570_v43 = vpop.xlane.xlu2 %569 }
 0xfec   : > { %v571_v38 = vcvt.f32.s32 %v570_v43 }
 0xfee   : > { %v1699_v46 = vadd.s32 %v573_v45, %v571_v38 }
 0xff0   : > { %vm575_vm2 = vcmp.eq.s32.totalorder %v1459_v17, %v1699_v46 }
 0xff1   : > { %v591_v44 = vsel %vm575_vm2, inf, %v556_v32 }
 0xff2   : > { %592 = vmin.xlane.f32.xlu1 %v591_v44 }
0x1065   : > { %v593_v39 = vpop.xlane.xlu1 %592 }
0x1066   : > { %vm594_vm3 = vcmp.eq.f32.partialorder %v591_v44, %v593_v39 }
0x1067   : > { %v595_v52 = vsel %vm594_vm3, %v1459_v17, 128 }
0x1068   : > { %v597_v10 = vshra.s32 %v595_v52, 16  ;;  %v596_v11 = vand.u32 65535, %v595_v52 }
0x106a   : > { %v599_v54 = vcvt.s32.f32 %v597_v10  ;;  %v598_v55 = vcvt.s32.f32 %v596_v11 }
0x106c   : > { %600 = vmin.xlane.f32.xlu0 %v599_v54 }
0x10df   : > { %v601_v13 = vpop.xlane.xlu0 %600 }
0x10e0   : > { %vm602_vm4 = vcmp.eq.f32.partialorder %v599_v54, %v601_v13  ;;  %v607_v49 = vcvt.f32.s32 %v601_v13 }
0x10e1   : > { %v603_v48 = vsel %vm602_vm4, %v598_v55, inf }
0x10e2   : > { %604 = vmin.xlane.f32.xlu2 %v603_v48  ;;  %v608_v57 = vshll.u32 %v607_v49, 16 }
0x1155   : > { %v605_v56 = vpop.xlane.xlu2 %604 }
0x1156   : > { %v606_v51 = vcvt.f32.s32 %v605_v56 }
0x1158   : > { %v1707_v25 = vadd.s32 %v608_v57, %v606_v51 }
0x115a   : > { %vm610_vm5 = vcmp.eq.s32.totalorder %v1459_v17, %v1707_v25 }
0x115b   : > { %v626_v58 = vsel %vm610_vm5, inf, %v591_v44 }
0x115c   : > { %627 = vmin.xlane.f32.xlu1 %v626_v58 }
0x11cf   : > { %v628_v59 = vpop.xlane.xlu1 %627 }
0x11d0   : > { %vm629_vm6 = vcmp.eq.f32.partialorder %v626_v58, %v628_v59 }
0x11d1   : > { %v630_v26 = vsel %vm629_vm6, %v1459_v17, 128 }
0x11d2   : > { %v632_v28 = vshra.s32 %v630_v26, 16  ;;  %v631_v4 = vand.u32 65535, %v630_v26 }
0x11d4   : > { %v634_v0 = vcvt.s32.f32 %v632_v28  ;;  %v633_v60 = vcvt.s32.f32 %v631_v4 }
0x11d6   : > { %635 = vmin.xlane.f32.xlu0 %v634_v0 }
0x1249   : > { %v636_v6 = vpop.xlane.xlu0 %635 }
0x124a   : > { %vm637_vm7 = vcmp.eq.f32.partialorder %v634_v0, %v636_v6  ;;  %v642_v47 = vcvt.f32.s32 %v636_v6 }
0x124b   : > { %v638_v61 = vsel %vm637_vm7, %v633_v60, inf }
0x124c   : > { %639 = vmin.xlane.f32.xlu2 %v638_v61  ;;  %v643_v62 = vshll.u32 %v642_v47, 16 }
0x12bf   : > { %v640_v50 = vpop.xlane.xlu2 %639 }
0x12c0   : > { %v641_v63 = vcvt.f32.s32 %v640_v50 }
0x12c2   : > { %v1715_v53 = vadd.s32 %v643_v62, %v641_v63 }
0x12c4   : > { %vm645_vm8 = vcmp.eq.s32.totalorder %v1459_v17, %v1715_v53 }
0x12c5   : > { %v661_v5 = vsel %vm645_vm8, inf, %v626_v58 }
0x12c6   : > { %662 = vmin.xlane.f32.xlu1 %v661_v5 }
0x1339   : > { %v663_v7 = vpop.xlane.xlu1 %662 }
0x133a   : > { %vm664_vm0 = vcmp.eq.f32.partialorder %v661_v5, %v663_v7 }
0x133b   : > { %v665_v8 = vsel %vm664_vm0, %v1459_v17, 128 }
0x133c   : > { %v667_v9 = vshra.s32 %v665_v8, 16  ;;  %v666_v18 = vand.u32 65535, %v665_v8 }
0x133e   : > { %v669_v15 = vcvt.s32.f32 %v667_v9  ;;  %v668_v23 = vcvt.s32.f32 %v666_v18 }
0x1340   : > { %670 = vmin.xlane.f32.xlu0 %v669_v15 }
0x13b3   : > { %v671_v19 = vpop.xlane.xlu0 %670 }
0x13b4   : > { %vm672_vm9 = vcmp.eq.f32.partialorder %v669_v15, %v671_v19  ;;  %v677_v27 = vcvt.f32.s32 %v671_v19 }
0x13b5   : > { %v673_v24 = vsel %vm672_vm9, %v668_v23, inf }
0x13b6   : > { %674 = vmin.xlane.f32.xlu2 %v673_v24  ;;  %v678_v30 = vshll.u32 %v677_v27, 16 }
0x1429   : > { %v675_v29 = vpop.xlane.xlu2 %674 }
0x142a   : > { %v676_v31 = vcvt.f32.s32 %v675_v29 }
0x142c   : > { %v1723_v32 = vadd.s32 %v678_v30, %v676_v31 }
0x142e   : > { %vm680_vm10 = vcmp.eq.s32.totalorder %v1459_v17, %v1723_v32 }
0x142f   : > { %v696_v33 = vsel %vm680_vm10, inf, %v661_v5 }
0x1430   : > { %697 = vmin.xlane.f32.xlu1 %v696_v33 }
0x14a3   : > { %v698_v1 = vpop.xlane.xlu1 %697 }
0x14a4   : > { %vm699_vm11 = vcmp.eq.f32.partialorder %v696_v33, %v698_v1 }
0x14a5   : > { %v700_v3 = vsel %vm699_vm11, %v1459_v17, 128 }
0x14a6   : > { %v702_v36 = vshra.s32 %v700_v3, 16  ;;  %v701_v16 = vand.u32 65535, %v700_v3 }
0x14a8   : > { %v704_v37 = vcvt.s32.f32 %v702_v36  ;;  %v703_v41 = vcvt.s32.f32 %v701_v16 }
0x14aa   : > { %705 = vmin.xlane.f32.xlu0 %v704_v37 }
0x151d   : > { %v706_v40 = vpop.xlane.xlu0 %705 }
0x151e   : > { %vm707_vm12 = vcmp.eq.f32.partialorder %v704_v37, %v706_v40  ;;  %v712_v43 = vcvt.f32.s32 %v706_v40 }
0x151f   : > { %v708_v42 = vsel %vm707_vm12, %v703_v41, inf }
0x1520   : > { %709 = vmin.xlane.f32.xlu2 %v708_v42  ;;  %v713_v38 = vshll.u32 %v712_v43, 16 }
0x1593   : > { %v710_v45 = vpop.xlane.xlu2 %709 }
0x1594   : > { %v711_v44 = vcvt.f32.s32 %v710_v45 }
0x1596   : > { %v1731_v39 = vadd.s32 %v713_v38, %v711_v44 }
0x1598   : > { %vm715_vm13 = vcmp.eq.s32.totalorder %v1459_v17, %v1731_v39 }
0x1599   : > { %v731_v52 = vsel %vm715_vm13, inf, %v696_v33 }
0x159a   : > { %732 = vmin.xlane.f32.xlu1 %v731_v52 }
0x160d   : > { %v733_v10 = vpop.xlane.xlu1 %732 }
0x160e   : > { %vm734_vm14 = vcmp.eq.f32.partialorder %v731_v52, %v733_v10 }
0x160f   : > { %v735_v54 = vsel %vm734_vm14, %v1459_v17, 128 }
0x1610   : > { %v737_v11 = vshra.s32 %v735_v54, 16  ;;  %v736_v55 = vand.u32 65535, %v735_v54 }
0x1612   : > { %v739_v13 = vcvt.s32.f32 %v737_v11  ;;  %v738_v49 = vcvt.s32.f32 %v736_v55 }
0x1614   : > { %740 = vmin.xlane.f32.xlu0 %v739_v13 }
0x1687   : > { %v741_v48 = vpop.xlane.xlu0 %740 }
0x1688   : > { %vm742_vm15 = vcmp.eq.f32.partialorder %v739_v13, %v741_v48  ;;  %v747_v57 = vcvt.f32.s32 %v741_v48 }
0x1689   : > { %v743_v56 = vsel %vm742_vm15, %v738_v49, inf }
0x168a   : > { %744 = vmin.xlane.f32.xlu2 %v743_v56  ;;  %v748_v58 = vshll.u32 %v747_v57, 16 }
0x16fd   : > { %v745_v51 = vpop.xlane.xlu2 %744 }
0x16fe   : > { %v746_v59 = vcvt.f32.s32 %v745_v51 }
0x1700   : > { %v1739_v26 = vadd.s32 %v748_v58, %v746_v59 }
0x1702   : > { %vm750_vm1 = vcmp.eq.s32.totalorder %v1459_v17, %v1739_v26 }
0x1703   : > { %v766_v28 = vsel %vm750_vm1, inf, %v731_v52  ;;  %v757_v46 = vsel %vm750_vm1, %v1609_v35, 0.0 }
0x1704   : > { %767 = vmin.xlane.f32.xlu1 %v766_v28 }
0x1777   : > { %v768_v0 = vpop.xlane.xlu1 %767 }
0x1778   : > { %vm769_vm3 = vcmp.eq.f32.partialorder %v766_v28, %v768_v0 }
0x1779   : > { %v770_v4 = vsel %vm769_vm3, %v1459_v17, 128 }
0x177a   : > { %v772_v6 = vshra.s32 %v770_v4, 16  ;;  %v771_v61 = vand.u32 65535, %v770_v4 }
0x177c   : > { %v774_v60 = vcvt.s32.f32 %v772_v6  ;;  %v773_v50 = vcvt.s32.f32 %v771_v61 }
0x177e   : > { %775 = vmin.xlane.f32.xlu0 %v774_v60 }
0x17f1   : > { %v776_v47 = vpop.xlane.xlu0 %775 }
0x17f2   : > { %vm777_vm4 = vcmp.eq.f32.partialorder %v774_v60, %v776_v47  ;;  %v782_v63 = vcvt.f32.s32 %v776_v47 }
0x17f3   : > { %v778_v62 = vsel %vm777_vm4, %v773_v50, inf }
0x17f4   : > { %779 = vmin.xlane.f32.xlu2 %v778_v62  ;;  %v783_v7 = vshll.u32 %v782_v63, 16 }
0x1867   : > { %v780_v5 = vpop.xlane.xlu2 %779 }
0x1868   : > { %v781_v8 = vcvt.f32.s32 %v780_v5 }
0x186a   : > { %v1747_v9 = vadd.s32 %v783_v7, %v781_v8 }
0x186c   : > { %vm785_vm6 = vcmp.eq.s32.totalorder %v1459_v17, %v1747_v9 }
0x186d   : > { %v801_v15 = vsel %vm785_vm6, inf, %v766_v28  ;;  %v789_v26 = vsel %vm785_vm6, %v1606_v34, 0.0 }
0x186e   : > { %802 = vmin.xlane.f32.xlu1 %v801_v15 }
0x18e1   : > { %v803_v18 = vpop.xlane.xlu1 %802 }
0x18e2   : > { %vm804_vm7 = vcmp.eq.f32.partialorder %v801_v15, %v803_v18 }
0x18e3   : > { %v805_v19 = vsel %vm804_vm7, %v1459_v17, 128 }
0x18e4   : > { %v807_v23 = vshra.s32 %v805_v19, 16  ;;  %v806_v27 = vand.u32 65535, %v805_v19 }
0x18e6   : > { %v809_v24 = vcvt.s32.f32 %v807_v23  ;;  %v808_v30 = vcvt.s32.f32 %v806_v27 }
0x18e8   : > { %810 = vmin.xlane.f32.xlu0 %v809_v24 }
0x195b   : > { %v811_v29 = vpop.xlane.xlu0 %810 }
0x195c   : > { %vm812_vm0 = vcmp.eq.f32.partialorder %v809_v24, %v811_v29  ;;  %v817_v33 = vcvt.f32.s32 %v811_v29 }
0x195d   : > { %v813_v31 = vsel %vm812_vm0, %v808_v30, inf }
0x195e   : > { %814 = vmin.xlane.f32.xlu2 %v813_v31  ;;  %v818_v3 = vshll.u32 %v817_v33, 16 }
0x19d1   : > { %v815_v1 = vpop.xlane.xlu2 %814 }
0x19d2   : > { %v816_v36 = vcvt.f32.s32 %v815_v1 }
0x19d4   : > { %v1755_v37 = vadd.s32 %v818_v3, %v816_v36 }
0x19d6   : > { %vm820_vm9 = vcmp.eq.s32.totalorder %v1459_v17, %v1755_v37 }
0x19d7   : > { %v836_v16 = vsel %vm820_vm9, inf, %v801_v15  ;;  %v821_v25 = vsel %vm820_vm9, %v1612_v2, 0.0 }
0x19d8   : > { %837 = vmin.xlane.f32.xlu1 %v836_v16 }
0x1a4b   : > { %v838_v40 = vpop.xlane.xlu1 %837 }
0x1a4c   : > { %vm839_vm11 = vcmp.eq.f32.partialorder %v836_v16, %v838_v40 }
0x1a4d   : > { %v840_v41 = vsel %vm839_vm11, %v1459_v17, 128 }
0x1a4e   : > { %v842_v42 = vshra.s32 %v840_v41, 16  ;;  %v841_v45 = vand.u32 65535, %v840_v41 }
0x1a50   : > { %v844_v43 = vcvt.s32.f32 %v842_v42  ;;  %v843_v44 = vcvt.s32.f32 %v841_v45 }
0x1a52   : > { %845 = vmin.xlane.f32.xlu0 %v844_v43 }
0x1ac5   : > { %v846_v38 = vpop.xlane.xlu0 %845 }
0x1ac6   : > { %vm847_vm12 = vcmp.eq.f32.partialorder %v844_v43, %v846_v38  ;;  %v852_v10 = vcvt.f32.s32 %v846_v38 }
0x1ac7   : > { %v848_v52 = vsel %vm847_vm12, %v843_v44, inf }
0x1ac8   : > { %849 = vmin.xlane.f32.xlu2 %v848_v52  ;;  %v853_v11 = vshll.u32 %v852_v10, 16 }
0x1b3b   : > { %v850_v54 = vpop.xlane.xlu2 %849 }
0x1b3c   : > { %v851_v13 = vcvt.f32.s32 %v850_v54 }
0x1b3e   : > { %v1763_v55 = vadd.s32 %v853_v11, %v851_v13 }
0x1b40   : > { %vm855_vm14 = vcmp.eq.s32.totalorder %v1459_v17, %v1763_v55 }
0x1b41   : > { %v871_v48 = vsel %vm855_vm14, inf, %v836_v16 }
0x1b42   : > { %872 = vmin.xlane.f32.xlu1 %v871_v48 }
0x1bb5   : > { %v873_v49 = vpop.xlane.xlu1 %872 }
0x1bb6   : > { %vm874_vm15 = vcmp.eq.f32.partialorder %v871_v48, %v873_v49 }
0x1bb7   : > { %v875_v56 = vsel %vm874_vm15, %v1459_v17, 128 }
0x1bb8   : > { %v877_v57 = vshra.s32 %v875_v56, 16  ;;  %v876_v58 = vand.u32 65535, %v875_v56 }
0x1bba   : > { %v879_v51 = vcvt.s32.f32 %v877_v57  ;;  %v878_v28 = vcvt.s32.f32 %v876_v58 }
0x1bbc   : > { %880 = vmin.xlane.f32.xlu0 %v879_v51 }
0x1c2f   : > { %v881_v59 = vpop.xlane.xlu0 %880 }
0x1c30   : > { %vm882_vm3 = vcmp.eq.f32.partialorder %v879_v51, %v881_v59  ;;  %v887_v4 = vcvt.f32.s32 %v881_v59 }
0x1c31   : > { %v883_v0 = vsel %vm882_vm3, %v878_v28, inf }
0x1c32   : > { %884 = vmin.xlane.f32.xlu2 %v883_v0  ;;  %v888_v60 = vshll.u32 %v887_v4, 16 }
0x1ca5   : > { %v885_v6 = vpop.xlane.xlu2 %884 }
0x1ca6   : > { %v886_v61 = vcvt.f32.s32 %v885_v6 }
0x1ca8   : > { %v1771_v47 = vadd.s32 %v888_v60, %v886_v61 }
0x1caa   : > { %vm890_vm4 = vcmp.eq.s32.totalorder %v1459_v17, %v1771_v47 }
0x1cab   : > { %v906_v50 = vsel %vm890_vm4, inf, %v871_v48  ;;  %v894_v37 = vsel %vm890_vm4, %v1606_v34, 0.0 }
0x1cac   : > { %907 = vmin.xlane.f32.xlu1 %v906_v50 }
0x1d1f   : > { %v908_v62 = vpop.xlane.xlu1 %907 }
0x1d20   : > { %vm909_vm7 = vcmp.eq.f32.partialorder %v906_v50, %v908_v62 }
0x1d21   : > { %v910_v63 = vsel %vm909_vm7, %v1459_v17, 128 }
0x1d22   : > { %v912_v5 = vshra.s32 %v910_v63, 16  ;;  %v911_v8 = vand.u32 65535, %v910_v63 }
0x1d24   : > { %v914_v7 = vcvt.s32.f32 %v912_v5  ;;  %v913_v18 = vcvt.s32.f32 %v911_v8 }
0x1d26   : > { %915 = vmin.xlane.f32.xlu0 %v914_v7 }
0x1d99   : > { %v916_v15 = vpop.xlane.xlu0 %915 }
0x1d9a   : > { %vm917_vm0 = vcmp.eq.f32.partialorder %v914_v7, %v916_v15  ;;  %v922_v23 = vcvt.f32.s32 %v916_v15 }
0x1d9b   : > { %v918_v19 = vsel %vm917_vm0, %v913_v18, inf }
0x1d9c   : > { %919 = vmin.xlane.f32.xlu2 %v918_v19  ;;  %v923_v27 = vshll.u32 %v922_v23, 16 }
0x1e0f   : > { %v920_v24 = vpop.xlane.xlu2 %919 }
0x1e10   : > { %v921_v29 = vcvt.f32.s32 %v920_v24 }
0x1e12   : > { %v1779_v30 = vadd.s32 %v923_v27, %v921_v29  ;;  %v576_v29 = vsel %vm575_vm2, %v1612_v2, 0.0 }
0x1e14   : > { %vm925_vm11 = vcmp.eq.s32.totalorder %v1459_v17, %v1779_v30 }
0x1e15   : > { %v941_v31 = vsel %vm925_vm11, inf, %v906_v50 }
0x1e16   : > { %942 = vmin.xlane.f32.xlu1 %v941_v31 }
0x1e89   : > { %v943_v33 = vpop.xlane.xlu1 %942 }
0x1e8a   : > { %vm944_vm12 = vcmp.eq.f32.partialorder %v941_v31, %v943_v33  ;;  %v614_v33 = vsel %vm610_vm5, %v1606_v34, 0.0 }
0x1e8b   : > { %v945_v1 = vsel %vm944_vm12, %v1459_v17, 128 }
0x1e8c   : > { %v947_v3 = vshra.s32 %v945_v1, 16  ;;  %v946_v16 = vand.u32 65535, %v945_v1  ;;  %v617_v1 = vsel %vm610_vm5, %v1609_v35, 0.0 }
0x1e8e   : > { %v949_v36 = vcvt.s32.f32 %v947_v3  ;;  %v948_v41 = vcvt.s32.f32 %v946_v16 }
0x1e90   : > { %950 = vmin.xlane.f32.xlu0 %v949_v36 }
0x1f03   : > { %v951_v40 = vpop.xlane.xlu0 %950 }
0x1f04   : > { %vm952_vm15 = vcmp.eq.f32.partialorder %v949_v36, %v951_v40  ;;  %v957_v43 = vcvt.f32.s32 %v951_v40 }
0x1f05   : > { %v953_v42 = vsel %vm952_vm15, %v948_v41, inf  ;;  %v579_v41 = vsel %vm575_vm2, %v1606_v34, 0.0 }
0x1f06   : > { %954 = vmin.xlane.f32.xlu2 %v953_v42  ;;  %v958_v38 = vshll.u32 %v957_v43, 16  ;;  %v681_v42 = vsel %vm680_vm10, %v1612_v2, 0.0  ;;  %v716_v43 = vsel %vm715_vm13, %v1612_v2, 0.0 }
0x1f79   : > { %v955_v45 = vpop.xlane.xlu2 %954 }
0x1f7a   : > { %v956_v44 = vcvt.f32.s32 %v955_v45  ;;  %v792_v45 = vsel %vm785_vm6, %v1609_v35, 0.0 }
0x1f7c   : > { %v1787_v52 = vadd.s32 %v958_v38, %v956_v44  ;;  %v827_v38 = vsel %vm820_vm9, %v1609_v35, 0.0 }
0x1f7e   : > { %vm960_vm3 = vcmp.eq.s32.totalorder %v1459_v17, %v1787_v52 }
0x1f7f   : > { %v976_v10 = vsel %vm960_vm3, inf, %v941_v31  ;;  %v582_v31 = vsel %vm575_vm2, %v1609_v35, 0.0 }
0x1f80   : > { %977 = vmin.xlane.f32.xlu1 %v976_v10 }
0x1ff3   : > { %v978_v54 = vpop.xlane.xlu1 %977 }
0x1ff4   : > { %vm979_vm7 = vcmp.eq.f32.partialorder %v976_v10, %v978_v54 }
0x1ff5   : > { %v980_v11 = vsel %vm979_vm7, %v1459_v17, 128 }
0x1ff6   : > { %v982_v13 = vshra.s32 %v980_v11, 16  ;;  %v981_v49 = vand.u32 65535, %v980_v11 }
0x1ff8   : > { %v984_v48 = vcvt.s32.f32 %v982_v13  ;;  %v983_v57 = vcvt.s32.f32 %v981_v49  ;;  %v862_v13 = vsel %vm855_vm14, %v1609_v35, 0.0  ;;  %v932_v49 = vsel %vm925_vm11, %v1609_v35, 0.0 }
0x1ffa   : > { %985 = vmin.xlane.f32.xlu0 %v984_v48 }
0x206d   : > { %v986_v56 = vpop.xlane.xlu0 %985 }
0x206e   : > { %vm987_vm0 = vcmp.eq.f32.partialorder %v984_v48, %v986_v56  ;;  %v992_v58 = vcvt.f32.s32 %v986_v56  ;;  %v897_v48 = vsel %vm890_vm4, %v1609_v35, 0.0 }
0x206f   : > { %v988_v51 = vsel %vm987_vm0, %v983_v57, inf  ;;  %v967_v57 = vsel %vm960_vm3, %v1609_v35, 0.0 }
0x2070   : > { %989 = vmin.xlane.f32.xlu2 %v988_v51  ;;  %v993_v28 = vshll.u32 %v992_v58, 16 }
0x20e3   : > { %v990_v59 = vpop.xlane.xlu2 %989 }
0x20e4   : > { %v991_v0 = vcvt.f32.s32 %v990_v59  ;;  %v611_v59 = vsel %vm610_vm5, %v1612_v2, 0.0 }
0x20e6   : > { %v1795_v4 = vadd.s32 %v993_v28, %v991_v0  ;;  %v751_v28 = vsel %vm750_vm1, %v1612_v2, 0.0  ;;  %v786_v0 = vsel %vm785_vm6, %v1612_v2, 0.0 }
0x20e8   : > { %vm2159_vm12 = vcmp.eq.s32.totalorder %v1459_v17, %v1795_v4 }
0x20e9   : > { %v1011_v6 = vsel %vm2159_vm12, inf, %v976_v10  ;;  %v1002_v51 = vsel %vm2159_vm12, %v1609_v35, 0.0  ;;  %vm865_vm12 = vcmp.eq.s32.totalorder %v1459_v17, 8 }
0x20ea   : > { %1012 = vmin.xlane.f32.xlu1 %v1011_v6 }
0x215d   : > { %v1013_v60 = vpop.xlane.xlu1 %1012 }
0x215e   : > { %vm1014_vm15 = vcmp.eq.f32.partialorder %v1011_v6, %v1013_v60 }
0x215f   : > { %v1015_v61 = vsel %vm1014_vm15, %v1459_v17, 128 }
0x2160   : > { %v1017_v50 = vshra.s32 %v1015_v61, 16  ;;  %v1016_v63 = vand.u32 65535, %v1015_v61  ;;  %v891_v61 = vsel %vm890_vm4, %v1612_v2, 0.0 }
0x2162   : > { %v1019_v62 = vcvt.s32.f32 %v1017_v50  ;;  %v1018_v7 = vcvt.s32.f32 %v1016_v63 }
0x2164   : > { %1020 = vmin.xlane.f32.xlu0 %v1019_v62 }
0x21d7   : > { %v1021_v5 = vpop.xlane.xlu0 %1020 }
0x21d8   : > { %vm1022_vm7 = vcmp.eq.f32.partialorder %v1019_v62, %v1021_v5  ;;  %v1027_v15 = vcvt.f32.s32 %v1021_v5 }
0x21d9   : > { %v1023_v8 = vsel %vm1022_vm7, %v1018_v7, inf  ;;  %vm528_vm7 = vcmask 15368  }
0x21da   : > { %1024 = vmin.xlane.f32.xlu2 %v1023_v8  ;;  %v1028_v19 = vshll.u32 %v1027_v15, 16 }
0x224d   : > { %v1025_v18 = vpop.xlane.xlu2 %1024 }
0x224e   : > { %v1026_v23 = vcvt.f32.s32 %v1025_v18  ;;  %v646_v18 = vsel %vm645_vm8, %v1612_v2, 0.0 }
0x2250   : > { %v1803_v24 = vadd.s32 %v1028_v19, %v1026_v23  ;;  %v649_v19 = vsel %vm645_vm8, %v1606_v34, 0.0  ;;  %v652_v23 = vsel %vm645_vm8, %v1609_v35, 0.0  ;;  %vm620_vm8 = vcmp.eq.s32.totalorder %v1459_v17, 1 }
0x2252   : > { %vm2158_vm0 = vcmp.eq.s32.totalorder %v1459_v17, %v1803_v24  ;;  %vm2163_vm6 = vcmp.eq.s32.totalorder %v1459_v17, %v1803_v24 }
0x2253   : > { %v1810_v27 = vsel %vm2158_vm0, inf, %v1011_v6  ;;  %v1037_v58 = vsel %vm2158_vm0, %v1609_v35, 0.0  ;;  %v856_v6 = vsel %vm855_vm14, %v1612_v2, 0.0  ;;  %v719_v2 = vsel %vm715_vm13, %v1606_v34, 0.0 }
0x2254   : > { %1047 = vmin.xlane.f32.xlu1 %v1810_v27  ;;  %vm830_vm0 = vcmp.eq.s32.totalorder %v1459_v17, 7 }
0x225c   : > { %577 = vadd.xlane.f32.xlu1 %v576_v29 }
0x2264   : > { %583 = vadd.xlane.f32.xlu1 %v582_v31 }
0x226c   : > { %615 = vadd.xlane.f32.xlu1 %v614_v33 }
0x2274   : > { %618 = vadd.xlane.f32.xlu1 %v617_v1 }
0x22c7   : > { %v1048_v3 = vpop.xlane.xlu1 %1047 }
0x22c8   : > { %vm1049_vm15 = vcmp.eq.f32.partialorder %v1810_v27, %v1048_v3 }
0x22c9   : > { %v1050_v36 = vsel %vm1049_vm15, %v1459_v17, 128  ;;  %vm534_vm15 = vcmask 23568  }
0x22ca   : > { %v1052_v16 = vshra.s32 %v1050_v36, 16  ;;  %v1051_v44 = vand.u32 65535, %v1050_v36 }
0x22cc   : > { %v1054_v40 = vcvt.s32.f32 %v1052_v16  ;;  %v1053_v54 = vcvt.s32.f32 %v1051_v44 }
0x22ce   : > { %1055 = vmin.xlane.f32.xlu0 %v1054_v40 }
0x22cf   : > { %v578_v29 = vpop.xlane.xlu1 %577 }
0x22e2   : > { %525 = vrot.lane.b32.xlu0 %v1677_v14, %s1365_s30  ;;  %v722_v14 = vsel %vm715_vm13, %v1609_v35, 0.0  ;;  %vm655_vm13 = vcmp.eq.s32.totalorder %v1459_v17, 2 }
0x230c   : > { %580 = vadd.xlane.f32.xlu0 %v579_v41 }
0x2314   : > { %682 = vadd.xlane.f32.xlu0 %v681_v42 }
0x231c   : > { %717 = vadd.xlane.f32.xlu0 %v716_v43 }
0x2324   : > { %723 = vadd.xlane.f32.xlu0 %v722_v14 }
0x232c   : > { %758 = vadd.xlane.f32.xlu0 %v757_v46 }
0x2334   : > { %793 = vadd.xlane.f32.xlu0 %v792_v45 }
0x233c   : > { %828 = vadd.xlane.f32.xlu0 %v827_v38 }
0x2341   : > { %v1056_v10 = vpop.xlane.xlu0 %1055 }
0x2342   : > { %vm1057_vm2 = vcmp.eq.f32.partialorder %v1054_v40, %v1056_v10  ;;  %v1062_v60 = vcvt.f32.s32 %v1056_v10 }
0x2343   : > { %v1058_v11 = vsel %vm1057_vm2, %v1053_v54, inf  ;;  %vm585_vm2 = vcmp.eq.s32.totalorder %v1459_v17, 0 }
0x2344   : > { %1059 = vmin.xlane.f32.xlu2 %v1058_v11  ;;  %863 = vadd.xlane.f32.xlu0 %v862_v13  ;;  %v1063_v62 = vshll.u32 %v1062_v60, 16  ;;  %v588_v53 = vsel %vm585_vm2, %v578_v29, 0.0 }
0x234c   : > { %898 = vadd.xlane.f32.xlu0 %v897_v48 }
0x2354   : > { %v526_v56 = vpop.permute.xlu0 %525  ;;  %933 = vadd.xlane.f32.xlu0 %v932_v49 }
0x2355   : > { %529 = vst.msk [vmem:[%s1669_s29] sm:$0xff] %vm528_vm7, %v526_v56  ;;  %vm690_vm7 = vcmp.eq.s32.totalorder %v1459_v17, 3  ;;  %v754_v56 = vsel %vm750_vm1, %v1606_v34, 0.0  ;;  %vm2162_vm1 = vcmp.eq.s32.totalorder %v1459_v17, %v1795_v4  ;;  %v1299_v4 = vld [vmem:[%s1440_s25 + $0x2] ss:$0 sm:$0xff] }
0x2356   : > { %vm2165_vm4 = vmmov %vm2162_vm1 }
0x235c   : > { %531 = vrot.lane.b32.xlu2 %v1673_v12, %s1366_s3  ;;  %968 = vadd.xlane.f32.xlu0 %v967_v57  ;;  %v684_v12 = vsel %vm680_vm10, %v1606_v34, 0.0 }
0x2364   : > { %1003 = vadd.xlane.f32.xlu0 %v1002_v51 }
0x236c   : > { %1038 = vadd.xlane.f32.xlu0 %v1037_v58 }
0x237f   : > { %v581_v36 = vpop.xlane.xlu0 %580 }
0x2380   : > { %v589_v13 = vsel %vm585_vm2, %v581_v36, 0.0 }
0x2385   : > { %612 = vadd.xlane.f32.xlu2 %v611_v59 }
0x2387   : > { %v683_v40 = vpop.xlane.xlu0 %682 }
0x238d   : > { %685 = vadd.xlane.f32.xlu2 %v684_v12 }
0x238f   : > { %v718_v44 = vpop.xlane.xlu0 %717 }
0x2395   : > { %752 = vadd.xlane.f32.xlu2 %v751_v28 }
0x239d   : > { %787 = vadd.xlane.f32.xlu2 %v786_v0 }
0x23a5   : > { %822 = vadd.xlane.f32.xlu2 %v821_v25 }
0x23ad   : > { %857 = vadd.xlane.f32.xlu2 %v856_v6  ;;  %v724_v6 = vpop.xlane.xlu0 %723 }
0x23b5   : > { %892 = vadd.xlane.f32.xlu2 %v891_v61 }
0x23b7   : > { %v1060_v50 = vpop.xlane.xlu2 %1059 }
0x23b8   : > { %v1061_v63 = vcvt.f32.s32 %v1060_v50  ;;  %v824_v50 = vsel %vm820_vm9, %v1606_v34, 0.0 }
0x23ba   : > { %v1914_v5 = vadd.s32 %v1063_v62, %v1061_v63  ;;  %v759_v63 = vpop.xlane.xlu0 %758 }
0x23bc   : > { %vm2157_vm5 = vcmp.eq.s32.totalorder %v1459_v17, %v1914_v5  ;;  %vm2164_vm9 = vcmp.eq.s32.totalorder %v1459_v17, %v1914_v5 }
0x23bd   : > { %v1072_v7 = vsel %vm2157_vm5, %v1609_v35, 0.0  ;;  %v1081_v8 = vsel %vm2157_vm5, inf, %v1810_v27  ;;  %v687_v27 = vsel %vm680_vm10, %v1609_v35, 0.0  ;;  %v584_v35 = vpop.xlane.xlu1 %583  ;;  %vm760_vm5 = vcmp.eq.s32.totalorder %v1459_v17, 5 }
0x23be   : > { %1073 = vadd.xlane.f32.xlu0 %v1072_v7  ;;  %1082 = vmin.xlane.f32.xlu1 %v1081_v8  ;;  %v590_v0 = vsel %vm585_vm2, %v584_v35, 0.0  ;;  %vm900_vm2 = vcmp.eq.s32.totalorder %v1459_v17, 9 }
0x23bf   : > { %v532_v15 = vpop.permute.xlu2 %531 }
0x23c0   : > { %535 = vst.msk [vmem:[%s1669_s29] sm:$0xff] %vm534_vm15, %v532_v15  ;;  %vm725_vm15 = vcmp.eq.s32.totalorder %v1459_v17, 4  ;;  %v859_v15 = vsel %vm855_vm14, %v1606_v34, 0.0 }
0x23c5   : > { %v616_v1 = vpop.xlane.xlu1 %615 }
0x23c6   : > { %647 = vadd.xlane.f32.xlu1 %v646_v18  ;;  %v624_v58 = vsel %vm620_vm8, %v616_v1, %v589_v13  ;;  %v929_v18 = vsel %vm925_vm11, %v1606_v34, 0.0  ;;  %v1298_v1 = vld [vmem:[%s1440_s25] ss:$0 sm:$0xff] }
0x23c7   : > { %v961_v36 = vsel %vm960_vm3, %v1298_v1, 0.0 }
0x23cd   : > { %v619_v39 = vpop.xlane.xlu1 %618 }
0x23ce   : > { %650 = vadd.xlane.f32.xlu1 %v649_v19  ;;  %v625_v25 = vsel %vm620_vm8, %v619_v39, %v590_v0  ;;  %v1297_v19 = vld [vmem:[%s1440_s25 + $0x1] ss:$0 sm:$0xff]  ;;  %v996_v39 = vsel %vm2165_vm4, %v1298_v1, 0.0 }
0x23cf   : > { %v999_v55 = vsel %vm2162_vm1, %v1297_v19, 0.0  ;;  %v1034_v47 = vsel %vm2163_vm6, %v1297_v19, 0.0  ;;  %v1069_v34 = vsel %vm2164_vm9, %v1297_v19, 0.0 }
0x23d6   : > { %653 = vadd.xlane.f32.xlu1 %v652_v23  ;;  %v964_v23 = vsel %vm960_vm3, %v1297_v19, 0.0 }
0x23de   : > { %688 = vadd.xlane.f32.xlu1 %v687_v27 }
0x23e6   : > { %720 = vadd.xlane.f32.xlu1 %v719_v2 }
0x23f8   : > { %v613_v31 = vpop.xlane.xlu2 %612 }
0x23f9   : > { %v623_v32 = vsel %vm620_vm8, %v613_v31, %v588_v53  ;;  %vm935_vm8 = vcmp.eq.s32.totalorder %v1459_v17, 10 }
0x2400   : > { %v686_v33 = vpop.xlane.xlu2 %685 }
0x2408   : > { %v753_v3 = vpop.xlane.xlu2 %752 }
0x2410   : > { %v788_v16 = vpop.xlane.xlu2 %787 }
0x2418   : > { %v823_v14 = vpop.xlane.xlu2 %822 }
0x2420   : > { %v858_v49 = vpop.xlane.xlu2 %857 }
0x2431   : > { %v1083_v41 = vpop.xlane.xlu1 %1082 }
0x2432   : > { %vm1084_vm10 = vcmp.eq.f32.partialorder %v1081_v8, %v1083_v41 }
0x2433   : > { %v1085_v42 = vsel %vm1084_vm10, %v1459_v17, 128  ;;  %vm795_vm10 = vcmp.eq.s32.totalorder %v1459_v17, 6 }
0x2434   : > { %v1087_v43 = vshra.s32 %v1085_v42, 16  ;;  %v1086_v2 = vand.u32 65535, %v1085_v42 }
0x2436   : > { %v1089_v46 = vcvt.s32.f32 %v1087_v43  ;;  %v1088_v53 = vcvt.s32.f32 %v1086_v2 }
0x2438   : > { %1090 = vmin.xlane.f32.xlu1 %v1089_v46 }
0x2439   : > { %v648_v45 = vpop.xlane.xlu1 %647 }
0x243a   : > { %v658_v38 = vsel %vm655_vm13, %v648_v45, %v623_v32 }
0x243b   : > { %v693_v10 = vsel %vm690_vm7, %v683_v40, %v658_v38  ;;  %v893_v40 = vpop.xlane.xlu2 %892 }
0x243c   : > { %v728_v54 = vsel %vm725_vm15, %v718_v44, %v693_v10  ;;  %v794_v44 = vpop.xlane.xlu0 %793 }
0x243d   : > { %v763_v11 = vsel %vm760_vm5, %v753_v3, %v728_v54  ;;  %v926_v3 = vsel %vm925_vm11, %v1298_v1, 0.0  ;;  %vm2167_vm11 = vmmov %vm2164_vm9 }
0x243e   : > { %v798_v48 = vsel %vm795_vm10, %v788_v16, %v763_v11  ;;  %v1066_v30 = vsel %vm2167_vm11, %v1298_v1, 0.0 }
0x243f   : > { %v833_v57 = vsel %vm830_vm0, %v823_v14, %v798_v48 }
0x2440   : > { %755 = vadd.xlane.f32.xlu1 %v754_v56  ;;  %v1981_v51 = vsel %vm865_vm12, %v858_v49, %v833_v57 }
0x2441   : > { %v651_v59 = vpop.xlane.xlu1 %650 }
0x2442   : > { %v659_v12 = vsel %vm655_vm13, %v651_v59, %v624_v58 }
0x2443   : > { %v694_v28 = vsel %vm690_vm7, %v686_v33, %v659_v12 }
0x2444   : > { %v829_v10 = vpop.xlane.xlu0 %828 }
0x2448   : > { %790 = vadd.xlane.f32.xlu1 %v789_v26 }
0x2449   : > { %v654_v60 = vpop.xlane.xlu1 %653 }
0x244a   : > { %v660_v61 = vsel %vm655_vm13, %v654_v60, %v625_v25  ;;  %vm970_vm13 = vcmp.eq.s32.totalorder %v1459_v17, 11 }
0x244c   : > { %v864_v11 = vpop.xlane.xlu0 %863 }
0x2450   : > { %825 = vadd.xlane.f32.xlu1 %v824_v50 }
0x2451   : > { %v689_v9 = vpop.xlane.xlu1 %688 }
0x2452   : > { %v695_v62 = vsel %vm690_vm7, %v689_v9, %v660_v61  ;;  %vm1005_vm7 = vcmp.eq.s32.totalorder %v1459_v17, 12 }
0x2453   : > { %v730_v7 = vsel %vm725_vm15, %v724_v6, %v695_v62 }
0x2454   : > { %v2009_v8 = vsel %vm760_vm5, %v759_v63, %v730_v7  ;;  %v899_v48 = vpop.xlane.xlu0 %898 }
0x2455   : > { %v800_v25 = vsel %vm795_vm10, %v794_v44, %v2009_v8 }
0x2456   : > { %v835_v6 = vsel %vm830_vm0, %v829_v10, %v800_v25 }
0x2457   : > { %v870_v60 = vsel %vm865_vm12, %v864_v11, %v835_v6 }
0x2458   : > { %860 = vadd.xlane.f32.xlu1 %v859_v15  ;;  %v905_v62 = vsel %vm900_vm2, %v899_v48, %v870_v60 }
0x2459   : > { %v721_v27 = vpop.xlane.xlu1 %720 }
0x245a   : > { %v729_v32 = vsel %vm725_vm15, %v721_v27, %v694_v28  ;;  %vm1040_vm15 = vcmp.eq.s32.totalorder %v1459_v17, 13  ;;  %v903_v27 = vsel %vm900_vm2, %v893_v40, %v1981_v51 }
0x245c   : > { %v934_v57 = vpop.xlane.xlu0 %933 }
0x245d   : > { %v940_v63 = vsel %vm935_vm8, %v934_v57, %v905_v62 }
0x2460   : > { %895 = vadd.xlane.f32.xlu1 %v894_v37 }
0x2464   : > { %v969_v12 = vpop.xlane.xlu0 %968 }
0x2465   : > { %v975_v7 = vsel %vm970_vm13, %v969_v12, %v940_v63 }
0x2468   : > { %930 = vadd.xlane.f32.xlu1 %v929_v18 }
0x246c   : > { %v1004_v0 = vpop.xlane.xlu0 %1003 }
0x2470   : > { %965 = vadd.xlane.f32.xlu1 %v964_v23 }
0x2474   : > { %v1039_v9 = vpop.xlane.xlu0 %1038 }
0x2478   : > { %1000 = vadd.xlane.f32.xlu1 %v999_v55  ;;  %v1010_v55 = vsel %vm1005_vm7, %v1004_v0, %v975_v7 }
0x247c   : > { %v1074_v8 = vpop.xlane.xlu0 %1073 }
0x2480   : > { %1035 = vadd.xlane.f32.xlu1 %v1034_v47 }
0x2488   : > { %1070 = vadd.xlane.f32.xlu1 %v1069_v34 }
0x24ab   : > { %v1091_v29 = vpop.xlane.xlu1 %1090 }
0x24ac   : > { %vm1092_vm14 = vcmp.eq.f32.partialorder %v1089_v46, %v1091_v29  ;;  %v1097_v52 = vcvt.f32.s32 %v1091_v29 }
0x24ad   : > { %v1093_v31 = vsel %vm1092_vm14, %v1088_v53, inf  ;;  %v1045_v53 = vsel %vm1040_vm15, %v1039_v9, %v1010_v55 }
0x24ae   : > { %1094 = vmin.xlane.f32.xlu2 %v1093_v31  ;;  %v1098_v42 = vshll.u32 %v1097_v52, 16 }
0x24b3   : > { %v756_v35 = vpop.xlane.xlu1 %755 }
0x24b4   : > { %v764_v33 = vsel %vm760_vm5, %v756_v35, %v729_v32  ;;  %vm2166_vm5 = vmmov %vm2163_vm6 }
0x24b5   : > { %v1031_v16 = vsel %vm2166_vm5, %v1298_v1, 0.0 }
0x24b6   : > { %927 = vadd.xlane.f32.xlu2 %v926_v3 }
0x24bb   : > { %v791_v24 = vpop.xlane.xlu1 %790 }
0x24bc   : > { %v799_v15 = vsel %vm795_vm10, %v791_v24, %v764_v33  ;;  %vm1117_vm10 = vcmask 130048  }
0x24be   : > { %962 = vadd.xlane.f32.xlu2 %v961_v36 }
0x24c3   : > { %v826_v5 = vpop.xlane.xlu1 %825 }
0x24c4   : > { %v834_v18 = vsel %vm830_vm0, %v826_v5, %v799_v15  ;;  %vm1110_vm0 = vcmp.eq.s32.totalorder %v1459_v17, 15 }
0x24c6   : > { %997 = vadd.xlane.f32.xlu2 %v996_v39 }
0x24cb   : > { %v861_v54 = vpop.xlane.xlu1 %860 }
0x24cc   : > { %v869_v23 = vsel %vm865_vm12, %v861_v54, %v834_v18  ;;  %vm1075_vm12 = vcmp.eq.s32.totalorder %v1459_v17, 14 }
0x24cd   : > { %v1080_v3 = vsel %vm1075_vm12, %v1074_v8, %v1045_v53 }
0x24ce   : > { %1032 = vadd.xlane.f32.xlu2 %v1031_v16 }
0x24d3   : > { %v896_v13 = vpop.xlane.xlu1 %895 }
0x24d4   : > { %v904_v47 = vsel %vm900_vm2, %v896_v13, %v869_v23 }
0x24d6   : > { %1067 = vadd.xlane.f32.xlu2 %v1066_v30 }
0x24db   : > { %v931_v49 = vpop.xlane.xlu1 %930 }
0x24dc   : > { %v939_v34 = vsel %vm935_vm8, %v931_v49, %v904_v47 }
0x24e3   : > { %v966_v58 = vpop.xlane.xlu1 %965 }
0x24e4   : > { %v974_v2 = vsel %vm970_vm13, %v966_v58, %v939_v34 }
0x24eb   : > { %v1001_v28 = vpop.xlane.xlu1 %1000 }
0x24ec   : > { %v1009_v31 = vsel %vm1005_vm7, %v1001_v28, %v974_v2 }
0x24f3   : > { %v1036_v61 = vpop.xlane.xlu1 %1035 }
0x24f4   : > { %v1044_v51 = vsel %vm1040_vm15, %v1036_v61, %v1009_v31 }
0x24fb   : > { %v1071_v37 = vpop.xlane.xlu1 %1070 }
0x24fc   : > { %v1079_v33 = vsel %vm1075_vm12, %v1071_v37, %v1044_v51 }
0x2521   : > { %v1095_v41 = vpop.xlane.xlu2 %1094 }
0x2522   : > { %v1096_v43 = vcvt.f32.s32 %v1095_v41 }
0x2524   : > { %v1099_v14 = vadd.s32 %v1098_v42, %v1096_v43 }
0x2526   : > { %vm1100_vm3 = vcmp.eq.s32.totalorder %v1459_v17, %v1099_v14 }
0x2527   : > { %v1107_v46 = vsel %vm1100_vm3, %v1299_v4, 0.0  ;;  %v1104_v45 = vsel %vm1100_vm3, %v1297_v19, 0.0  ;;  %v1101_v38 = vsel %vm1100_vm3, %v1298_v1, 0.0 }
0x2528   : > { %1108 = vadd.xlane.f32.xlu0 %v1107_v46  ;;  %1105 = vadd.xlane.f32.xlu1 %v1104_v45 }
0x2529   : > { %1102 = vadd.xlane.f32.xlu2 %v1101_v38  ;;  %v928_v56 = vpop.xlane.xlu2 %927 }
0x252a   : > { %v938_v29 = vsel %vm935_vm8, %v928_v56, %v903_v27 }
0x2531   : > { %v963_v59 = vpop.xlane.xlu2 %962 }
0x2532   : > { %v973_v32 = vsel %vm970_vm13, %v963_v59, %v938_v29 }
0x2539   : > { %v998_v26 = vpop.xlane.xlu2 %997 }
0x253a   : > { %v1008_v35 = vsel %vm1005_vm7, %v998_v26, %v973_v32 }
0x2541   : > { %v1033_v50 = vpop.xlane.xlu2 %1032 }
0x2542   : > { %v1043_v1 = vsel %vm1040_vm15, %v1033_v50, %v1008_v35 }
0x2549   : > { %v1068_v19 = vpop.xlane.xlu2 %1067 }
0x254a   : > { %v1078_v16 = vsel %vm1075_vm12, %v1068_v19, %v1043_v1 }
0x259b   : > { %v1109_v36 = vpop.xlane.xlu0 %1108  ;;  %v1106_v39 = vpop.xlane.xlu1 %1105 }
0x259c   : > { %v1115_v30 = vsel %vm1110_vm0, %v1109_v36, %v1080_v3  ;;  %v1103_v40 = vpop.xlane.xlu2 %1102  ;;  %v1114_v52 = vsel %vm1110_vm0, %v1106_v39, %v1079_v33 }
0x259d   : > { %v1122_v41 = vsub.f32 %v1115_v30, %v1690_v21  ;;  %v1113_v42 = vsel %vm1110_vm0, %v1103_v40, %v1078_v16  ;;  %v1119_v43 = vsub.f32 %v1114_v52, %v1686_v20 }
0x259e   : > { %v1116_v14 = vsub.f32 %v1113_v42, %v1692_v22 }
0x259f   : > { %1241 = vst.msk [vmem:[%s135_s14 + $0x10] sm:$0xff] %vm1117_vm10, %v1122_v41 }
0x25a0   : > { %1118 = vst.msk [vmem:[%s135_s14] sm:$0xff] %vm1117_vm10, %v1116_v14 }
0x25a1   : > { %1240 = vst.msk [vmem:[%s135_s14 + $0x8] sm:$0xff] %vm1117_vm10, %v1119_v43 }
0x25a2   : > { %1327 = shalt.err (!%p1324_p3)
}
0x25a3   : > { %s1367_s29 = smov 128   ;;  %s1368_s30 = smov 8  }
0x25a4   : > { %1247 = dma.vmem_to_hbm [thread:$0]  (%p1422_p5), %s1143_s16, 384, %s1145_s17, %s1126_s21, %s1367_s29, %s1367_s29, %s1368_s30  }
0x25a5 PF: > { %p1253_p4 = scmp.ge.s32.totalorder %s1362_s12, 2  ;;  %s1162_s3 = sand.u32 1, %s1350_s9  }
0x25a6   : > { %s1163_s4 = scalar_lea.sflag [#allocation3], %s1162_s3 }
0x25a7   : > { %p1250_p7 = pnand %p1253_p4, %p1426_p6 }
0x25a9   : > { %p1251_p8 = pneg %p1250_p7 }
0x25ab   : > { %1345 = dma.done.wait (%p1251_p8), %s1163_s4, 384  }
0x25ac   : > { %1347 = vsyncadd (%p1251_p8), %s1163_s4, 4294966912  ;;  %p13_p9 = scmp.ge.s32.totalorder %s1409_s15, 4   ;;  %s2168_s9 = smov %s1354_s10 }
0x25ad   : > { %s2169_s10 = smov %s1358_s11  ;;  %s2170_s11 = smov %s1420_s18 }
0x25ae   : > { %s2171_s12 = smov %s1409_s15  ;;  %15 = sbr.rel (!%p13_p9) target bundleno = 3 (0x3), region = 73 }
0x25b3   :  { %1176 = vsyncpa [#allocation3], 1 }
0x25b4   :  { %1178 = vsyncpa [#allocation3 + $0x1], 1 }

</bundles_post_ra>
